<compile_context>
chip_gen: v5e
topology: v5e:2x2
jax: 0.10.0
libtpu: 0.0.40
codegen_flags: <defaults>
</compile_context>

<pallas_src>
import math
import jax
import jax.numpy as jnp
from jax import lax
from jax.experimental import pallas as pl
from jax.experimental.pallas import tpu as pltpu

SLAB = 128  # lane slab used for all padded segments (head / expert / classes)


def _layernorm(x, w, b, eps=1e-5):
    mu = jnp.mean(x, axis=-1, keepdims=True)
    xc = x - mu
    var = jnp.mean(xc * xc, axis=-1, keepdims=True)
    return xc * lax.rsqrt(var + eps) * w + b


def _softmax_last(x):
    m = jnp.max(x, axis=-1, keepdims=True)
    e = jnp.exp(x - m)
    return e / jnp.sum(e, axis=-1, keepdims=True)


def make_kernel(cfg, nc_pad):
    B = cfg["batch"]
    N = cfg["num_patches"]
    NB = N * B
    D = cfg["embed_dim"]
    H = cfg["num_heads"]
    E = cfg["num_experts"]
    ncls = cfg["num_classes"]
    K_OFF = SLAB                  # start of the per-head K slabs
    V_OFF = SLAB * (1 + H)        # start of the per-head V slabs
    QKV_W = SLAB * (1 + 2 * H)    # total fused-QKV output width
    GATE_OFF = SLAB * E           # start of the gate slab in the MoE matmul
    bf16 = jnp.bfloat16
    f32 = jnp.float32

    def kernel(patches_ref,
               wp_ref, bp_ref,
               wqkv_ref, bqkv_ref,
               wo_ref, bo_ref,
               ln1w_ref, ln1b_ref,
               wff1_ref, bff1_ref, wff2_ref, bff2_ref,
               ln2w_ref, ln2b_ref,
               wmoe_ref, bmoe_ref,
               wfc_ref, bfc_ref,
               out_ref):
        # ---- PatchEmbedding: one (NB, C*p*p) @ (C*p*p, D) matmul ------------
        xp = patches_ref[...].astype(bf16)
        e = jnp.dot(xp, wp_ref[...], preferred_element_type=f32) + bp_ref[...]

        # ---- Fused, slab-packed QKV projection (1/sqrt(hd) folded in) -------
        qkv = jnp.dot(e.astype(bf16), wqkv_ref[...],
                      preferred_element_type=f32) + bqkv_ref[...]
        qkv3 = qkv.reshape(N, B, QKV_W)          # rows are patch-major (n, b)
        q3 = qkv3[:, :, 0:SLAB]                  # whole-vreg slice

        # ---- Multi-head self-attention over the image-batch axis ------------
        # Per-head K/V slabs are zero outside the head's own column range, so
        # the contractions over the full 128-lane slab give exactly the
        # per-head scores, and the per-head outputs land at their final column
        # positions -> accumulating o_acc produces the "concatenated" layout
        # directly with no lane-interleaving concat or masked sub-vreg slices.
        o_acc = jnp.zeros((N, B, SLAB), f32)
        for h in range(H):
            k3 = qkv3[:, :, K_OFF + h * SLAB: K_OFF + (h + 1) * SLAB]
            v3 = qkv3[:, :, V_OFF + h * SLAB: V_OFF + (h + 1) * SLAB]
            s = jnp.einsum("nqc,nkc->nqk", q3, k3,
                           preferred_element_type=f32)       # (N, B, B)
            p = _softmax_last(s)                               # f32 probs
            o_acc = o_acc + jnp.einsum("nqk,nkc->nqc", p, v3,
                                       preferred_element_type=f32)
        attn = jnp.dot(o_acc.reshape(NB, SLAB).astype(bf16), wo_ref[...],
                       preferred_element_type=f32) + bo_ref[...]

        h1 = _layernorm(e + attn, ln1w_ref[...], ln1b_ref[...])

        # ---- Feed-forward: linear2(relu(linear1(x))) -------------------------
        ff = jnp.maximum(
            jnp.dot(h1.astype(bf16), wff1_ref[...], preferred_element_type=f32)
            + bff1_ref[...], 0.0)
        ff = jnp.dot(ff.astype(bf16), wff2_ref[...],
                     preferred_element_type=f32) + bff2_ref[...]
        h2 = _layernorm(h1 + ff, ln2w_ref[...], ln2b_ref[...])

        # ---- MoE: experts (128-lane slabs) + gate fused into ONE matmul ------
        moe_all = jnp.dot(h2.astype(bf16), wmoe_ref[...],
                          preferred_element_type=f32) + bmoe_ref[...]
        # Padded gate lanes carry a -1e30 bias, so softmax over the whole slab
        # is exact (padded probabilities underflow to 0).
        gate = _softmax_last(moe_all[:, GATE_OFF:GATE_OFF + SLAB])   # (NB, 128)
        moe = jnp.zeros((NB, SLAB), f32)
        for ex in range(E):
            moe = moe + gate[:, ex:ex + 1] * moe_all[:, ex * SLAB:(ex + 1) * SLAB]

        # ---- Mean over patches (rows are patch-major) + classifier head ------
        mean_tok = jnp.mean(moe.reshape(N, B, SLAB), axis=0)         # (B, 128)
        logits = jnp.dot(mean_tok.astype(bf16), wfc_ref[...],
                         preferred_element_type=f32) + bfc_ref[...]  # (B, NC_PAD)

        # Importance-style aux loss, written into a spare padded logits lane.
        pm = jnp.mean(gate, axis=0, keepdims=True)                   # (1, 128)
        aux = E * jnp.sum(pm * pm, axis=-1, keepdims=True)           # (1, 1)
        col = lax.broadcasted_iota(jnp.int32, (B, nc_pad), 1)
        out_ref[...] = logits + jnp.where(col == ncls, aux, 0.0)

    return kernel


def pack_params(params, cfg):
    """Fuse / pad / mask parameters once so the kernel only sees aligned slabs."""
    D = cfg["embed_dim"]
    H = cfg["num_heads"]
    hd = D // H
    E = cfg["num_experts"]
    Xd = cfg["expert_dim"]
    ncls = cfg["num_classes"]
    NC_PAD = ((ncls + 1 + SLAB - 1) // SLAB) * SLAB   # guarantee a spare lane
    scale = 1.0 / math.sqrt(hd)
    f32 = jnp.float32
    bf16 = jnp.bfloat16

    # Q slab: scale folded in, padded to 128 lanes.
    wq_pad = jnp.zeros((D, SLAB), f32).at[:, :D].set(params["wq"] * scale)
    bq_pad = jnp.zeros((1, SLAB), f32).at[:, :D].set(params["bq"] * scale)
    # Per-head K / V slabs: head h's columns placed at lanes [h*hd:(h+1)*hd]
    # inside its own 128-lane slab, zeros elsewhere.
    wk_h = jnp.zeros((D, H * SLAB), f32)
    bk_h = jnp.zeros((1, H * SLAB), f32)
    wv_h = jnp.zeros((D, H * SLAB), f32)
    bv_h = jnp.zeros((1, H * SLAB), f32)
    for h in range(H):
        src = slice(h * hd, (h + 1) * hd)
        dst = slice(h * SLAB + h * hd, h * SLAB + (h + 1) * hd)
        wk_h = wk_h.at[:, dst].set(params["wk"][:, src])
        bk_h = bk_h.at[:, dst].set(params["bk"][:, src])
        wv_h = wv_h.at[:, dst].set(params["wv"][:, src])
        bv_h = bv_h.at[:, dst].set(params["bv"][:, src])
    wqkv = jnp.concatenate([wq_pad, wk_h, wv_h], axis=1)     # (D, (1+2H)*128)
    bqkv = jnp.concatenate([bq_pad, bk_h, bv_h], axis=1)

    # Output projection padded to 128 input rows (rows beyond D are zero).
    wo_pad = jnp.zeros((SLAB, D), f32).at[:D, :].set(params["wo"])

    # MoE: E expert slabs (each padded to 128 lanes) + one gate slab, fused.
    wmoe = jnp.zeros((D, (E + 1) * SLAB), f32)
    bmoe = jnp.zeros((1, (E + 1) * SLAB), f32)
    for ex in range(E):
        wmoe = wmoe.at[:, ex * SLAB: ex * SLAB + Xd].set(params["wexp"][ex])
        bmoe = bmoe.at[:, ex * SLAB: ex * SLAB + Xd].set(
            params["bexp"][ex].reshape(1, Xd))
    wmoe = wmoe.at[:, E * SLAB: E * SLAB + E].set(params["wg"])
    bmoe = bmoe.at[:, E * SLAB: E * SLAB + E].set(params["bg"])
    # Kill padded gate lanes so softmax over the whole slab is exact.
    bmoe = bmoe.at[:, E * SLAB + E:].set(-1e30)

    # Classifier: pad to 128 input rows and NC_PAD lane-dense output columns.
    wfc_pad = jnp.zeros((SLAB, NC_PAD), f32).at[:Xd, :ncls].set(params["wfc"])
    bfc_pad = jnp.zeros((1, NC_PAD), f32).at[:, :ncls].set(params["bfc"])

    packed = [
        params["wp"].astype(bf16), params["bp"],
        wqkv.astype(bf16), bqkv,
        wo_pad.astype(bf16), params["bo"],
        params["ln1w"], params["ln1b"],
        params["wff1"].astype(bf16), params["bff1"],
        params["wff2"].astype(bf16), params["bff2"],
        params["ln2w"], params["ln2b"],
        wmoe.astype(bf16), bmoe,
        wfc_pad.astype(bf16), bfc_pad,
    ]
    return packed, NC_PAD


def vision_moe_forward(x, params, cfg):
    B, C, Himg, Wimg = x.shape
    p = cfg["patch_size"]
    Hp, Wp_ = Himg // p, Wimg // p
    N = Hp * Wp_
    assert N == cfg["num_patches"] and B == cfg["batch"]
    CP2 = C * p * p
    NB = N * B

    # Patch extraction (glue): row-major over (Hp, Wp), per-patch flatten in
    # (C, ph, pw) order.  Rows are patch-major (row = n*B + b) so the kernel
    # can reshape (NB, .) -> (N, B, .) for attention and pooling for free.
    xr = x.reshape(B, C, Hp, p, Wp_, p).transpose(0, 2, 4, 1, 3, 5)
    patches = xr.reshape(B, N, CP2).transpose(1, 0, 2).reshape(NB, CP2)

    packed, NC_PAD = pack_params(params, cfg)

    def fullspec(shape):
        nd = len(shape)
        return pl.BlockSpec(shape, lambda i, nd=nd: (0,) * nd)

    in_specs = [fullspec(patches.shape)] + [fullspec(tuple(w.shape)) for w in packed]
    out_shape = jax.ShapeDtypeStruct((B, NC_PAD), jnp.float32)
    out_specs = fullspec((B, NC_PAD))

    out = pl.pallas_call(
        make_kernel(cfg, NC_PAD),
        grid=(1,),
        in_specs=in_specs,
        out_specs=out_specs,
        out_shape=out_shape,
        compiler_params=pltpu.CompilerParams(
            dimension_semantics=("arbitrary",)),
    )(patches, *packed)

    ncls = cfg["num_classes"]
    logits = out[:, :ncls]
    aux = out[0, ncls]          # aux loss lives in the first spare padded lane
    return logits, aux


def init_params(key, cfg):
    D = cfg["embed_dim"]
    E = cfg["num_experts"]
    Xd = cfg["expert_dim"]
    Dff = cfg["dim_feedforward"]
    ncls = cfg["num_classes"]
    CP2 = 3 * cfg["patch_size"] ** 2

    ks = iter(jax.random.split(key, 32))

    def nrm(shape, s=0.05):
        return (s * jax.random.normal(next(ks), shape)).astype(jnp.float32)

    params = {
        "wp": nrm((CP2, D)), "bp": nrm((1, D)),
        "wq": nrm((D, D)), "bq": nrm((1, D)),
        "wk": nrm((D, D)), "bk": nrm((1, D)),
        "wv": nrm((D, D)), "bv": nrm((1, D)),
        "wo": nrm((D, D)), "bo": nrm((1, D)),
        "ln1w": 1.0 + nrm((1, D)), "ln1b": nrm((1, D)),
        "wff1": nrm((D, Dff)), "bff1": nrm((1, Dff)),
        "wff2": nrm((Dff, D)), "bff2": nrm((1, D)),
        "ln2w": 1.0 + nrm((1, D)), "ln2b": nrm((1, D)),
        "wg": nrm((D, E)), "bg": nrm((1, E)),
        "wexp": nrm((E, D, Xd)), "bexp": nrm((E, 1, Xd)),
        "wfc": nrm((Xd, ncls)), "bfc": nrm((1, ncls)),
    }
    return params


def reference_forward(x, params, cfg):
    """Pure-JAX f32 reference with identical semantics (for verification)."""
    B, C, Himg, Wimg = x.shape
    p = cfg["patch_size"]
    D = cfg["embed_dim"]
    H = cfg["num_heads"]
    hd = D // H
    E = cfg["num_experts"]
    Hp, Wp_ = Himg // p, Wimg // p
    N = Hp * Wp_

    xr = x.reshape(B, C, Hp, p, Wp_, p).transpose(0, 2, 4, 1, 3, 5)
    patches = xr.reshape(B, N, C * p * p)

    e = patches @ params["wp"] + params["bp"]
    q = e @ params["wq"] + params["bq"]
    k = e @ params["wk"] + params["bk"]
    v = e @ params["wv"] + params["bv"]
    qh = q.reshape(B, N, H, hd)
    kh = k.reshape(B, N, H, hd)
    vh = v.reshape(B, N, H, hd)
    s = jnp.einsum("bnhd,cnhd->nhbc", qh, kh) / math.sqrt(hd)
    pattn = jax.nn.softmax(s, axis=-1)
    o = jnp.einsum("nhbc,cnhd->bnhd", pattn, vh).reshape(B, N, D)
    attn = o @ params["wo"] + params["bo"]

    def ln(y, w, b):
        mu = y.mean(-1, keepdims=True)
        var = ((y - mu) ** 2).mean(-1, keepdims=True)
        return (y - mu) / jnp.sqrt(var + 1e-5) * w + b

    h1 = ln(e + attn, params["ln1w"], params["ln1b"])
    ff = jax.nn.relu(h1 @ params["wff1"] + params["bff1"]) @ params["wff2"] + params["bff2"]
    h2 = ln(h1 + ff, params["ln2w"], params["ln2b"])

    gate = jax.nn.softmax(h2 @ params["wg"] + params["bg"], axis=-1)
    eo = jnp.einsum("bnd,edx->bnex", h2, params["wexp"]) + params["bexp"].reshape(E, -1)
    moe = jnp.einsum("bne,bnex->bnx", gate, eo)
    logits = moe.mean(axis=1) @ params["wfc"] + params["bfc"]
    pm = gate.mean(axis=(0, 1))
    aux = E * jnp.sum(pm ** 2)
    return logits, aux


if __name__ == "__main__":
    cfg = dict(img_size=16, patch_size=4, embed_dim=32, num_heads=4,
               num_experts=4, expert_dim=64, num_classes=10,
               dim_feedforward=64, batch=2)
    cfg["num_patches"] = (cfg["img_size"] // cfg["patch_size"]) ** 2

    key = jax.random.PRNGKey(0)
    kx, kp = jax.random.split(key)
    x = jax.random.normal(kx, (cfg["batch"], 3, cfg["img_size"], cfg["img_size"]),
                          dtype=jnp.float32)
    params = init_params(kp, cfg)

    logits, aux = vision_moe_forward(x, params, cfg)
    jax.block_until_ready((logits, aux))

    ref_logits, ref_aux = reference_forward(x, params, cfg)
    assert logits.shape == (cfg["batch"], cfg["num_classes"])
    # bf16 MXU operands (f32 accumulation) vs pure-f32 reference -> modest tol.
    assert jnp.allclose(logits, ref_logits, atol=2e-2, rtol=2e-2), (
        float(jnp.max(jnp.abs(logits - ref_logits))))
    assert jnp.allclose(aux, ref_aux, atol=2e-2, rtol=2e-2), (float(aux), float(ref_aux))
    print("KERNEL_OK")
</pallas_src>

<mosaic_0001>
module attributes {stable_mosaic.version = 11 : i64} {
  func.func @kernel(%arg0: i32, %arg1: memref<32x48xf32, #tpu.memory_space<vmem>>, %arg2: memref<48x32xbf16, #tpu.memory_space<vmem>>, %arg3: memref<1x32xf32, #tpu.memory_space<vmem>>, %arg4: memref<32x1152xbf16, #tpu.memory_space<vmem>>, %arg5: memref<1x1152xf32, #tpu.memory_space<vmem>>, %arg6: memref<128x32xbf16, #tpu.memory_space<vmem>>, %arg7: memref<1x32xf32, #tpu.memory_space<vmem>>, %arg8: memref<1x32xf32, #tpu.memory_space<vmem>>, %arg9: memref<1x32xf32, #tpu.memory_space<vmem>>, %arg10: memref<32x64xbf16, #tpu.memory_space<vmem>>, %arg11: memref<1x64xf32, #tpu.memory_space<vmem>>, %arg12: memref<64x32xbf16, #tpu.memory_space<vmem>>, %arg13: memref<1x32xf32, #tpu.memory_space<vmem>>, %arg14: memref<1x32xf32, #tpu.memory_space<vmem>>, %arg15: memref<1x32xf32, #tpu.memory_space<vmem>>, %arg16: memref<32x640xbf16, #tpu.memory_space<vmem>>, %arg17: memref<1x640xf32, #tpu.memory_space<vmem>>, %arg18: memref<128x128xbf16, #tpu.memory_space<vmem>>, %arg19: memref<1x128xf32, #tpu.memory_space<vmem>>, %arg20: memref<2x128xf32, #tpu.memory_space<vmem>>) attributes {dimension_semantics = [#tpu.dimension_semantics<arbitrary>], iteration_bounds = array<i64: 1>, scalar_prefetch = 0 : i64, scratch_operands = 0 : i64, tpu.core_type = #tpu.core_type<tc>, window_params = [{pipeline_mode = #tpu.pipeline_mode<synchronous>, transform_indices = @transform_0, window_bounds = array<i64: 32, 48>}, {pipeline_mode = #tpu.pipeline_mode<synchronous>, transform_indices = @transform_1, window_bounds = array<i64: 48, 32>}, {pipeline_mode = #tpu.pipeline_mode<synchronous>, transform_indices = @transform_2, window_bounds = array<i64: 1, 32>}, {pipeline_mode = #tpu.pipeline_mode<synchronous>, transform_indices = @transform_3, window_bounds = array<i64: 32, 1152>}, {pipeline_mode = #tpu.pipeline_mode<synchronous>, transform_indices = @transform_4, window_bounds = array<i64: 1, 1152>}, {pipeline_mode = #tpu.pipeline_mode<synchronous>, transform_indices = @transform_5, window_bounds = array<i64: 128, 32>}, {pipeline_mode = #tpu.pipeline_mode<synchronous>, transform_indices = @transform_6, window_bounds = array<i64: 1, 32>}, {pipeline_mode = #tpu.pipeline_mode<synchronous>, transform_indices = @transform_7, window_bounds = array<i64: 1, 32>}, {pipeline_mode = #tpu.pipeline_mode<synchronous>, transform_indices = @transform_8, window_bounds = array<i64: 1, 32>}, {pipeline_mode = #tpu.pipeline_mode<synchronous>, transform_indices = @transform_9, window_bounds = array<i64: 32, 64>}, {pipeline_mode = #tpu.pipeline_mode<synchronous>, transform_indices = @transform_10, window_bounds = array<i64: 1, 64>}, {pipeline_mode = #tpu.pipeline_mode<synchronous>, transform_indices = @transform_11, window_bounds = array<i64: 64, 32>}, {pipeline_mode = #tpu.pipeline_mode<synchronous>, transform_indices = @transform_12, window_bounds = array<i64: 1, 32>}, {pipeline_mode = #tpu.pipeline_mode<synchronous>, transform_indices = @transform_13, window_bounds = array<i64: 1, 32>}, {pipeline_mode = #tpu.pipeline_mode<synchronous>, transform_indices = @transform_14, window_bounds = array<i64: 1, 32>}, {pipeline_mode = #tpu.pipeline_mode<synchronous>, transform_indices = @transform_15, window_bounds = array<i64: 32, 640>}, {pipeline_mode = #tpu.pipeline_mode<synchronous>, transform_indices = @transform_16, window_bounds = array<i64: 1, 640>}, {pipeline_mode = #tpu.pipeline_mode<synchronous>, transform_indices = @transform_17, window_bounds = array<i64: 128, 128>}, {pipeline_mode = #tpu.pipeline_mode<synchronous>, transform_indices = @transform_18, window_bounds = array<i64: 1, 128>}, {pipeline_mode = #tpu.pipeline_mode<synchronous>, transform_indices = @transform_19, window_bounds = array<i64: 2, 128>}]} {
    %c0 = arith.constant 0 : index
    %c0_0 = arith.constant 0 : index
    %0 = vector.load %arg1[%c0, %c0_0] : memref<32x48xf32, #tpu.memory_space<vmem>>, vector<32x48xf32>
    %1 = arith.truncf %0 : vector<32x48xf32> to vector<32x48xbf16>
    %c0_1 = arith.constant 0 : index
    %c0_2 = arith.constant 0 : index
    %2 = vector.load %arg2[%c0_1, %c0_2] : memref<48x32xbf16, #tpu.memory_space<vmem>>, vector<48x32xbf16>
    %cst = arith.constant dense<0.000000e+00> : vector<32x32xf32>
    %3 = tpu.matmul %1, %2, %cst {dimension_numbers = #tpu.dot_dimension_numbers<[1], [0], [0], [1], [0, 0, 1, 1], [], []>} : vector<32x48xbf16>, vector<48x32xbf16>, vector<32x32xf32> -> vector<32x32xf32>
    %c0_3 = arith.constant 0 : index
    %c0_4 = arith.constant 0 : index
    %4 = vector.load %arg3[%c0_3, %c0_4] : memref<1x32xf32, #tpu.memory_space<vmem>>, vector<1x32xf32>
    %5 = vector.broadcast %4 : vector<1x32xf32> to vector<32x32xf32>
    %6 = arith.addf %3, %5 : vector<32x32xf32>
    %7 = arith.truncf %6 : vector<32x32xf32> to vector<32x32xbf16>
    %c0_5 = arith.constant 0 : index
    %c0_6 = arith.constant 0 : index
    %8 = vector.load %arg4[%c0_5, %c0_6] : memref<32x1152xbf16, #tpu.memory_space<vmem>>, vector<32x1152xbf16>
    %cst_7 = arith.constant dense<0.000000e+00> : vector<32x1152xf32>
    %9 = tpu.matmul %7, %8, %cst_7 {dimension_numbers = #tpu.dot_dimension_numbers<[1], [0], [0], [1], [0, 0, 1, 1], [], []>} : vector<32x32xbf16>, vector<32x1152xbf16>, vector<32x1152xf32> -> vector<32x1152xf32>
    %c0_8 = arith.constant 0 : index
    %c0_9 = arith.constant 0 : index
    %10 = vector.load %arg5[%c0_8, %c0_9] : memref<1x1152xf32, #tpu.memory_space<vmem>>, vector<1x1152xf32>
    %11 = vector.broadcast %10 : vector<1x1152xf32> to vector<32x1152xf32>
    %12 = arith.addf %9, %11 : vector<32x1152xf32>
    %13 = vector.shape_cast %12 : vector<32x1152xf32> to vector<16x2x1152xf32>
    %14 = vector.extract_strided_slice %13 {offsets = [0, 0, 0], sizes = [16, 2, 128], strides = [1, 1, 1]} : vector<16x2x1152xf32> to vector<16x2x128xf32>
    %cst_10 = arith.constant 0.000000e+00 : f32
    %15 = vector.broadcast %cst_10 : f32 to vector<16x2x128xf32>
    %16 = vector.extract_strided_slice %13 {offsets = [0, 0, 128], sizes = [16, 2, 128], strides = [1, 1, 1]} : vector<16x2x1152xf32> to vector<16x2x128xf32>
    %17 = vector.extract_strided_slice %13 {offsets = [0, 0, 640], sizes = [16, 2, 128], strides = [1, 1, 1]} : vector<16x2x1152xf32> to vector<16x2x128xf32>
    "tpu.trace_start"() <{level = 10 : i32, message = "nqc,nkc->nqk"}> : () -> ()
    %cst_11 = arith.constant dense<0.000000e+00> : vector<16x2x2xf32>
    %18 = tpu.matmul %14, %16, %cst_11 {dimension_numbers = #tpu.dot_dimension_numbers<[2], [2], [1], [1], [0, 0, 0, 1, 1, 1], [0], [0]>} : vector<16x2x128xf32>, vector<16x2x128xf32>, vector<16x2x2xf32> -> vector<16x2x2xf32>
    "tpu.trace_stop"() : () -> ()
    %cst_12 = arith.constant dense<0xFF800000> : vector<16x2xf32>
    %19 = vector.multi_reduction <maximumf>, %18, %cst_12 [2] : vector<16x2x2xf32> to vector<16x2xf32>
    %20 = vector.shape_cast %19 : vector<16x2xf32> to vector<16x2x1xf32>
    %21 = vector.broadcast %20 : vector<16x2x1xf32> to vector<16x2x2xf32>
    %22 = arith.subf %18, %21 : vector<16x2x2xf32>
    %23 = math.exp %22 : vector<16x2x2xf32>
    %cst_13 = arith.constant dense<0.000000e+00> : vector<16x2xf32>
    %24 = vector.multi_reduction <add>, %23, %cst_13 [2] : vector<16x2x2xf32> to vector<16x2xf32>
    %25 = vector.shape_cast %24 : vector<16x2xf32> to vector<16x2x1xf32>
    %26 = vector.broadcast %25 : vector<16x2x1xf32> to vector<16x2x2xf32>
    %27 = arith.divf %23, %26 : vector<16x2x2xf32>
    "tpu.trace_start"() <{level = 10 : i32, message = "nqk,nkc->nqc"}> : () -> ()
    %cst_14 = arith.constant dense<0.000000e+00> : vector<16x2x128xf32>
    %28 = tpu.matmul %27, %17, %cst_14 {dimension_numbers = #tpu.dot_dimension_numbers<[2], [1], [1], [2], [0, 0, 0, 1, 1, 2], [0], [0]>} : vector<16x2x2xf32>, vector<16x2x128xf32>, vector<16x2x128xf32> -> vector<16x2x128xf32>
    "tpu.trace_stop"() : () -> ()
    %29 = arith.addf %15, %28 : vector<16x2x128xf32>
    %30 = vector.extract_strided_slice %13 {offsets = [0, 0, 256], sizes = [16, 2, 128], strides = [1, 1, 1]} : vector<16x2x1152xf32> to vector<16x2x128xf32>
    %31 = vector.extract_strided_slice %13 {offsets = [0, 0, 768], sizes = [16, 2, 128], strides = [1, 1, 1]} : vector<16x2x1152xf32> to vector<16x2x128xf32>
    "tpu.trace_start"() <{level = 10 : i32, message = "nqc,nkc->nqk"}> : () -> ()
    %cst_15 = arith.constant dense<0.000000e+00> : vector<16x2x2xf32>
    %32 = tpu.matmul %14, %30, %cst_15 {dimension_numbers = #tpu.dot_dimension_numbers<[2], [2], [1], [1], [0, 0, 0, 1, 1, 1], [0], [0]>} : vector<16x2x128xf32>, vector<16x2x128xf32>, vector<16x2x2xf32> -> vector<16x2x2xf32>
    "tpu.trace_stop"() : () -> ()
    %cst_16 = arith.constant dense<0xFF800000> : vector<16x2xf32>
    %33 = vector.multi_reduction <maximumf>, %32, %cst_16 [2] : vector<16x2x2xf32> to vector<16x2xf32>
    %34 = vector.shape_cast %33 : vector<16x2xf32> to vector<16x2x1xf32>
    %35 = vector.broadcast %34 : vector<16x2x1xf32> to vector<16x2x2xf32>
    %36 = arith.subf %32, %35 : vector<16x2x2xf32>
    %37 = math.exp %36 : vector<16x2x2xf32>
    %cst_17 = arith.constant dense<0.000000e+00> : vector<16x2xf32>
    %38 = vector.multi_reduction <add>, %37, %cst_17 [2] : vector<16x2x2xf32> to vector<16x2xf32>
    %39 = vector.shape_cast %38 : vector<16x2xf32> to vector<16x2x1xf32>
    %40 = vector.broadcast %39 : vector<16x2x1xf32> to vector<16x2x2xf32>
    %41 = arith.divf %37, %40 : vector<16x2x2xf32>
    "tpu.trace_start"() <{level = 10 : i32, message = "nqk,nkc->nqc"}> : () -> ()
    %cst_18 = arith.constant dense<0.000000e+00> : vector<16x2x128xf32>
    %42 = tpu.matmul %41, %31, %cst_18 {dimension_numbers = #tpu.dot_dimension_numbers<[2], [1], [1], [2], [0, 0, 0, 1, 1, 2], [0], [0]>} : vector<16x2x2xf32>, vector<16x2x128xf32>, vector<16x2x128xf32> -> vector<16x2x128xf32>
    "tpu.trace_stop"() : () -> ()
    %43 = arith.addf %29, %42 : vector<16x2x128xf32>
    %44 = vector.extract_strided_slice %13 {offsets = [0, 0, 384], sizes = [16, 2, 128], strides = [1, 1, 1]} : vector<16x2x1152xf32> to vector<16x2x128xf32>
    %45 = vector.extract_strided_slice %13 {offsets = [0, 0, 896], sizes = [16, 2, 128], strides = [1, 1, 1]} : vector<16x2x1152xf32> to vector<16x2x128xf32>
    "tpu.trace_start"() <{level = 10 : i32, message = "nqc,nkc->nqk"}> : () -> ()
    %cst_19 = arith.constant dense<0.000000e+00> : vector<16x2x2xf32>
    %46 = tpu.matmul %14, %44, %cst_19 {dimension_numbers = #tpu.dot_dimension_numbers<[2], [2], [1], [1], [0, 0, 0, 1, 1, 1], [0], [0]>} : vector<16x2x128xf32>, vector<16x2x128xf32>, vector<16x2x2xf32> -> vector<16x2x2xf32>
    "tpu.trace_stop"() : () -> ()
    %cst_20 = arith.constant dense<0xFF800000> : vector<16x2xf32>
    %47 = vector.multi_reduction <maximumf>, %46, %cst_20 [2] : vector<16x2x2xf32> to vector<16x2xf32>
    %48 = vector.shape_cast %47 : vector<16x2xf32> to vector<16x2x1xf32>
    %49 = vector.broadcast %48 : vector<16x2x1xf32> to vector<16x2x2xf32>
    %50 = arith.subf %46, %49 : vector<16x2x2xf32>
    %51 = math.exp %50 : vector<16x2x2xf32>
    %cst_21 = arith.constant dense<0.000000e+00> : vector<16x2xf32>
    %52 = vector.multi_reduction <add>, %51, %cst_21 [2] : vector<16x2x2xf32> to vector<16x2xf32>
    %53 = vector.shape_cast %52 : vector<16x2xf32> to vector<16x2x1xf32>
    %54 = vector.broadcast %53 : vector<16x2x1xf32> to vector<16x2x2xf32>
    %55 = arith.divf %51, %54 : vector<16x2x2xf32>
    "tpu.trace_start"() <{level = 10 : i32, message = "nqk,nkc->nqc"}> : () -> ()
    %cst_22 = arith.constant dense<0.000000e+00> : vector<16x2x128xf32>
    %56 = tpu.matmul %55, %45, %cst_22 {dimension_numbers = #tpu.dot_dimension_numbers<[2], [1], [1], [2], [0, 0, 0, 1, 1, 2], [0], [0]>} : vector<16x2x2xf32>, vector<16x2x128xf32>, vector<16x2x128xf32> -> vector<16x2x128xf32>
    "tpu.trace_stop"() : () -> ()
    %57 = arith.addf %43, %56 : vector<16x2x128xf32>
    %58 = vector.extract_strided_slice %13 {offsets = [0, 0, 512], sizes = [16, 2, 128], strides = [1, 1, 1]} : vector<16x2x1152xf32> to vector<16x2x128xf32>
    %59 = vector.extract_strided_slice %13 {offsets = [0, 0, 1024], sizes = [16, 2, 128], strides = [1, 1, 1]} : vector<16x2x1152xf32> to vector<16x2x128xf32>
    "tpu.trace_start"() <{level = 10 : i32, message = "nqc,nkc->nqk"}> : () -> ()
    %cst_23 = arith.constant dense<0.000000e+00> : vector<16x2x2xf32>
    %60 = tpu.matmul %14, %58, %cst_23 {dimension_numbers = #tpu.dot_dimension_numbers<[2], [2], [1], [1], [0, 0, 0, 1, 1, 1], [0], [0]>} : vector<16x2x128xf32>, vector<16x2x128xf32>, vector<16x2x2xf32> -> vector<16x2x2xf32>
    "tpu.trace_stop"() : () -> ()
    %cst_24 = arith.constant dense<0xFF800000> : vector<16x2xf32>
    %61 = vector.multi_reduction <maximumf>, %60, %cst_24 [2] : vector<16x2x2xf32> to vector<16x2xf32>
    %62 = vector.shape_cast %61 : vector<16x2xf32> to vector<16x2x1xf32>
    %63 = vector.broadcast %62 : vector<16x2x1xf32> to vector<16x2x2xf32>
    %64 = arith.subf %60, %63 : vector<16x2x2xf32>
    %65 = math.exp %64 : vector<16x2x2xf32>
    %cst_25 = arith.constant dense<0.000000e+00> : vector<16x2xf32>
    %66 = vector.multi_reduction <add>, %65, %cst_25 [2] : vector<16x2x2xf32> to vector<16x2xf32>
    %67 = vector.shape_cast %66 : vector<16x2xf32> to vector<16x2x1xf32>
    %68 = vector.broadcast %67 : vector<16x2x1xf32> to vector<16x2x2xf32>
    %69 = arith.divf %65, %68 : vector<16x2x2xf32>
    "tpu.trace_start"() <{level = 10 : i32, message = "nqk,nkc->nqc"}> : () -> ()
    %cst_26 = arith.constant dense<0.000000e+00> : vector<16x2x128xf32>
    %70 = tpu.matmul %69, %59, %cst_26 {dimension_numbers = #tpu.dot_dimension_numbers<[2], [1], [1], [2], [0, 0, 0, 1, 1, 2], [0], [0]>} : vector<16x2x2xf32>, vector<16x2x128xf32>, vector<16x2x128xf32> -> vector<16x2x128xf32>
    "tpu.trace_stop"() : () -> ()
    %71 = arith.addf %57, %70 : vector<16x2x128xf32>
    %72 = vector.shape_cast %71 : vector<16x2x128xf32> to vector<32x128xf32>
    %73 = arith.truncf %72 : vector<32x128xf32> to vector<32x128xbf16>
    %c0_27 = arith.constant 0 : index
    %c0_28 = arith.constant 0 : index
    %74 = vector.load %arg6[%c0_27, %c0_28] : memref<128x32xbf16, #tpu.memory_space<vmem>>, vector<128x32xbf16>
    %cst_29 = arith.constant dense<0.000000e+00> : vector<32x32xf32>
    %75 = tpu.matmul %73, %74, %cst_29 {dimension_numbers = #tpu.dot_dimension_numbers<[1], [0], [0], [1], [0, 0, 1, 1], [], []>} : vector<32x128xbf16>, vector<128x32xbf16>, vector<32x32xf32> -> vector<32x32xf32>
    %c0_30 = arith.constant 0 : index
    %c0_31 = arith.constant 0 : index
    %76 = vector.load %arg7[%c0_30, %c0_31] : memref<1x32xf32, #tpu.memory_space<vmem>>, vector<1x32xf32>
    %77 = vector.broadcast %76 : vector<1x32xf32> to vector<32x32xf32>
    %78 = arith.addf %75, %77 : vector<32x32xf32>
    %79 = arith.addf %6, %78 : vector<32x32xf32>
    %c0_32 = arith.constant 0 : index
    %c0_33 = arith.constant 0 : index
    %80 = vector.load %arg8[%c0_32, %c0_33] : memref<1x32xf32, #tpu.memory_space<vmem>>, vector<1x32xf32>
    %c0_34 = arith.constant 0 : index
    %c0_35 = arith.constant 0 : index
    %81 = vector.load %arg9[%c0_34, %c0_35] : memref<1x32xf32, #tpu.memory_space<vmem>>, vector<1x32xf32>
    %cst_36 = arith.constant dense<0.000000e+00> : vector<32xf32>
    %82 = vector.multi_reduction <add>, %79, %cst_36 [1] : vector<32x32xf32> to vector<32xf32>
    %83 = vector.shape_cast %82 : vector<32xf32> to vector<32x1xf32>
    %cst_37 = arith.constant 3.200000e+01 : f32
    %84 = vector.broadcast %cst_37 : f32 to vector<32x1xf32>
    %85 = arith.divf %83, %84 : vector<32x1xf32>
    %86 = vector.broadcast %85 : vector<32x1xf32> to vector<32x32xf32>
    %87 = arith.subf %79, %86 : vector<32x32xf32>
    %88 = arith.mulf %87, %87 : vector<32x32xf32>
    %cst_38 = arith.constant dense<0.000000e+00> : vector<32xf32>
    %89 = vector.multi_reduction <add>, %88, %cst_38 [1] : vector<32x32xf32> to vector<32xf32>
    %90 = vector.shape_cast %89 : vector<32xf32> to vector<32x1xf32>
    %cst_39 = arith.constant 3.200000e+01 : f32
    %91 = vector.broadcast %cst_39 : f32 to vector<32x1xf32>
    %92 = arith.divf %90, %91 : vector<32x1xf32>
    %cst_40 = arith.constant 9.99999974E-6 : f32
    %93 = vector.broadcast %cst_40 : f32 to vector<32x1xf32>
    %94 = arith.addf %92, %93 : vector<32x1xf32>
    %95 = math.rsqrt %94 : vector<32x1xf32>
    %96 = vector.broadcast %95 : vector<32x1xf32> to vector<32x32xf32>
    %97 = arith.mulf %87, %96 : vector<32x32xf32>
    %98 = vector.broadcast %80 : vector<1x32xf32> to vector<32x32xf32>
    %99 = arith.mulf %97, %98 : vector<32x32xf32>
    %100 = vector.broadcast %81 : vector<1x32xf32> to vector<32x32xf32>
    %101 = arith.addf %99, %100 : vector<32x32xf32>
    %102 = arith.truncf %101 : vector<32x32xf32> to vector<32x32xbf16>
    %c0_41 = arith.constant 0 : index
    %c0_42 = arith.constant 0 : index
    %103 = vector.load %arg10[%c0_41, %c0_42] : memref<32x64xbf16, #tpu.memory_space<vmem>>, vector<32x64xbf16>
    %cst_43 = arith.constant dense<0.000000e+00> : vector<32x64xf32>
    %104 = tpu.matmul %102, %103, %cst_43 {dimension_numbers = #tpu.dot_dimension_numbers<[1], [0], [0], [1], [0, 0, 1, 1], [], []>} : vector<32x32xbf16>, vector<32x64xbf16>, vector<32x64xf32> -> vector<32x64xf32>
    %c0_44 = arith.constant 0 : index
    %c0_45 = arith.constant 0 : index
    %105 = vector.load %arg11[%c0_44, %c0_45] : memref<1x64xf32, #tpu.memory_space<vmem>>, vector<1x64xf32>
    %106 = vector.broadcast %105 : vector<1x64xf32> to vector<32x64xf32>
    %107 = arith.addf %104, %106 : vector<32x64xf32>
    %cst_46 = arith.constant 0.000000e+00 : f32
    %108 = vector.broadcast %cst_46 : f32 to vector<32x64xf32>
    %109 = arith.maximumf %107, %108 : vector<32x64xf32>
    %110 = arith.truncf %109 : vector<32x64xf32> to vector<32x64xbf16>
    %c0_47 = arith.constant 0 : index
    %c0_48 = arith.constant 0 : index
    %111 = vector.load %arg12[%c0_47, %c0_48] : memref<64x32xbf16, #tpu.memory_space<vmem>>, vector<64x32xbf16>
    %cst_49 = arith.constant dense<0.000000e+00> : vector<32x32xf32>
    %112 = tpu.matmul %110, %111, %cst_49 {dimension_numbers = #tpu.dot_dimension_numbers<[1], [0], [0], [1], [0, 0, 1, 1], [], []>} : vector<32x64xbf16>, vector<64x32xbf16>, vector<32x32xf32> -> vector<32x32xf32>
    %c0_50 = arith.constant 0 : index
    %c0_51 = arith.constant 0 : index
    %113 = vector.load %arg13[%c0_50, %c0_51] : memref<1x32xf32, #tpu.memory_space<vmem>>, vector<1x32xf32>
    %114 = vector.broadcast %113 : vector<1x32xf32> to vector<32x32xf32>
    %115 = arith.addf %112, %114 : vector<32x32xf32>
    %116 = arith.addf %101, %115 : vector<32x32xf32>
    %c0_52 = arith.constant 0 : index
    %c0_53 = arith.constant 0 : index
    %117 = vector.load %arg14[%c0_52, %c0_53] : memref<1x32xf32, #tpu.memory_space<vmem>>, vector<1x32xf32>
    %c0_54 = arith.constant 0 : index
    %c0_55 = arith.constant 0 : index
    %118 = vector.load %arg15[%c0_54, %c0_55] : memref<1x32xf32, #tpu.memory_space<vmem>>, vector<1x32xf32>
    %cst_56 = arith.constant dense<0.000000e+00> : vector<32xf32>
    %119 = vector.multi_reduction <add>, %116, %cst_56 [1] : vector<32x32xf32> to vector<32xf32>
    %120 = vector.shape_cast %119 : vector<32xf32> to vector<32x1xf32>
    %cst_57 = arith.constant 3.200000e+01 : f32
    %121 = vector.broadcast %cst_57 : f32 to vector<32x1xf32>
    %122 = arith.divf %120, %121 : vector<32x1xf32>
    %123 = vector.broadcast %122 : vector<32x1xf32> to vector<32x32xf32>
    %124 = arith.subf %116, %123 : vector<32x32xf32>
    %125 = arith.mulf %124, %124 : vector<32x32xf32>
    %cst_58 = arith.constant dense<0.000000e+00> : vector<32xf32>
    %126 = vector.multi_reduction <add>, %125, %cst_58 [1] : vector<32x32xf32> to vector<32xf32>
    %127 = vector.shape_cast %126 : vector<32xf32> to vector<32x1xf32>
    %cst_59 = arith.constant 3.200000e+01 : f32
    %128 = vector.broadcast %cst_59 : f32 to vector<32x1xf32>
    %129 = arith.divf %127, %128 : vector<32x1xf32>
    %cst_60 = arith.constant 9.99999974E-6 : f32
    %130 = vector.broadcast %cst_60 : f32 to vector<32x1xf32>
    %131 = arith.addf %129, %130 : vector<32x1xf32>
    %132 = math.rsqrt %131 : vector<32x1xf32>
    %133 = vector.broadcast %132 : vector<32x1xf32> to vector<32x32xf32>
    %134 = arith.mulf %124, %133 : vector<32x32xf32>
    %135 = vector.broadcast %117 : vector<1x32xf32> to vector<32x32xf32>
    %136 = arith.mulf %134, %135 : vector<32x32xf32>
    %137 = vector.broadcast %118 : vector<1x32xf32> to vector<32x32xf32>
    %138 = arith.addf %136, %137 : vector<32x32xf32>
    %139 = arith.truncf %138 : vector<32x32xf32> to vector<32x32xbf16>
    %c0_61 = arith.constant 0 : index
    %c0_62 = arith.constant 0 : index
    %140 = vector.load %arg16[%c0_61, %c0_62] : memref<32x640xbf16, #tpu.memory_space<vmem>>, vector<32x640xbf16>
    %cst_63 = arith.constant dense<0.000000e+00> : vector<32x640xf32>
    %141 = tpu.matmul %139, %140, %cst_63 {dimension_numbers = #tpu.dot_dimension_numbers<[1], [0], [0], [1], [0, 0, 1, 1], [], []>} : vector<32x32xbf16>, vector<32x640xbf16>, vector<32x640xf32> -> vector<32x640xf32>
    %c0_64 = arith.constant 0 : index
    %c0_65 = arith.constant 0 : index
    %142 = vector.load %arg17[%c0_64, %c0_65] : memref<1x640xf32, #tpu.memory_space<vmem>>, vector<1x640xf32>
    %143 = vector.broadcast %142 : vector<1x640xf32> to vector<32x640xf32>
    %144 = arith.addf %141, %143 : vector<32x640xf32>
    %145 = vector.extract_strided_slice %144 {offsets = [0, 512], sizes = [32, 128], strides = [1, 1]} : vector<32x640xf32> to vector<32x128xf32>
    %cst_66 = arith.constant dense<0xFF800000> : vector<32xf32>
    %146 = vector.multi_reduction <maximumf>, %145, %cst_66 [1] : vector<32x128xf32> to vector<32xf32>
    %147 = vector.shape_cast %146 : vector<32xf32> to vector<32x1xf32>
    %148 = vector.broadcast %147 : vector<32x1xf32> to vector<32x128xf32>
    %149 = arith.subf %145, %148 : vector<32x128xf32>
    %150 = math.exp %149 : vector<32x128xf32>
    %cst_67 = arith.constant dense<0.000000e+00> : vector<32xf32>
    %151 = vector.multi_reduction <add>, %150, %cst_67 [1] : vector<32x128xf32> to vector<32xf32>
    %152 = vector.shape_cast %151 : vector<32xf32> to vector<32x1xf32>
    %153 = vector.broadcast %152 : vector<32x1xf32> to vector<32x128xf32>
    %154 = arith.divf %150, %153 : vector<32x128xf32>
    %cst_68 = arith.constant 0.000000e+00 : f32
    %155 = vector.broadcast %cst_68 : f32 to vector<32x128xf32>
    %156 = vector.extract_strided_slice %154 {offsets = [0, 0], sizes = [32, 1], strides = [1, 1]} : vector<32x128xf32> to vector<32x1xf32>
    %157 = vector.extract_strided_slice %144 {offsets = [0, 0], sizes = [32, 128], strides = [1, 1]} : vector<32x640xf32> to vector<32x128xf32>
    %158 = vector.broadcast %156 : vector<32x1xf32> to vector<32x128xf32>
    %159 = arith.mulf %158, %157 : vector<32x128xf32>
    %160 = arith.addf %155, %159 : vector<32x128xf32>
    %161 = vector.extract_strided_slice %154 {offsets = [0, 1], sizes = [32, 1], strides = [1, 1]} : vector<32x128xf32> to vector<32x1xf32>
    %162 = vector.extract_strided_slice %144 {offsets = [0, 128], sizes = [32, 128], strides = [1, 1]} : vector<32x640xf32> to vector<32x128xf32>
    %163 = vector.broadcast %161 : vector<32x1xf32> to vector<32x128xf32>
    %164 = arith.mulf %163, %162 : vector<32x128xf32>
    %165 = arith.addf %160, %164 : vector<32x128xf32>
    %166 = vector.extract_strided_slice %154 {offsets = [0, 2], sizes = [32, 1], strides = [1, 1]} : vector<32x128xf32> to vector<32x1xf32>
    %167 = vector.extract_strided_slice %144 {offsets = [0, 256], sizes = [32, 128], strides = [1, 1]} : vector<32x640xf32> to vector<32x128xf32>
    %168 = vector.broadcast %166 : vector<32x1xf32> to vector<32x128xf32>
    %169 = arith.mulf %168, %167 : vector<32x128xf32>
    %170 = arith.addf %165, %169 : vector<32x128xf32>
    %171 = vector.extract_strided_slice %154 {offsets = [0, 3], sizes = [32, 1], strides = [1, 1]} : vector<32x128xf32> to vector<32x1xf32>
    %172 = vector.extract_strided_slice %144 {offsets = [0, 384], sizes = [32, 128], strides = [1, 1]} : vector<32x640xf32> to vector<32x128xf32>
    %173 = vector.broadcast %171 : vector<32x1xf32> to vector<32x128xf32>
    %174 = arith.mulf %173, %172 : vector<32x128xf32>
    %175 = arith.addf %170, %174 : vector<32x128xf32>
    %176 = vector.shape_cast %175 : vector<32x128xf32> to vector<16x2x128xf32>
    %cst_69 = arith.constant dense<0.000000e+00> : vector<2x128xf32>
    %177 = vector.multi_reduction <add>, %176, %cst_69 [0] : vector<16x2x128xf32> to vector<2x128xf32>
    %cst_70 = arith.constant 1.600000e+01 : f32
    %178 = vector.broadcast %cst_70 : f32 to vector<2x128xf32>
    %179 = arith.divf %177, %178 : vector<2x128xf32>
    %180 = arith.truncf %179 : vector<2x128xf32> to vector<2x128xbf16>
    %c0_71 = arith.constant 0 : index
    %c0_72 = arith.constant 0 : index
    %181 = vector.load %arg18[%c0_71, %c0_72] : memref<128x128xbf16, #tpu.memory_space<vmem>>, vector<128x128xbf16>
    %cst_73 = arith.constant dense<0.000000e+00> : vector<2x128xf32>
    %182 = tpu.matmul %180, %181, %cst_73 {dimension_numbers = #tpu.dot_dimension_numbers<[1], [0], [0], [1], [0, 0, 1, 1], [], []>} : vector<2x128xbf16>, vector<128x128xbf16>, vector<2x128xf32> -> vector<2x128xf32>
    %c0_74 = arith.constant 0 : index
    %c0_75 = arith.constant 0 : index
    %183 = vector.load %arg19[%c0_74, %c0_75] : memref<1x128xf32, #tpu.memory_space<vmem>>, vector<1x128xf32>
    %184 = vector.broadcast %183 : vector<1x128xf32> to vector<2x128xf32>
    %185 = arith.addf %182, %184 : vector<2x128xf32>
    %cst_76 = arith.constant dense<0.000000e+00> : vector<128xf32>
    %186 = vector.multi_reduction <add>, %154, %cst_76 [0] : vector<32x128xf32> to vector<128xf32>
    %187 = vector.shape_cast %186 : vector<128xf32> to vector<1x128xf32>
    %cst_77 = arith.constant 3.200000e+01 : f32
    %188 = vector.broadcast %cst_77 : f32 to vector<1x128xf32>
    %189 = arith.divf %187, %188 : vector<1x128xf32>
    %190 = arith.mulf %189, %189 : vector<1x128xf32>
    %cst_78 = arith.constant dense<0.000000e+00> : vector<1xf32>
    %191 = vector.multi_reduction <add>, %190, %cst_78 [1] : vector<1x128xf32> to vector<1xf32>
    %192 = vector.shape_cast %191 : vector<1xf32> to vector<1x1xf32>
    %cst_79 = arith.constant 4.000000e+00 : f32
    %193 = vector.broadcast %cst_79 : f32 to vector<1x1xf32>
    %194 = arith.mulf %193, %192 : vector<1x1xf32>
    %195 = tpu.iota {dimensions = array<i32: 1>} : vector<2x128xi32>
    %c10_i32 = arith.constant 10 : i32
    %196 = vector.broadcast %c10_i32 : i32 to vector<2x128xi32>
    %197 = arith.cmpi eq, %195, %196 : vector<2x128xi32>
    %cst_80 = arith.constant 0.000000e+00 : f32
    %198 = vector.shape_cast %194 : vector<1x1xf32> to vector<1x1xf32>
    %199 = vector.broadcast %198 : vector<1x1xf32> to vector<2x128xf32>
    %200 = vector.broadcast %cst_80 : f32 to vector<2x128xf32>
    %201 = arith.select %197, %199, %200 : vector<2x128xi1>, vector<2x128xf32>
    %202 = arith.addf %185, %201 : vector<2x128xf32>
    %c0_81 = arith.constant 0 : index
    %c0_82 = arith.constant 0 : index
    %203 = vector.load %arg20[%c0_81, %c0_82] : memref<2x128xf32, #tpu.memory_space<vmem>>, vector<2x128xf32>
    tpu.vector_store %arg20[%c0_81, %c0_82], %202 {strides = array<i32>} : memref<2x128xf32, #tpu.memory_space<vmem>>, vector<2x128xf32>,
    return
  }
  func.func @transform_0(%arg0: i32) -> (i32, i32) {
    %c0_i32 = arith.constant 0 : i32
    %c0_i32_0 = arith.constant 0 : i32
    %c0_i32_1 = arith.constant 0 : i32
    return %c0_i32, %c0_i32_0 : i32, i32
  }
  func.func @transform_1(%arg0: i32) -> (i32, i32) {
    %c0_i32 = arith.constant 0 : i32
    %c0_i32_0 = arith.constant 0 : i32
    %c0_i32_1 = arith.constant 0 : i32
    return %c0_i32, %c0_i32_0 : i32, i32
  }
  func.func @transform_2(%arg0: i32) -> (i32, i32) {
    %c0_i32 = arith.constant 0 : i32
    %c0_i32_0 = arith.constant 0 : i32
    %c0_i32_1 = arith.constant 0 : i32
    return %c0_i32, %c0_i32_0 : i32, i32
  }
  func.func @transform_3(%arg0: i32) -> (i32, i32) {
    %c0_i32 = arith.constant 0 : i32
    %c0_i32_0 = arith.constant 0 : i32
    %c0_i32_1 = arith.constant 0 : i32
    return %c0_i32, %c0_i32_0 : i32, i32
  }
  func.func @transform_4(%arg0: i32) -> (i32, i32) {
    %c0_i32 = arith.constant 0 : i32
    %c0_i32_0 = arith.constant 0 : i32
    %c0_i32_1 = arith.constant 0 : i32
    return %c0_i32, %c0_i32_0 : i32, i32
  }
  func.func @transform_5(%arg0: i32) -> (i32, i32) {
    %c0_i32 = arith.constant 0 : i32
    %c0_i32_0 = arith.constant 0 : i32
    %c0_i32_1 = arith.constant 0 : i32
    return %c0_i32, %c0_i32_0 : i32, i32
  }
  func.func @transform_6(%arg0: i32) -> (i32, i32) {
    %c0_i32 = arith.constant 0 : i32
    %c0_i32_0 = arith.constant 0 : i32
    %c0_i32_1 = arith.constant 0 : i32
    return %c0_i32, %c0_i32_0 : i32, i32
  }
  func.func @transform_7(%arg0: i32) -> (i32, i32) {
    %c0_i32 = arith.constant 0 : i32
    %c0_i32_0 = arith.constant 0 : i32
    %c0_i32_1 = arith.constant 0 : i32
    return %c0_i32, %c0_i32_0 : i32, i32
  }
  func.func @transform_8(%arg0: i32) -> (i32, i32) {
    %c0_i32 = arith.constant 0 : i32
    %c0_i32_0 = arith.constant 0 : i32
    %c0_i32_1 = arith.constant 0 : i32
    return %c0_i32, %c0_i32_0 : i32, i32
  }
  func.func @transform_9(%arg0: i32) -> (i32, i32) {
    %c0_i32 = arith.constant 0 : i32
    %c0_i32_0 = arith.constant 0 : i32
    %c0_i32_1 = arith.constant 0 : i32
    return %c0_i32, %c0_i32_0 : i32, i32
  }
  func.func @transform_10(%arg0: i32) -> (i32, i32) {
    %c0_i32 = arith.constant 0 : i32
    %c0_i32_0 = arith.constant 0 : i32
    %c0_i32_1 = arith.constant 0 : i32
    return %c0_i32, %c0_i32_0 : i32, i32
  }
  func.func @transform_11(%arg0: i32) -> (i32, i32) {
    %c0_i32 = arith.constant 0 : i32
    %c0_i32_0 = arith.constant 0 : i32
    %c0_i32_1 = arith.constant 0 : i32
    return %c0_i32, %c0_i32_0 : i32, i32
  }
  func.func @transform_12(%arg0: i32) -> (i32, i32) {
    %c0_i32 = arith.constant 0 : i32
    %c0_i32_0 = arith.constant 0 : i32
    %c0_i32_1 = arith.constant 0 : i32
    return %c0_i32, %c0_i32_0 : i32, i32
  }
  func.func @transform_13(%arg0: i32) -> (i32, i32) {
    %c0_i32 = arith.constant 0 : i32
    %c0_i32_0 = arith.constant 0 : i32
    %c0_i32_1 = arith.constant 0 : i32
    return %c0_i32, %c0_i32_0 : i32, i32
  }
  func.func @transform_14(%arg0: i32) -> (i32, i32) {
    %c0_i32 = arith.constant 0 : i32
    %c0_i32_0 = arith.constant 0 : i32
    %c0_i32_1 = arith.constant 0 : i32
    return %c0_i32, %c0_i32_0 : i32, i32
  }
  func.func @transform_15(%arg0: i32) -> (i32, i32) {
    %c0_i32 = arith.constant 0 : i32
    %c0_i32_0 = arith.constant 0 : i32
    %c0_i32_1 = arith.constant 0 : i32
    return %c0_i32, %c0_i32_0 : i32, i32
  }
  func.func @transform_16(%arg0: i32) -> (i32, i32) {
    %c0_i32 = arith.constant 0 : i32
    %c0_i32_0 = arith.constant 0 : i32
    %c0_i32_1 = arith.constant 0 : i32
    return %c0_i32, %c0_i32_0 : i32, i32
  }
  func.func @transform_17(%arg0: i32) -> (i32, i32) {
    %c0_i32 = arith.constant 0 : i32
    %c0_i32_0 = arith.constant 0 : i32
    %c0_i32_1 = arith.constant 0 : i32
    return %c0_i32, %c0_i32_0 : i32, i32
  }
  func.func @transform_18(%arg0: i32) -> (i32, i32) {
    %c0_i32 = arith.constant 0 : i32
    %c0_i32_0 = arith.constant 0 : i32
    %c0_i32_1 = arith.constant 0 : i32
    return %c0_i32, %c0_i32_0 : i32, i32
  }
  func.func @transform_19(%arg0: i32) -> (i32, i32) {
    %c0_i32 = arith.constant 0 : i32
    %c0_i32_0 = arith.constant 0 : i32
    %c0_i32_1 = arith.constant 0 : i32
    return %c0_i32, %c0_i32_0 : i32, i32
  }
}

</mosaic_0001>

<bundles_post_ra>
// kernel: tpu_custom_call.1
= control target key start
LH: loop header
LB: loop body
LE: loop exit
PB: predicated region body
PF: predicated region fallthrough
CT: control target
= control target key end

     0   :  { %s10386_s0 = inlined_call_operand.vmem [shape: f32[32,48], index: 0, kind: input, shape index: {}]   ;;  %s10387_s1 = inlined_call_operand.vmem [shape: bf16[48,32], index: 1, kind: input, shape index: {}]   ;;  %s10388_s2 = inlined_call_operand.hbm [shape: f32[1,32], index: 2, kind: input, shape index: {}]   ;;  %s10389_s3 = inlined_call_operand.hbm [shape: bf16[32,1152], index: 3, kind: input, shape index: {}]   ;;  %s10390_s4 = inlined_call_operand.vmem [shape: f32[1,1152], index: 4, kind: input, shape index: {}]   ;;  %s10391_s5 = inlined_call_operand.vmem [shape: bf16[128,32], index: 5, kind: input, shape index: {}]   ;;  %s10392_s6 = inlined_call_operand.vmem [shape: f32[1,32], index: 6, kind: input, shape index: {}]   ;;  %s10393_s7 = inlined_call_operand.hbm [shape: f32[1,32], index: 7, kind: input, shape index: {}]   ;;  %s10394_s8 = inlined_call_operand.hbm [shape: f32[1,32], index: 8, kind: input, shape index: {}]   ;;  %s10395_s9 = inlined_call_operand.vmem [shape: bf16[32,64], index: 9, kind: input, shape index: {}]   ;;  %s10396_s10 = inlined_call_operand.vmem [shape: f32[1,64], index: 10, kind: input, shape index: {}]   ;;  %s10397_s11 = inlined_call_operand.vmem [shape: bf16[64,32], index: 11, kind: input, shape index: {}]   ;;  %s10398_s12 = inlined_call_operand.vmem [shape: f32[1,32], index: 12, kind: input, shape index: {}]   ;;  %s10399_s13 = inlined_call_operand.vmem [shape: f32[1,32], index: 13, kind: input, shape index: {}]   ;;  %s10400_s14 = inlined_call_operand.vmem [shape: f32[1,32], index: 14, kind: input, shape index: {}]   ;;  %s10401_s15 = inlined_call_operand.vmem [shape: bf16[32,640], index: 15, kind: input, shape index: {}]   ;;  %s10402_s16 = inlined_call_operand.vmem [shape: f32[1,640], index: 16, kind: input, shape index: {}]   ;;  %s10403_s17 = inlined_call_operand.hbm [shape: bf16[128,128], index: 17, kind: input, shape index: {}]   ;;  %s10404_s18 = inlined_call_operand.vmem [shape: f32[1,128], index: 18, kind: input, shape index: {}]   ;;  %s10405_s19 = inlined_call_operand.hbm [shape: f32[2,128], index: 19, kind: output, shape index: {}]  }
   0x1   :  { %10485 = sst [smem:[#allocation63_spill]] %s10386_s0 }
   0x2   :  { %10486 = sst [smem:[#allocation64_spill]] %s10387_s1 }
   0x3   :  { %10487 = sst [smem:[#allocation65_spill]] %s10388_s2 }
   0x4   :  { %10488 = sst [smem:[#allocation66_spill]] %s10389_s3 }
   0x5   :  { %10489 = sst [smem:[#allocation67_spill]] %s10404_s18 }
   0x6   :  { %10490 = sst [smem:[#allocation68_spill]] %s10405_s19 }
   0x7   :  { %24 = vsyncpa [#allocation3], 0 }
   0x8   :  { %25 = vsyncpa [#allocation6], 0 }
   0x9   :  { %26 = vsyncpa [#allocation9], 0  ;;  %s10491_s20 = sld [smem:[#allocation66_spill]] }
   0xf   :  { %s47_s21 = sshll.u32 %s10491_s20, 4  ;;  %s48_s21 = int_to_ptr.hbm [resolvable:$true] %s47_s21 }
  0x10   :  { %27 = vsyncpa [#allocation4], 0  ;;  %s7277_s1 = smov [#allocation5]   ;;  %s78_s24 = sshll.u32 %s10394_s8, 4  ;;  %s79_s24 = int_to_ptr.hbm [resolvable:$true] %s78_s24 }
  0x11   :  { %s49_s22 = sshll.u32 %s7277_s1, 4  ;;  %s7278_s25 = smov 576   ;;  %s50_s22 = int_to_ptr.vmem [resolvable:$true] %s49_s22 }
  0x12   :  { %s7279_s3 = smov 36   ;;  %s7280_s26 = smov [#allocation8]  }
  0x13   :  { %55 = dma.hbm_to_vmem [thread:$0]  %s48_s21, 2304, %s50_s22, [#allocation6], %s7278_s25, %s7278_s25, %s7279_s3  }
  0x14   :  { %s80_s27 = sshll.u32 %s7280_s26, 4  ;;  %s10492_s19 = sld [smem:[#allocation65_spill]]  ;;  %s81_s27 = int_to_ptr.vmem [resolvable:$true] %s80_s27 }
  0x15   :  { %83 = dma.hbm_to_vmem [thread:$0]  %s79_s24, 16, %s81_s27, [#allocation9]  }
  0x16   :  { %s67_s1 = sshll.u32 %s10393_s7, 4  ;;  %s7281_s18 = smov [#allocation2]   ;;  %s68_s1 = int_to_ptr.hbm [resolvable:$true] %s67_s1 }
  0x17   :  { %s39_s2 = sshll.u32 %s7281_s18, 4  ;;  %s7282_s8 = smov [#allocation7]   ;;  %s40_s2 = int_to_ptr.vmem [resolvable:$true] %s39_s2 }
  0x18   :  { %s69_s21 = sshll.u32 %s7282_s8, 4  ;;  %s104_s25 = sshll.u32 %s10403_s17, 4  ;;  %s70_s21 = int_to_ptr.vmem [resolvable:$true] %s69_s21  ;;  %s105_s25 = int_to_ptr.hbm [resolvable:$true] %s104_s25 }
  0x19   :  { %72 = dma.hbm_to_vmem [thread:$0]  %s68_s1, 16, %s70_s21, [#allocation6]  }
  0x1a   :  { %s37_s0 = sshll.u32 %s10492_s19, 4  ;;  %s7283_s19 = smov [#allocation10]   ;;  %s38_s0 = int_to_ptr.hbm [resolvable:$true] %s37_s0 }
  0x1b   :  { %42 = dma.hbm_to_vmem [thread:$0]  %s38_s0, 16, %s40_s2, [#allocation3]  }
  0x1c   :  { %s106_s24 = sshll.u32 %s7283_s19, 4  ;;  %s7284_s3 = smov 64   ;;  %s107_s24 = int_to_ptr.vmem [resolvable:$true] %s106_s24 }
  0x1d   :  { %s7285_s26 = smov 4  }
  0x1e   :  { %112 = dma.hbm_to_vmem [thread:$0]  %s105_s25, 1024, %s107_s24, [#allocation9], %s7284_s3, %s7284_s3, %s7285_s26  }
  0x1f   :  { %7269 = dma.done.wait [#allocation3], 16  }
  0x20   :  { %7270 = vsyncadd [#allocation3], 4294967280 }
  0x21   :  { %7271 = dma.done.wait [#allocation6], 2320  }
  0x22   :  { %7272 = vsyncadd [#allocation6], 4294964976 }
  0x23   :  { %7273 = dma.done.wait [#allocation9], 1040  }
  0x24   :  { %7274 = vsyncadd [#allocation9], 4294966256  ;;  %s10493_s27 = sld [smem:[#allocation64_spill]]  ;;  %vm170_vm0 = vcmask 392192   ;;  %v6415_v9 = vld [vmem:[#allocation5 + $0x48] sm:$0xf] }
  0x25   :  { %s10494_s1 = sld [smem:[#allocation63_spill]]  ;;  %v6753_v10 = vld [vmem:[#allocation5 + $0x68] sm:$0xf0]  ;;  %v6417_v13 = vld [vmem:[#allocation5 + $0x6c] sm:$0xf0]  ;;  %vm332_vm1 = vcmask 261120  }
  0x26   :  { %v6749_v11 = vld [vmem:[#allocation5 + $0x4c] sm:$0xf]  ;;  %v6416_v12 = vor.u32 %v6753_v10, %v6415_v9  ;;  %v6423_v14 = vld [vmem:[#allocation5 + $0x50] sm:$0xf]  ;;  %v6754_v15 = vld [vmem:[#allocation5 + $0x70] sm:$0xf0] }
  0x27   :  { %v6420_v16 = vor.u32 %v6749_v11, %v6417_v13  ;;  %v6424_v17 = vor.u32 %v6754_v15, %v6423_v14  ;;  %v6439_v18 = vld [vmem:[#allocation5 + $0x60] sm:$0xf]  ;;  %v6756_v19 = vld [vmem:[#allocation5 + $0x80] sm:$0xf0]  ;;  %v6381_v25 = vld [vmem:[#allocation5 + $0x24] sm:$0xf0] }
  0x28   :  { %345 = vmatpush.bf16.msra.mxu1 %v6416_v12  ;;  %v6440_v20 = vor.u32 %v6756_v19, %v6439_v18  ;;  %v6379_v21 = vld [vmem:[#allocation5] sm:$0xf]  ;;  %v6744_v22 = vld [vmem:[#allocation5 + $0x20] sm:$0xf0]  ;;  %v6387_v26 = vld [vmem:[#allocation5 + $0x8] sm:$0xf] }
  0x29   :  { %364 = vmatpush.bf16.msra.mxu2 %v6420_v16  ;;  %383 = vmatpush.bf16.msra.mxu3 %v6424_v17  ;;  %v6740_v23 = vld [vmem:[#allocation5 + $0x4] sm:$0xf]  ;;  %v6380_v24 = vor.u32 %v6744_v22, %v6379_v21  ;;  %v6745_v27 = vld [vmem:[#allocation5 + $0x28] sm:$0xf0]  ;;  %v6403_v30 = vld [vmem:[#allocation5 + $0x18] sm:$0xf] }
  0x2a   :  { %v6739_v0 = vld [vmem:[%s10493_s27 + $0x10] sm:$0xff]  ;;  %v6738_v1 = vld [vmem:[%s10493_s27 + $0x8] sm:$0xff]  ;;  %v6737_v2 = vld [vmem:[%s10493_s27] sm:$0xff]  ;;  %v6384_v28 = vor.u32 %v6740_v23, %v6381_v25  ;;  %v6388_v29 = vor.u32 %v6745_v27, %v6387_v26  ;;  %vm570_vm2 = vcmask 1041408   ;;  %vm572_vm3 = vcmask 1045508   ;;  %s7292_s7 = smov [#allocation11]  }
  0x2b   :  { %182 = vmatpush.bf16.msra.mxu0 %v6739_v0  ;;  %v136_v3 = vld [vmem:[%s10494_s1] sm:$0xff]  ;;  %v137_v4 = vld [vmem:[%s10494_s1 + $0x8] sm:$0xff]  ;;  %v138_v6 = vld [vmem:[%s10494_s1 + $0x10] sm:$0xff]  ;;  %vm579_vm4 = vcmask 1043458   ;;  %vm581_vm5 = vcmask 1045504   ;;  %vm574_vm6 = vcmask 1043456  }
  0x2c   :  { %v140_v5 = vpack.c.bf16 %v137_v4, %v136_v3  ;;  %v139_v7 = vld [vmem:[%s10494_s1 + $0x18] sm:$0xff]  ;;  %v6747_v31 = vld [vmem:[#allocation5 + $0x38] sm:$0xf0]  ;;  %346 = vmatpush.bf16.msra.mxu1 %v6380_v24  ;;  %v6425_v34 = vld [vmem:[#allocation5 + $0x74] sm:$0xf0]  ;;  %vm583_vm7 = vcmask 1045506  }
  0x2d   :  { %v141_v8 = vpack.c.bf16 %v139_v7, %v138_v6  ;;  %v6404_v32 = vor.u32 %v6747_v31, %v6403_v30  ;;  %365 = vmatpush.bf16.msra.mxu2 %v6384_v28  ;;  %384 = vmatpush.bf16.msra.mxu3 %v6388_v29  ;;  %v6750_v33 = vld [vmem:[#allocation5 + $0x54] sm:$0xf]  ;;  %v6431_v35 = vld [vmem:[#allocation5 + $0x58] sm:$0xf]  ;;  %v6755_v37 = vld [vmem:[#allocation5 + $0x78] sm:$0xf0] }
  0x2e   :  { %v6428_v36 = vor.u32 %v6750_v33, %v6425_v34  ;;  %v6751_v38 = vld [vmem:[#allocation5 + $0x5c] sm:$0xf]  ;;  %v6433_v39 = vld [vmem:[#allocation5 + $0x7c] sm:$0xf0]  ;;  %v6432_v41 = vor.u32 %v6755_v37, %v6431_v35  ;;  %v6741_v43 = vld [vmem:[#allocation5 + $0xc] sm:$0xf] }
  0x2f   :  { %183 = vmatpush.bf16.msra.mxu0 %v6738_v1  ;;  %v6436_v42 = vor.u32 %v6751_v38, %v6433_v39  ;;  %v6389_v44 = vld [vmem:[#allocation5 + $0x2c] sm:$0xf0]  ;;  %v6746_v47 = vld [vmem:[#allocation5 + $0x30] sm:$0xf0]  ;;  %v6397_v49 = vld [vmem:[#allocation5 + $0x34] sm:$0xf0] }
  0x30   :  { %v6395_v45 = vld [vmem:[#allocation5 + $0x10] sm:$0xf]  ;;  %402 = vmatpush.bf16.msrb.mxu1 %v6428_v36  ;;  %v6392_v46 = vor.u32 %v6741_v43, %v6389_v44  ;;  %v6742_v48 = vld [vmem:[#allocation5 + $0x14] sm:$0xf]  ;;  %v6823_v52 = vld [vmem:[#allocation2] ss:$0 sm:$0xff] }
  0x31   :  { %421 = vmatpush.bf16.msrb.mxu2 %v6432_v41  ;;  %440 = vmatpush.bf16.msrb.mxu3 %v6436_v42  ;;  %v6396_v50 = vor.u32 %v6746_v47, %v6395_v45  ;;  %v6400_v51 = vor.u32 %v6742_v48, %v6397_v49  ;;  %v6752_v62 = vld [vmem:[#allocation5 + $0x64] sm:$0xf]  ;;  %v6441_v63 = vld [vmem:[#allocation5 + $0x84] sm:$0xf0]  ;;  %v6743_v3 = vld [vmem:[#allocation5 + $0x1c] sm:$0xf] }
  0x32   :  { %v6447_v0 = vld [vmem:[#allocation5 + $0x68] sm:$0xf]  ;;  %v6444_v1 = vor.u32 %v6752_v62, %v6441_v63  ;;  %v6405_v4 = vld [vmem:[#allocation5 + $0x3c] sm:$0xf0]  ;;  %v6748_v7 = vld [vmem:[#allocation5 + $0x40] sm:$0xf0] }
  0x33   :  { %184 = vmatpush.bf16.msra.mxu0 %v6737_v2  ;;  %v6757_v2 = vld [vmem:[#allocation5 + $0x88] sm:$0xf0]  ;;  %v6411_v6 = vld [vmem:[#allocation5 + $0x20] sm:$0xf]  ;;  %v7464_v18 = vld [vmem:[%s10390_s4] sm:$0xff]  ;;  %vm1092_vm8 = vcmask 9216  }
  0x34   :  { %403 = vmatpush.bf16.msrb.mxu1 %v6392_v46  ;;  %v6412_v9 = vor.u32 %v6748_v7, %v6411_v6  ;;  %v7475_v23 = vperm.slane %v7464_v18, 2  ;;  %v7478_v24 = vperm.slane %v7464_v18, 3  ;;  %v7481_v25 = vperm.slane %v7464_v18, 0  ;;  %s6349_s18 = sshll.u32 %s7292_s7, 4  ;;  %s10803_s28 = sld [smem:[#allocation68_spill]]  ;;  %s6350_s18 = int_to_ptr.vmem [resolvable:$true] %s6349_s18 }
  0x35   :  { %422 = vmatpush.bf16.msrb.mxu2 %v6396_v50  ;;  %441 = vmatpush.bf16.msrb.mxu3 %v6400_v51  ;;  %vm2214_vm13 = vcmask 15360  }
  0x36   :  { %6375 = vmatmul.msk.bf16.vlgmr.msra.gmra.mxu0 %vm170_vm0, %v140_v5  ;;  %v6448_v5 = vor.u32 %v6757_v2, %v6447_v0 }
  0x37   :  { %459 = vmatpush.bf16.msrb.mxu0 %v6440_v20  ;;  %v7469_v20 = vperm.slane %v7464_v18, 1 }
  0x3a   :  { %s6351_s29 = sshll.u32 %s10803_s28, 4  ;;  %s6352_s29 = int_to_ptr.hbm [resolvable:$true] %s6351_s29 }
  0x3b   :  { %460 = vmatpush.bf16.msrb.mxu0 %v6404_v32 }
  0x46   :  { %6376 = vmatmul.msk.bf16.gmra.mxu0 %vm170_vm0, %v141_v8  ;;  %v6408_v8 = vor.u32 %v6743_v3, %v6405_v4 }
  0xb3   :  { %v186_v40 = vpop.f32.mrf.mxu0 }
  0xb4   :  { %v7429_v54 = vadd.f32 %v6823_v52, %v186_v40 }
  0xb6   :  { %10495 = vst [vmem:[#allocation16_spill] sm:$0xff] %v7429_v54 }
  0xbb   :  { %v188_v53 = vpop.f32.mrf.mxu0 }
  0xbc   :  { %v7431_v55 = vadd.f32 %v6823_v52, %v188_v53 }
  0xbe   :  { %10496 = vst [vmem:[#allocation17_spill] sm:$0xff] %v7431_v55  ;;  %v196_v56 = vpack.c.bf16 %v7431_v55, %v7429_v54 }
  0xc0   :  { %6449 = vmatmul.msk.bf16.vlgmr.msra.gmra.mxu1 %vm332_vm1, %v196_v56  ;;  %6451 = vmatmul.msk.bf16.vlgmr.msra.gmra.mxu2 %vm332_vm1, %v196_v56 }
  0xc1   :  { %6453 = vmatmul.msk.bf16.vlgmr.msra.gmra.mxu3 %vm332_vm1, %v196_v56  ;;  %6461 = vmatmul.msk.bf16.vlgmr.msrb.gmra.mxu0 %vm332_vm1, %v196_v56 }
  0xc2   :  { %478 = vmatpush.bf16.msra.mxu1 %v6444_v1  ;;  %497 = vmatpush.bf16.msra.mxu2 %v6448_v5 }
  0xc3   :  { %v191_v57 = vpop.f32.mrf.mxu0 }
  0xc4   :  { %v7439_v59 = vadd.f32 %v6823_v52, %v191_v57 }
  0xc6   :  { %10497 = vst [vmem:[#allocation18_spill] sm:$0xff] %v7439_v59  ;;  %479 = vmatpush.bf16.msra.mxu1 %v6408_v8  ;;  %498 = vmatpush.bf16.msra.mxu2 %v6412_v9 }
  0xcb   :  { %v193_v58 = vpop.f32.mrf.mxu0 }
  0xcc   :  { %v7441_v60 = vadd.f32 %v6823_v52, %v193_v58 }
  0xce   :  { %10498 = vst [vmem:[#allocation19_spill] sm:$0xff] %v7441_v60  ;;  %v197_v61 = vpack.c.bf16 %v7441_v60, %v7439_v59 }
  0xd0   :  { %6450 = vmatmul.msk.bf16.gmra.mxu1 %vm332_vm1, %v197_v61  ;;  %6452 = vmatmul.msk.bf16.gmra.mxu2 %vm332_vm1, %v197_v61 }
  0xd1   :  { %6454 = vmatmul.msk.bf16.gmra.mxu3 %vm332_vm1, %v197_v61  ;;  %6462 = vmatmul.msk.bf16.gmra.mxu0 %vm332_vm1, %v197_v61 }
  0xe0   :  { %6455 = vmatmul.msk.bf16.vlgmr.msrb.gmra.mxu1 %vm332_vm1, %v196_v56  ;;  %6457 = vmatmul.msk.bf16.vlgmr.msrb.gmra.mxu2 %vm332_vm1, %v196_v56 }
  0xe1   :  { %6459 = vmatmul.msk.bf16.vlgmr.msrb.gmra.mxu3 %vm332_vm1, %v196_v56 }
  0xf0   :  { %6456 = vmatmul.msk.bf16.gmra.mxu1 %vm332_vm1, %v197_v61  ;;  %6458 = vmatmul.msk.bf16.gmra.mxu2 %vm332_vm1, %v197_v61 }
  0xf1   :  { %6460 = vmatmul.msk.bf16.gmra.mxu3 %vm332_vm1, %v197_v61 }
 0x100   :  { %6463 = vmatmul.msk.bf16.vlgmr.msra.gmra.mxu1 %vm332_vm1, %v196_v56  ;;  %6465 = vmatmul.msk.bf16.vlgmr.msra.gmra.mxu2 %vm332_vm1, %v196_v56 }
 0x110   :  { %6464 = vmatmul.msk.bf16.gmra.mxu1 %vm332_vm1, %v197_v61  ;;  %6466 = vmatmul.msk.bf16.gmra.mxu2 %vm332_vm1, %v197_v61 }
 0x13d   :  { %v348_v10 = vpop.f32.mrf.mxu1 }
 0x13e   :  { %v349_v32 = vadd.f32 %v348_v10, %v7481_v25 }
 0x143   :  { %v367_v11 = vpop.f32.mrf.mxu2 }
 0x144   :  { %v386_v12 = vpop.f32.mrf.mxu3  ;;  %v368_v22 = vadd.f32 %v367_v11, %v7469_v20 }
 0x145   :  { %v350_v13 = vpop.f32.mrf.mxu1  ;;  %v387_v29 = vadd.f32 %v386_v12, %v7475_v23 }
 0x146   :  { %v546_v28 = vrot.slane %v368_v22, 6  ;;  %v351_v1 = vadd.f32 %v350_v13, %v7481_v25 }
 0x147   :  { %v547_v34 = vrot.slane %v387_v29, 4 }
 0x148   :  { %v571_v33 = vsel %vm570_vm2, %v349_v32, %v546_v28  ;;  %v580_v36 = vsel %vm579_vm4, %v349_v32, %v546_v28  ;;  %v591_v37 = vsel %vm572_vm3, %v349_v32, %v546_v28  ;;  %v600_v38 = vsel %vm581_vm5, %v546_v28, %v349_v32 }
 0x14b   :  { %v369_v14 = vpop.f32.mrf.mxu2 }
 0x14c   :  { %v388_v15 = vpop.f32.mrf.mxu3  ;;  %v370_v39 = vadd.f32 %v369_v14, %v7469_v20 }
 0x14d   :  { %v7459_v16 = vpop.f32.mrf.mxu1  ;;  %v389_v50 = vadd.f32 %v388_v15, %v7475_v23 }
 0x14e   :  { %v552_v57 = vrot.slane %v370_v39, 6 }
 0x14f   :  { %v553_v3 = vrot.slane %v389_v50, 4 }
 0x150   :  { %v609_v4 = vsel %vm570_vm2, %v351_v1, %v552_v57  ;;  %v615_v5 = vsel %vm579_vm4, %v351_v1, %v552_v57  ;;  %v624_v6 = vsel %vm572_vm3, %v351_v1, %v552_v57  ;;  %v633_v13 = vsel %vm581_vm5, %v552_v57, %v351_v1 }
 0x153   :  { %v372_v17 = vpop.f32.mrf.mxu2 }
 0x154   :  { %v7466_v19 = vpop.f32.mrf.mxu3  ;;  %v373_v7 = vadd.f32 %v372_v17, %v7469_v20 }
 0x155   :  { %v7471_v21 = vpop.f32.mrf.mxu1  ;;  %v392_v28 = vadd.f32 %v7466_v19, %v7475_v23 }
 0x15b   :  { %v7483_v26 = vpop.f32.mrf.mxu2 }
 0x15c   :  { %v7485_v27 = vpop.f32.mrf.mxu3 }
 0x15d   :  { %v405_v30 = vpop.f32.mrf.mxu1 }
 0x15e   :  { %v406_v31 = vadd.f32 %v405_v30, %v7478_v24 }
 0x160   :  { %v548_v35 = vrot.slane %v406_v31, 2 }
 0x162   :  { %v573_v40 = vsel %vm572_vm3, %v547_v34, %v548_v35  ;;  %v582_v41 = vsel %vm581_vm5, %v548_v35, %v547_v34  ;;  %v592_v42 = vsel %vm570_vm2, %v547_v34, %v548_v35  ;;  %v601_v43 = vsel %vm579_vm4, %v547_v34, %v548_v35 }
 0x163   :  { %v7499_v44 = vpop.f32.mrf.mxu2  ;;  %v7502_v45 = vsel %vm574_vm6, %v571_v33, %v573_v40  ;;  %v584_v46 = vsel %vm583_vm7, %v580_v36, %v582_v41  ;;  %v593_v47 = vsel %vm574_vm6, %v592_v42, %v591_v37  ;;  %v602_v48 = vsel %vm583_vm7, %v601_v43, %v600_v38  ;;  %v7561_v42 = vpop.f32.mrf.mxu0 }
 0x164   :  { %10499 = vst [vmem:[#allocation20_spill] sm:$0xff] %v7502_v45  ;;  %v7507_v49 = vpop.f32.mrf.mxu3  ;;  %v7510_v51 = vrot.slane %v584_v46, 2  ;;  %v7512_v52 = vrot.slane %v593_v47, 4  ;;  %v7514_v53 = vrot.slane %v602_v48, 6  ;;  %v740_v61 = vrot.slane %v7502_v45, 2 }
 0x165   :  { %v407_v56 = vpop.f32.mrf.mxu1  ;;  %v7549_v33 = vrot.slane %v373_v7, 6  ;;  %v354_v37 = vadd.f32 %v7459_v16, %v7481_v25  ;;  %v559_v40 = vrot.slane %v392_v28, 4  ;;  %v375_v41 = vadd.f32 %v7483_v26, %v7469_v20 }
 0x166   :  { %10500 = vst [vmem:[#allocation21_spill] sm:$0xff] %v7510_v51  ;;  %v408_v58 = vadd.f32 %v407_v56, %v7478_v24  ;;  %v762_v62 = vrot.slane %v7510_v51, 2  ;;  %v784_v63 = vrot.slane %v7512_v52, 2  ;;  %v806_v0 = vrot.slane %v7514_v53, 2  ;;  %757 = vmatpush.xpose.msra.mxu3 %v740_v61 }
 0x167   :  { %10501 = vst [vmem:[#allocation22_spill] sm:$0xff] %v7512_v52  ;;  %v648_v43 = vsel %vm579_vm4, %v354_v37, %v7549_v33  ;;  %v657_v46 = vsel %vm572_vm3, %v354_v37, %v7549_v33  ;;  %v394_v16 = vadd.f32 %v7485_v27, %v7475_v23  ;;  %v7573_v20 = vperm.slane %v7464_v18, 5 }
 0x168   :  { %10502 = vst [vmem:[#allocation23_spill] sm:$0xff] %v7514_v53  ;;  %v554_v2 = vrot.slane %v408_v58, 2  ;;  %779 = vmatpush.xpose.msra.mxu0 %v762_v62  ;;  %v7578_v61 = vrot.slane %v375_v41, 6 }
 0x169   :  { %758 = vmatmul.f32.vlgmr.msra.gmra.mxu3 %v7502_v45 }
 0x16a   :  { %801 = vmatpush.xpose.msrb.mxu3 %v784_v63  ;;  %v610_v8 = vsel %vm572_vm3, %v553_v3, %v554_v2  ;;  %v616_v9 = vsel %vm581_vm5, %v554_v2, %v553_v3  ;;  %v625_v10 = vsel %vm570_vm2, %v553_v3, %v554_v2  ;;  %v634_v11 = vsel %vm579_vm4, %v553_v3, %v554_v2 }
 0x16b   :  { %v7531_v12 = vpop.f32.mrf.mxu2  ;;  %v7535_v14 = vsel %vm574_vm6, %v609_v4, %v610_v8  ;;  %v617_v15 = vsel %vm583_vm7, %v615_v5, %v616_v9  ;;  %v626_v17 = vsel %vm574_vm6, %v625_v10, %v624_v6  ;;  %780 = vmatmul.f32.vlgmr.msra.gmra.mxu0 %v7510_v51  ;;  %v635_v31 = vsel %vm583_vm7, %v634_v11, %v633_v13 }
 0x16c   :  { %823 = vmatpush.xpose.msrb.mxu0 %v806_v0  ;;  %10503 = vst [vmem:[#allocation24_spill] sm:$0xff] %v7535_v14  ;;  %v7539_v22 = vpop.f32.mrf.mxu3  ;;  %v7544_v29 = vrot.slane %v617_v15, 2  ;;  %v7546_v30 = vrot.slane %v626_v17, 4  ;;  %v828_v35 = vrot.slane %v7535_v14, 2  ;;  %v7556_v38 = vrot.slane %v635_v31, 6 }
 0x16d   :  { %v410_v32 = vpop.f32.mrf.mxu1  ;;  %v7586_v63 = vperm.slane %v7464_v18, 4  ;;  %v642_v3 = vsel %vm570_vm2, %v354_v37, %v7549_v33  ;;  %v356_v4 = vadd.f32 %v7471_v21, %v7481_v25  ;;  %v565_v5 = vrot.slane %v394_v16, 4 }
 0x16e   :  { %10504 = vst [vmem:[#allocation25_spill] sm:$0xff] %v7544_v29  ;;  %v411_v34 = vadd.f32 %v410_v32, %v7478_v24  ;;  %v850_v36 = vrot.slane %v7544_v29, 2  ;;  %845 = vmatpush.xpose.msra.mxu3 %v828_v35  ;;  %v872_v39 = vrot.slane %v7546_v30, 2  ;;  %v894_v58 = vrot.slane %v7556_v38, 2 }
 0x16f   :  { %10505 = vst [vmem:[#allocation26_spill] sm:$0xff] %v7546_v30  ;;  %v675_v11 = vsel %vm570_vm2, %v356_v4, %v7578_v61  ;;  %v690_v13 = vsel %vm572_vm3, %v356_v4, %v7578_v61 }
 0x170   :  { %10506 = vst [vmem:[#allocation27_spill] sm:$0xff] %v7556_v38  ;;  %v560_v19 = vrot.slane %v411_v34, 2  ;;  %867 = vmatpush.xpose.msra.mxu0 %v850_v36  ;;  %v7624_v36 = vpop.f32.mrf.mxu0 }
 0x171   :  { %802 = vmatmul.f32.vlgmr.msrb.gmra.mxu3 %v7512_v52 }
 0x172   :  { %v649_v47 = vsel %vm581_vm5, %v560_v19, %v559_v40  ;;  %v658_v48 = vsel %vm570_vm2, %v559_v40, %v560_v19  ;;  %889 = vmatpush.xpose.msrb.mxu3 %v872_v39  ;;  %v643_v0 = vsel %vm572_vm3, %v559_v40, %v560_v19  ;;  %v667_v31 = vsel %vm579_vm4, %v559_v40, %v560_v19 }
 0x173   :  { %v429_v50 = vpop.f32.mrf.mxu2  ;;  %v650_v26 = vsel %vm583_vm7, %v648_v43, %v649_v47  ;;  %v659_v56 = vsel %vm574_vm6, %v658_v48, %v657_v46  ;;  %824 = vmatmul.f32.vlgmr.msrb.gmra.mxu0 %v7514_v53  ;;  %v7605_v21 = vsel %vm574_vm6, %v642_v3, %v643_v0  ;;  %v666_v40 = vsel %vm581_vm5, %v7549_v33, %v354_v37 }
 0x174   :  { %v448_v57 = vpop.f32.mrf.mxu3  ;;  %v7580_v23 = vrot.slane %v650_v26, 2  ;;  %v7582_v27 = vrot.slane %v659_v56, 4  ;;  %911 = vmatpush.xpose.msrb.mxu0 %v894_v58  ;;  %v430_v7 = vadd.f32 %v429_v50, %v7586_v63  ;;  %10509 = vst [vmem:[#allocation30_spill] sm:$0xff] %v7605_v21  ;;  %v916_v19 = vrot.slane %v7605_v21, 2 }
 0x175   :  { %v412_v62 = vpop.f32.mrf.mxu1  ;;  %v449_v1 = vadd.f32 %v448_v57, %v7573_v20  ;;  %v668_v26 = vsel %vm583_vm7, %v667_v31, %v666_v40  ;;  %v1477_v58 = vrot.slane %v7502_v45, 4  ;;  %v1499_v0 = vrot.slane %v7510_v51, 4 }
 0x176   :  { %10507 = vst [vmem:[#allocation28_spill] sm:$0xff] %v7580_v23  ;;  %v413_v2 = vadd.f32 %v412_v62, %v7478_v24  ;;  %v938_v6 = vrot.slane %v7580_v23, 2  ;;  %v960_v10 = vrot.slane %v7582_v27, 2  ;;  %v681_v24 = vsel %vm579_vm4, %v356_v4, %v7578_v61 }
 0x177   :  { %10508 = vst [vmem:[#allocation29_spill] sm:$0xff] %v7582_v27  ;;  %v561_v8 = vrot.slane %v449_v1, 6  ;;  %v7647_v1 = vrot.slane %v668_v26, 6  ;;  %v444_v40 = vadd.f32 %v7507_v49, %v7573_v20 }
 0x178   :  { %v566_v9 = vrot.slane %v413_v2, 2  ;;  %955 = vmatpush.xpose.msrb.mxu2 %v938_v6 }
 0x179   :  { %v7608_v25 = vsel %vm570_vm2, %v430_v7, %v561_v8  ;;  %v7611_v15 = vsel %vm579_vm4, %v430_v7, %v561_v8  ;;  %v7614_v17 = vsel %vm572_vm3, %v430_v7, %v561_v8  ;;  %v7617_v28 = vsel %vm581_vm5, %v561_v8, %v430_v7  ;;  %846 = vmatmul.f32.vlgmr.msra.gmra.mxu3 %v7535_v14 }
 0x17a   :  { %v676_v32 = vsel %vm572_vm3, %v565_v5, %v566_v9  ;;  %v682_v34 = vsel %vm581_vm5, %v566_v9, %v565_v5  ;;  %v691_v35 = vsel %vm570_vm2, %v565_v5, %v566_v9  ;;  %977 = vmatpush.xpose.msra.mxu3 %v960_v10  ;;  %10513 = vst [vmem:[#allocation34_spill] sm:$0xff] %v7647_v1  ;;  %v982_v31 = vrot.slane %v7647_v1, 2 }
 0x17b   :  { %v7627_v39 = vsel %vm574_vm6, %v675_v11, %v676_v32  ;;  %v683_v41 = vsel %vm583_vm7, %v681_v24, %v682_v34  ;;  %v692_v43 = vsel %vm574_vm6, %v691_v35, %v690_v13  ;;  %v431_v48 = vpop.f32.mrf.mxu2  ;;  %868 = vmatmul.f32.vlgmr.msra.gmra.mxu0 %v7544_v29  ;;  %956 = vmatmul.f32.vlgmr.msrb.gmra.mxu2 %v7580_v23  ;;  %v1565_v11 = vrot.slane %v7535_v14, 4  ;;  %v467_v35 = vpop.f32.mrf.mxu0 }
 0x17c   :  { %10510 = vst [vmem:[#allocation31_spill] sm:$0xff] %v7627_v39  ;;  %v450_v46 = vpop.f32.mrf.mxu3  ;;  %v7634_v16 = vrot.slane %v683_v41, 2  ;;  %v7636_v47 = vrot.slane %v692_v43, 4  ;;  %933 = vmatpush.xpose.msra.mxu0 %v916_v19  ;;  %v1004_v57 = vrot.slane %v7627_v39, 2  ;;  %v432_v37 = vadd.f32 %v431_v48, %v7586_v63 }
 0x17d   :  { %v481_v50 = vpop.f32.mrf.mxu1  ;;  %v451_v56 = vadd.f32 %v450_v46, %v7573_v20  ;;  %v700_v10 = vsel %vm579_vm4, %v565_v5, %v566_v9  ;;  %v699_v24 = vsel %vm581_vm5, %v7578_v61, %v356_v4  ;;  %v7669_v13 = vperm.slane %v7464_v18, 7 }
 0x17e   :  { %10511 = vst [vmem:[#allocation32_spill] sm:$0xff] %v7634_v16  ;;  %v1026_v33 = vrot.slane %v7634_v16, 2  ;;  %1021 = vmatpush.xpose.msrb.mxu1 %v1004_v57  ;;  %v1048_v2 = vrot.slane %v7636_v47, 2  ;;  %v1587_v32 = vrot.slane %v7544_v29, 4  ;;  %v701_v5 = vsel %vm583_vm7, %v700_v10, %v699_v24 }
 0x17f   :  { %10512 = vst [vmem:[#allocation33_spill] sm:$0xff] %v7636_v47  ;;  %v567_v62 = vrot.slane %v451_v56, 6  ;;  %v228_v9 = vperm.slane %v7464_v18, 6  ;;  %v7677_v61 = vrot.slane %v701_v5, 6  ;;  %v482_v4 = vadd.f32 %v481_v50, %v7669_v13 }
 0x180   :  { %1043 = vmatpush.xpose.msra.mxu2 %v1026_v33  ;;  %v1521_v41 = vrot.slane %v7512_v52, 4  ;;  %v1653_v19 = vrot.slane %v7605_v21, 4  ;;  %v1675_v50 = vrot.slane %v7580_v23, 4  ;;  %v7701_v33 = vrot.slane %v444_v40, 6 }
 0x181   :  { %v7651_v3 = vsel %vm570_vm2, %v432_v37, %v567_v62  ;;  %v7654_v6 = vsel %vm579_vm4, %v432_v37, %v567_v62  ;;  %v7657_v7 = vsel %vm572_vm3, %v432_v37, %v567_v62  ;;  %v7660_v8 = vsel %vm581_vm5, %v567_v62, %v432_v37  ;;  %890 = vmatmul.f32.vlgmr.msrb.gmra.mxu3 %v7546_v30 }
 0x182   :  { %1494 = vmatpush.xpose.msra.mxu1 %v1477_v58  ;;  %1065 = vmatpush.xpose.msrb.mxu3 %v1048_v2  ;;  %10514 = vst [vmem:[#allocation35_spill] sm:$0xff] %v7677_v61  ;;  %v463_v43 = vadd.f32 %v7561_v42, %v228_v9  ;;  %v468_v46 = vadd.f32 %v467_v35, %v228_v9  ;;  %v7687_v18 = vrot.slane %v482_v4, 2  ;;  %v1070_v48 = vrot.slane %v7677_v61, 2 }
 0x183   :  { %1022 = vmatmul.f32.vlgmr.msrb.gmra.mxu1 %v7627_v39  ;;  %912 = vmatmul.f32.vlgmr.msrb.gmra.mxu0 %v7556_v38  ;;  %v465_v49 = vadd.f32 %v7624_v36, %v228_v9  ;;  %v7699_v58 = vadd.f32 %v7499_v44, %v7586_v63  ;;  %v1609_v62 = vrot.slane %v7546_v30, 4 }
 0x184   :  { %1516 = vmatpush.xpose.msrb.mxu2 %v1499_v0  ;;  %999 = vmatpush.xpose.msrb.mxu0 %v982_v31  ;;  %v7694_v56 = vrot.slane %v463_v43, 4  ;;  %v562_v57 = vrot.slane %v468_v46, 4  ;;  %v469_v0 = vpop.f32.mrf.mxu0  ;;  %v446_v43 = vadd.f32 %v7539_v22, %v7573_v20 }
 0x185   :  { %v483_v34 = vpop.f32.mrf.mxu1  ;;  %1044 = vmatmul.f32.vlgmr.msra.gmra.mxu2 %v7634_v16  ;;  %v7753_v40 = vrot.slane %v465_v49, 4 }
 0x186   :  { %1582 = vmatpush.xpose.msrb.mxu1 %v1565_v11  ;;  %v577_v2 = vsel %vm572_vm3, %v7694_v56, %v7687_v18  ;;  %v587_v36 = vsel %vm581_vm5, %v7687_v18, %v7694_v56  ;;  %v484_v10 = vadd.f32 %v483_v34, %v7669_v13  ;;  %v1741_v11 = vrot.slane %v7627_v39, 4 }
 0x188   :  { %1604 = vmatpush.xpose.msra.mxu2 %v1587_v32 }
 0x189   :  { %978 = vmatmul.f32.vlgmr.msra.gmra.mxu3 %v7582_v27 }
 0x18a   :  { %1538 = vmatpush.xpose.msra.mxu3 %v1521_v41  ;;  %v470_v41 = vadd.f32 %v469_v0, %v228_v9  ;;  %v1763_v9 = vrot.slane %v7634_v16, 4 }
 0x18b   :  { %1495 = vmatmul.f32.vlgmr.msra.gmra.mxu1 %v7502_v45  ;;  %934 = vmatmul.f32.vlgmr.msra.gmra.mxu0 %v7605_v21 }
 0x18c   :  { %1670 = vmatpush.xpose.msra.mxu1 %v1653_v19  ;;  %1087 = vmatpush.xpose.msra.mxu0 %v1070_v48  ;;  %v568_v48 = vrot.slane %v470_v41, 4 }
 0x18d   :  { %v486_v26 = vpop.f32.mrf.mxu1  ;;  %1517 = vmatmul.f32.vlgmr.msrb.gmra.mxu2 %v7510_v51 }
 0x18e   :  { %v487_v42 = vadd.f32 %v486_v26, %v7669_v13  ;;  %1692 = vmatpush.xpose.msrb.mxu2 %v1675_v50  ;;  %v7757_v50 = vadd.f32 %v7531_v12, %v7586_v63  ;;  %v7759_v26 = vrot.slane %v446_v43, 6  ;;  %v595_v43 = vsel %vm572_vm3, %v7699_v58, %v7701_v33 }
 0x190   :  { %v563_v37 = vrot.slane %v487_v42, 2 }
 0x191   :  { %1066 = vmatmul.f32.vlgmr.msrb.gmra.mxu3 %v7636_v47 }
 0x192   :  { %v646_v44 = vsel %vm572_vm3, %v562_v57, %v563_v37  ;;  %v653_v24 = vsel %vm581_vm5, %v563_v37, %v562_v57  ;;  %v662_v31 = vsel %vm570_vm2, %v562_v57, %v563_v37  ;;  %v671_v32 = vsel %vm579_vm4, %v562_v57, %v563_v37  ;;  %1626 = vmatpush.xpose.msrb.mxu3 %v1609_v62 }
 0x193   :  { %v7718_v5 = vsel %vm574_vm6, %v7608_v25, %v646_v44  ;;  %v7722_v35 = vsel %vm583_vm7, %v7611_v15, %v653_v24  ;;  %v7726_v34 = vsel %vm574_vm6, %v662_v31, %v7614_v17  ;;  %v7730_v4 = vsel %vm583_vm7, %v671_v32, %v7617_v28  ;;  %1583 = vmatmul.f32.vlgmr.msrb.gmra.mxu1 %v7535_v14 }
 0x194   :  { %10515 = vst [vmem:[#allocation36_spill] sm:$0xff] %v7730_v4  ;;  %v1543_v25 = vrot.slane %v7514_v53, 4  ;;  %v576_v15 = vsel %vm570_vm2, %v7699_v58, %v7701_v33  ;;  %v586_v17 = vsel %vm579_vm4, %v7699_v58, %v7701_v33  ;;  %v7743_v28 = vrot.slane %v484_v10, 2  ;;  %1758 = vmatpush.xpose.msrb.mxu1 %v1741_v11  ;;  %1000 = vmatmul.f32.vlgmr.msrb.gmra.mxu0 %v7647_v1 }
 0x195   :  { %v488_v46 = vpop.f32.mrf.mxu1  ;;  %v7747_v22 = vsel %vm574_vm6, %v576_v15, %v577_v2  ;;  %v588_v20 = vsel %vm583_vm7, %v586_v17, %v587_v36  ;;  %1605 = vmatmul.f32.vlgmr.msra.gmra.mxu2 %v7544_v29  ;;  %v612_v24 = vsel %vm570_vm2, %v7757_v50, %v7759_v26  ;;  %v596_v31 = vsel %vm570_vm2, %v7694_v56, %v7687_v18 }
 0x196   :  { %v489_v19 = vadd.f32 %v488_v46, %v7669_v13  ;;  %1560 = vmatpush.xpose.msrb.mxu0 %v1543_v25  ;;  %1780 = vmatpush.xpose.msra.mxu2 %v1763_v9  ;;  %v7761_v57 = vrot.slane %v588_v20, 2  ;;  %v620_v37 = vsel %vm581_vm5, %v7743_v28, %v7753_v40  ;;  %v1697_v13 = vrot.slane %v7582_v27, 4 }
 0x197   :  { %v2213_v49 = vrot.slane %v7747_v22, 4  ;;  %v1785_v25 = vrot.slane %v7636_v47, 4  ;;  %v597_v15 = vsel %vm574_vm6, %v596_v31, %v595_v43  ;;  %v1719_v9 = vrot.slane %v7647_v1, 4 }
 0x198   :  { %v569_v42 = vrot.slane %v489_v19, 2  ;;  %10516 = vst [vmem:[#allocation37_spill] sm:$0xff] %v7761_v57  ;;  %v7825_v20 = vrot.slane %v597_v15, 4  ;;  %v629_v19 = vsel %vm570_vm2, %v7753_v40, %v7743_v28 }
 0x199   :  { %1539 = vmatmul.f32.vlgmr.msra.gmra.mxu3 %v7512_v52 }
 0x19a   :  { %v679_v62 = vsel %vm572_vm3, %v568_v48, %v569_v42  ;;  %v686_v0 = vsel %vm581_vm5, %v569_v42, %v568_v48  ;;  %v695_v12 = vsel %vm570_vm2, %v568_v48, %v569_v42  ;;  %v704_v63 = vsel %vm579_vm4, %v568_v48, %v569_v42  ;;  %1714 = vmatpush.xpose.msra.mxu3 %v1697_v13 }
 0x19b   :  { %v7774_v2 = vsel %vm574_vm6, %v7651_v3, %v679_v62  ;;  %v7778_v36 = vsel %vm583_vm7, %v7654_v6, %v686_v0  ;;  %v7782_v10 = vsel %vm574_vm6, %v695_v12, %v7657_v7  ;;  %v7786_v11 = vsel %vm583_vm7, %v704_v63, %v7660_v8  ;;  %1671 = vmatmul.f32.vlgmr.msra.gmra.mxu1 %v7605_v21 }
 0x19c   :  { %10517 = vst [vmem:[#allocation38_spill] sm:$0xff] %v7774_v2  ;;  %v619_v3 = vsel %vm579_vm4, %v7757_v50, %v7759_v26  ;;  %v613_v6 = vsel %vm572_vm3, %v7753_v40, %v7743_v28  ;;  %6467 = vmatpush.msk.msra.mxu1 %vm570_vm2, %v2213_v49  ;;  %v1631_v7 = vrot.slane %v7556_v38, 4  ;;  %v2240_v8 = vrot.slane %v7761_v57, 4  ;;  %1088 = vmatmul.f32.vlgmr.msra.gmra.mxu0 %v7677_v61 }
 0x19d   :  { %10518 = vst [vmem:[#allocation39_spill] sm:$0xff] %v7782_v10  ;;  %v621_v44 = vsel %vm583_vm7, %v619_v3, %v620_v37  ;;  %1693 = vmatmul.f32.vlgmr.msrb.gmra.mxu2 %v7580_v23  ;;  %v7810_v32 = vsel %vm574_vm6, %v612_v24, %v613_v6  ;;  %v628_v48 = vsel %vm572_vm3, %v7757_v50, %v7759_v26  ;;  %v2266_v42 = vrot.slane %v7825_v20, 4 }
 0x19e   :  { %10519 = vst [vmem:[#allocation40_spill] sm:$0xff] %v7786_v11  ;;  %1648 = vmatpush.xpose.msra.mxu0 %v1631_v7  ;;  %6469 = vmatpush.msk.msrb.mxu2 %vm570_vm2, %v2240_v8  ;;  %v7812_v41 = vrot.slane %v621_v44, 2  ;;  %v2318_v17 = vrot.slane %v7810_v32, 4  ;;  %v605_v37 = vsel %vm579_vm4, %v7694_v56, %v7687_v18  ;;  %v630_v13 = vsel %vm574_vm6, %v629_v19, %v628_v48 }
 0x19f   :  { %10520 = vst [vmem:[#allocation41_spill] sm:$0xff] %v7810_v32  ;;  %v604_v49 = vsel %vm581_vm5, %v7701_v33, %v7699_v58  ;;  %v1807_v62 = vrot.slane %v7677_v61, 4  ;;  %v7848_v12 = vrot.slane %v630_v13, 4  ;;  %v638_v63 = vsel %vm579_vm4, %v7753_v40, %v7743_v28  ;;  %v7871_v40 = vpop.f32.mrf.mxu2 }
 0x1a0   :  { %10521 = vst [vmem:[#allocation42_spill] sm:$0xff] %v7812_v41  ;;  %v2344_v46 = vrot.slane %v7812_v41, 4  ;;  %v606_v0 = vsel %vm583_vm7, %v605_v37, %v604_v49  ;;  %v637_v58 = vsel %vm581_vm5, %v7759_v26, %v7757_v50 }
 0x1a1   :  { %1627 = vmatmul.f32.vlgmr.msrb.gmra.mxu3 %v7546_v30  ;;  %10522 = vst [vmem:[#allocation43_spill] sm:$0xff] %v7848_v12  ;;  %v7851_v18 = vrot.slane %v606_v0, 6  ;;  %v2370_v56 = vrot.slane %v7848_v12, 4  ;;  %v639_v3 = vsel %vm583_vm7, %v638_v63, %v637_v58 }
 0x1a2   :  { %1802 = vmatpush.xpose.msrb.mxu3 %v1785_v25  ;;  %v7866_v6 = vrot.slane %v639_v3, 6  ;;  %10525 = vst [vmem:[#allocation46_spill] sm:$0xff] %v7871_v40 }
 0x1a3   :  { %1759 = vmatmul.f32.vlgmr.msrb.gmra.mxu1 %v7627_v39  ;;  %10523 = vst [vmem:[#allocation44_spill] sm:$0xff] %v7851_v18  ;;  %v2292_v33 = vrot.slane %v7851_v18, 4 }
 0x1a4   :  { %6475 = vmatpush.msk.msrb.mxu1 %vm570_vm2, %v2318_v17  ;;  %1561 = vmatmul.f32.vlgmr.msrb.gmra.mxu0 %v7514_v53  ;;  %10524 = vst [vmem:[#allocation45_spill] sm:$0xff] %v7866_v6  ;;  %v2396_v28 = vrot.slane %v7866_v6, 4 }
 0x1a5   :  { %1781 = vmatmul.f32.vlgmr.msra.gmra.mxu2 %v7634_v16  ;;  %1736 = vmatpush.xpose.msrb.mxu0 %v1719_v9 }
 0x1a6   :  { %6477 = vmatpush.msk.msra.mxu2 %vm570_vm2, %v2344_v46 }
 0x1a7   :  { %v7873_v7 = vpop.f32.mrf.mxu2 }
 0x1a8   :  { %10526 = vst [vmem:[#allocation47_spill] sm:$0xff] %v7873_v7 }
 0x1a9   :  { %1715 = vmatmul.f32.vlgmr.msra.gmra.mxu3 %v7582_v27 }
 0x1aa   :  { %6471 = vmatpush.msk.msra.mxu3 %vm570_vm2, %v2266_v42 }
 0x1ac   :  { %1649 = vmatmul.f32.vlgmr.msra.gmra.mxu0 %v7556_v38 }
 0x1ad   :  { %1824 = vmatpush.xpose.msra.mxu0 %v1807_v62 }
 0x1af   :  { %v7879_v8 = vpop.f32.mrf.mxu2 }
 0x1b0   :  { %10527 = vst [vmem:[#allocation48_spill] sm:$0xff] %v7879_v8 }
 0x1b1   :  { %1803 = vmatmul.f32.vlgmr.msrb.gmra.mxu3 %v7636_v47 }
 0x1b2   :  { %6479 = vmatpush.msk.msrb.mxu3 %vm570_vm2, %v2370_v56 }
 0x1b4   :  { %1737 = vmatmul.f32.vlgmr.msrb.gmra.mxu0 %v7647_v1 }
 0x1b5   :  { %6473 = vmatpush.msk.msrb.mxu0 %vm570_vm2, %v2292_v33 }
 0x1b7   :  { %v7893_v17 = vpop.f32.mrf.mxu2 }
 0x1b8   :  { %10528 = vst [vmem:[#allocation49_spill] sm:$0xff] %v7893_v17 }
 0x1bc   :  { %1825 = vmatmul.f32.vlgmr.msra.gmra.mxu0 %v7677_v61 }
 0x1bd   :  { %6481 = vmatpush.msk.msra.mxu0 %vm570_vm2, %v2396_v28 }
 0x1e8   :  { %v7875_v50 = vpop.f32.mrf.mxu0 }
 0x1e9   :  { %v1096_v26 = vsel %vm1092_vm8, %v7875_v50, -inf }
 0x1ea   :  { %1097 = vmax.xlane.f32.xlu0 %v1096_v26 }
 0x1ec   :  { %v7881_v44 = vpop.f32.mrf.mxu3 }
 0x1ed   :  { %v1093_v24 = vsel %vm1092_vm8, %v7881_v44, -inf }
 0x1ee   :  { %1094 = vmax.xlane.f32.xlu1 %v1093_v24 }
 0x1f0   :  { %v7885_v31 = vpop.f32.mrf.mxu0 }
 0x1f1   :  { %v1102_v43 = vsel %vm1092_vm8, %v7885_v31, -inf }
 0x1f2   :  { %1103 = vmax.xlane.f32.xlu2 %v1102_v43 }
 0x1f4   :  { %v7889_v25 = vpop.f32.mrf.mxu3 }
 0x1f5   :  { %v1099_v15 = vsel %vm1092_vm8, %v7889_v25, -inf }
 0x1f6   :  { %1100 = vmax.xlane.f32.xlu1 %v1099_v15 }
 0x1f8   :  { %v7895_v9 = vpop.f32.mrf.mxu0 }
 0x1f9   :  { %v1108_v19 = vsel %vm1092_vm8, %v7895_v9, -inf }
 0x1fc   :  { %v7897_v46 = vpop.f32.mrf.mxu3 }
 0x1fe   :  { %v7901_v48 = vpop.f32.mrf.mxu2  ;;  %1109 = vmax.xlane.f32.xlu1 %v1108_v19 }
 0x1ff   :  { %v1120_v37 = vsel %vm1092_vm8, %v7901_v48, -inf }
 0x200   :  { %v7903_v42 = vpop.f32.mrf.mxu1  ;;  %1121 = vmax.xlane.f32.xlu2 %v1120_v37  ;;  %v7907_v13 = vpop.f32.mrf.mxu0 }
 0x204   :  { %v7909_v49 = vpop.f32.mrf.mxu3 }
 0x205   :  { %v1111_v56 = vsel %vm1092_vm8, %v7909_v49, -inf }
 0x208   :  { %v7911_v62 = vpop.f32.mrf.mxu2  ;;  %v7913_v0 = vpop.f32.mrf.mxu1  ;;  %1112 = vmax.xlane.f32.xlu2 %v1111_v56 }
 0x209   :  { %v1829_v63 = vsel %vm1092_vm8, %v7913_v0, -inf  ;;  %v7919_v58 = vpop.f32.mrf.mxu0 }
 0x20a   :  { %1830 = vmax.xlane.f32.xlu0 %v1829_v63 }
 0x20c   :  { %v7921_v33 = vpop.f32.mrf.mxu3 }
 0x20d   :  { %v1123_v24 = vsel %vm1092_vm8, %v7921_v33, -inf }
 0x210   :  { %v7923_v3 = vpop.f32.mrf.mxu2  ;;  %v7925_v28 = vpop.f32.mrf.mxu1 }
 0x211   :  { %v1841_v26 = vsel %vm1092_vm8, %v7925_v28, -inf  ;;  %v7931_v43 = vpop.f32.mrf.mxu0 }
 0x212   :  { %1842 = vmax.xlane.f32.xlu1 %v1841_v26  ;;  %1124 = vmax.xlane.f32.xlu0 %v1123_v24  ;;  %v1832_v26 = vsel %vm1092_vm8, %v7923_v3, -inf }
 0x214   :  { %v7933_v15 = vpop.f32.mrf.mxu3 }
 0x215   :  { %v1135_v39 = vsel %vm1092_vm8, %v7933_v15, -inf }
 0x218   :  { %v7935_v19 = vpop.f32.mrf.mxu2  ;;  %v7937_v37 = vpop.f32.mrf.mxu1 }
 0x219   :  { %v1844_v56 = vsel %vm1092_vm8, %v7935_v19, -inf  ;;  %v1853_v63 = vsel %vm1092_vm8, %v7937_v37, -inf  ;;  %v7943_v60 = vpop.f32.mrf.mxu0 }
 0x21a   :  { %1845 = vmax.xlane.f32.xlu1 %v1844_v56  ;;  %1854 = vmax.xlane.f32.xlu2 %v1853_v63  ;;  %v1138_v14 = vsel %vm1092_vm8, %v7943_v60, -inf }
 0x21b   :  { %1833 = vmax.xlane.f32.xlu0 %v1832_v26 }
 0x21c   :  { %v7947_v24 = vpop.f32.mrf.mxu3 }
 0x21d   :  { %v1835_v17 = vsel %vm1092_vm8, %v7947_v24, -inf }
 0x220   :  { %v7949_v59 = vpop.f32.mrf.mxu2  ;;  %v7959_v63 = vpop.f32.mrf.mxu1 }
 0x221   :  { %v1856_v55 = vsel %vm1092_vm8, %v7949_v59, -inf  ;;  %v7953_v54 = vpop.f32.mrf.mxu0 }
 0x222   :  { %1857 = vmax.xlane.f32.xlu2 %v1856_v55  ;;  %v1838_v56 = vsel %vm1092_vm8, %v7953_v54, -inf  ;;  %v1865_v55 = vsel %vm1092_vm8, %v7959_v63, -inf }
 0x223   :  { %1836 = vmax.xlane.f32.xlu0 %v1835_v17  ;;  %1839 = vmax.xlane.f32.xlu1 %v1838_v56 }
 0x224   :  { %v7961_v26 = vpop.f32.mrf.mxu3 }
 0x225   :  { %v1847_v17 = vsel %vm1092_vm8, %v7961_v26, -inf }
 0x228   :  { %v7963_v8 = vpop.f32.mrf.mxu2 }
 0x229   :  { %v1868_v7 = vsel %vm1092_vm8, %v7963_v8, -inf  ;;  %v7967_v40 = vpop.f32.mrf.mxu0 }
 0x22a   :  { %1869 = vmax.xlane.f32.xlu2 %v1868_v7  ;;  %v1850_v56 = vsel %vm1092_vm8, %v7967_v40, -inf  ;;  %v1105_v7 = vsel %vm1092_vm8, %v7897_v46, -inf }
 0x22b   :  { %1866 = vmax.xlane.f32.xlu0 %v1865_v55  ;;  %1848 = vmax.xlane.f32.xlu1 %v1847_v17 }
 0x22c   :  { %v7981_v1 = vpop.f32.mrf.mxu3 }
 0x22d   :  { %v1859_v55 = vsel %vm1092_vm8, %v7981_v1, -inf }
 0x231   :  { %v7975_v61 = vpop.f32.mrf.mxu0 }
 0x232   :  { %1851 = vmax.xlane.f32.xlu2 %v1850_v56  ;;  %v1862_v21 = vsel %vm1092_vm8, %v7975_v61, -inf }
 0x233   :  { %1136 = vmax.xlane.f32.xlu0 %v1135_v39  ;;  %1106 = vmax.xlane.f32.xlu1 %v1105_v7  ;;  %v1132_v7 = vsel %vm1092_vm8, %v7911_v62, -inf }
 0x234   :  { %v7991_v39 = vpop.f32.mrf.mxu3 }
 0x235   :  { %v1871_v38 = vsel %vm1092_vm8, %v7991_v39, -inf }
 0x239   :  { %v7985_v17 = vpop.f32.mrf.mxu0 }
 0x23a   :  { %1860 = vmax.xlane.f32.xlu2 %v1859_v55  ;;  %v1874_v56 = vsel %vm1092_vm8, %v7985_v17, -inf  ;;  %v1114_v55 = vsel %vm1092_vm8, %v7907_v13, -inf }
 0x23b   :  { %1863 = vmax.xlane.f32.xlu0 %v1862_v21  ;;  %1875 = vmax.xlane.f32.xlu1 %v1874_v56  ;;  %v1126_v21 = vsel %vm1092_vm8, %v7931_v43, -inf  ;;  %v1117_v56 = vsel %vm1092_vm8, %v7919_v58, -inf }
 0x242   :  { %1133 = vmax.xlane.f32.xlu2 %v1132_v7  ;;  %v1129_v7 = vsel %vm1092_vm8, %v7903_v42, -inf }
 0x243   :  { %1872 = vmax.xlane.f32.xlu0 %v1871_v38 }
 0x24a   :  { %1115 = vmax.xlane.f32.xlu2 %v1114_v55 }
 0x24b   :  { %1127 = vmax.xlane.f32.xlu0 %v1126_v21 }
 0x252   :  { %1118 = vmax.xlane.f32.xlu2 %v1117_v56 }
 0x253   :  { %1139 = vmax.xlane.f32.xlu0 %v1138_v14 }
 0x25a   :  { %1130 = vmax.xlane.f32.xlu2 %v1129_v7 }
 0x25d   :  { %v1098_v38 = vpop.xlane.xlu0 %1097 }
 0x25e   :  { %v1142_v47 = vsub.f32 %v7875_v50, %v1098_v38 }
 0x260   :  { %v1159_v55 = vmul.f32 1.442695, %v1142_v47 }
 0x261   :  { %v8010_v21 = vpop.xlane.xlu1 %1094 }
 0x262   :  { %6833 = vpow2.f32 %v1159_v55 }
 0x265   :  { %v8014_v53 = vpop.xlane.xlu2 %1103 }
 0x268   :  { %v8008_v16 = vpop.eup %6833 }
 0x269   :  { %10529 = vst [vmem:[#allocation50_spill] sm:$0xff] %v8008_v16  ;;  %v1192_v56 = vsel %vm1092_vm8, %v8008_v16, 0.0  ;;  %v1101_v14 = vpop.xlane.xlu1 %1100 }
 0x26a   :  { %1193 = vadd.xlane.f32.xlu2 %v1192_v56 }
 0x271   :  { %v1110_v27 = vpop.xlane.xlu1 %1109 }
 0x273   :  { %v8016_v45 = vpop.xlane.xlu2 %1121 }
 0x27b   :  { %v8019_v47 = vpop.xlane.xlu2 %1112 }
 0x27d   :  { %v1831_v7 = vpop.xlane.xlu0 %1830 }
 0x27e   :  { %v1877_v23 = vsub.f32 %v7913_v0, %v1831_v7 }
 0x280   :  { %v1893_v50 = vmul.f32 1.442695, %v1877_v23 }
 0x282   :  { %6835 = vpow2.f32 %v1893_v50 }
 0x285   :  { %v1843_v38 = vpop.xlane.xlu1 %1842  ;;  %v8021_v55 = vpop.xlane.xlu0 %1124 }
 0x286   :  { %v1881_v4 = vsub.f32 %v7925_v28, %v1843_v38 }
 0x288   :  { %v8023_v6 = vpop.eup %6835 }
 0x289   :  { %v1925_v56 = vsel %vm1092_vm8, %v8023_v6, 0.0 }
 0x28a   :  { %1926 = vadd.xlane.f32.xlu0 %v1925_v56 }
 0x28d   :  { %v8027_v16 = vpop.xlane.xlu2 %1854  ;;  %v1846_v18 = vpop.xlane.xlu1 %1845 }
 0x28e   :  { %v1834_v32 = vpop.xlane.xlu0 %1833  ;;  %v1882_v23 = vsub.f32 %v7935_v19, %v1846_v18 }
 0x28f   :  { %v1878_v12 = vsub.f32 %v7923_v3, %v1834_v32  ;;  %v1901_v3 = vmul.f32 1.442695, %v1881_v4 }
 0x290   :  { %v1903_v50 = vmul.f32 1.442695, %v1882_v23 }
 0x291   :  { %v1895_v0 = vmul.f32 1.442695, %v1878_v12 }
 0x293   :  { %6837 = vpow2.f32 %v1895_v0 }
 0x294   :  { %6839 = vpow2.f32 %v1903_v50 }
 0x295   :  { %v1858_v7 = vpop.xlane.xlu2 %1857 }
 0x296   :  { %v1837_v41 = vpop.xlane.xlu0 %1836  ;;  %v1840_v10 = vpop.xlane.xlu1 %1839  ;;  %v1886_v30 = vsub.f32 %v7949_v59, %v1858_v7 }
 0x297   :  { %v1879_v11 = vsub.f32 %v7947_v24, %v1837_v41 }
 0x298   :  { %v1911_v12 = vmul.f32 1.442695, %v1886_v30 }
 0x299   :  { %v1897_v2 = vmul.f32 1.442695, %v1879_v11  ;;  %v8033_v56 = vpop.eup %6837  ;;  %v1880_v11 = vsub.f32 %v7953_v54, %v1840_v10 }
 0x29a   :  { %v1928_v32 = vsel %vm1092_vm8, %v8033_v56, 0.0  ;;  %v8042_v24 = vpop.eup %6839 }
 0x29b   :  { %6841 = vpow2.f32 %v1897_v2  ;;  %1929 = vadd.xlane.f32.xlu0 %v1928_v32  ;;  %v1143_v2 = vsub.f32 %v7889_v25, %v1101_v14  ;;  %v1940_v30 = vsel %vm1092_vm8, %v8042_v24, 0.0  ;;  %v1899_v4 = vmul.f32 1.442695, %v1880_v11 }
 0x29c   :  { %6843 = vpow2.f32 %v1911_v12  ;;  %v1146_v25 = vsub.f32 %v7895_v9, %v1110_v27 }
 0x29d   :  { %v8038_v18 = vpop.xlane.xlu2 %1869  ;;  %6845 = vpow2.f32 %v1901_v3  ;;  %v1161_v0 = vmul.f32 1.442695, %v1143_v2 }
 0x29e   :  { %v8040_v19 = vpop.xlane.xlu0 %1866  ;;  %v1849_v41 = vpop.xlane.xlu1 %1848  ;;  %6847 = vpow2.f32 %v1899_v4  ;;  %v1167_v12 = vmul.f32 1.442695, %v1146_v25 }
 0x29f   :  { %v1883_v14 = vsub.f32 %v7961_v26, %v1849_v41  ;;  %6849 = vpow2.f32 %v1161_v0  ;;  %v1885_v41 = vsub.f32 %v7937_v37, %v8027_v16 }
 0x2a0   :  { %6851 = vpow2.f32 %v1167_v12 }
 0x2a1   :  { %v8044_v59 = vpop.eup %6841  ;;  %v1905_v3 = vmul.f32 1.442695, %v1883_v14  ;;  %v1909_v25 = vmul.f32 1.442695, %v1885_v41 }
 0x2a2   :  { %v1931_v28 = vsel %vm1092_vm8, %v8044_v59, 0.0  ;;  %v8056_v7 = vpop.eup %6843 }
 0x2a3   :  { %1932 = vadd.xlane.f32.xlu1 %v1931_v28  ;;  %1941 = vadd.xlane.f32.xlu0 %v1940_v30  ;;  %v8060_v10 = vpop.eup %6845  ;;  %v1952_v50 = vsel %vm1092_vm8, %v8056_v7, 0.0  ;;  %6853 = vpow2.f32 %v1905_v3  ;;  %v1890_v3 = vsub.f32 %v7963_v8, %v8038_v18 }
 0x2a4   :  { %v1937_v32 = vsel %vm1092_vm8, %v8060_v10, 0.0  ;;  %v8069_v30 = vpop.eup %6847 }
 0x2a5   :  { %v8052_v38 = vpop.xlane.xlu2 %1851  ;;  %v8071_v9 = vpop.eup %6849  ;;  %v1934_v0 = vsel %vm1092_vm8, %v8069_v30, 0.0 }
 0x2a6   :  { %v8054_v23 = vpop.xlane.xlu0 %1136  ;;  %v8058_v54 = vpop.xlane.xlu1 %1106 }
 0x2ab   :  { %1953 = vadd.xlane.f32.xlu1 %v1952_v50  ;;  %1938 = vadd.xlane.f32.xlu0 %v1937_v32  ;;  %v8082_v50 = vpop.eup %6851 }
 0x2ac   :  { %v8084_v16 = vpop.eup %6853  ;;  %v1204_v8 = vsel %vm1092_vm8, %v8082_v50, 0.0 }
 0x2ad   :  { %v1861_v11 = vpop.xlane.xlu2 %1860  ;;  %v1943_v41 = vsel %vm1092_vm8, %v8084_v16, 0.0 }
 0x2ae   :  { %v1887_v2 = vsub.f32 %v7981_v1, %v1861_v11  ;;  %v1864_v28 = vpop.xlane.xlu0 %1863  ;;  %v1876_v27 = vpop.xlane.xlu1 %1875  ;;  %v1195_v1 = vsel %vm1092_vm8, %v8071_v9, 0.0 }
 0x2af   :  { %v1892_v4 = vsub.f32 %v7985_v17, %v1876_v27  ;;  %v1888_v11 = vsub.f32 %v7975_v61, %v1864_v28 }
 0x2b0   :  { %v1913_v26 = vmul.f32 1.442695, %v1887_v2 }
 0x2b1   :  { %v1923_v32 = vmul.f32 1.442695, %v1892_v4  ;;  %v1915_v61 = vmul.f32 1.442695, %v1888_v11 }
 0x2b2   :  { %6855 = vpow2.f32 %v1913_v26  ;;  %v1141_v26 = vsub.f32 %v7881_v44, %v8010_v21  ;;  %v1889_v44 = vsub.f32 %v7959_v63, %v8040_v19 }
 0x2b3   :  { %1935 = vadd.xlane.f32.xlu1 %v1934_v0  ;;  %1196 = vadd.xlane.f32.xlu0 %v1195_v1  ;;  %6857 = vpow2.f32 %v1909_v25  ;;  %v1884_v1 = vsub.f32 %v7967_v40, %v8052_v38  ;;  %v1155_v25 = vsub.f32 %v7933_v15, %v8054_v23 }
 0x2b4   :  { %6859 = vpow2.f32 %v1923_v32  ;;  %v1157_v28 = vmul.f32 1.442695, %v1141_v26  ;;  %v1917_v19 = vmul.f32 1.442695, %v1889_v44  ;;  %v1150_v44 = vsub.f32 %v7901_v48, %v8016_v45 }
 0x2b5   :  { %v8080_v14 = vpop.xlane.xlu2 %1133 }
 0x2b6   :  { %v1873_v12 = vpop.xlane.xlu0 %1872  ;;  %v1175_v45 = vmul.f32 1.442695, %v1150_v44 }
 0x2b7   :  { %v1891_v37 = vsub.f32 %v7991_v39, %v1873_v12  ;;  %v1919_v39 = vmul.f32 1.442695, %v1890_v3  ;;  %v1185_v3 = vmul.f32 1.442695, %v1155_v25 }
 0x2b8   :  { %v8087_v17 = vpop.eup %6855 }
 0x2b9   :  { %v1921_v2 = vmul.f32 1.442695, %v1891_v37  ;;  %v1955_v27 = vsel %vm1092_vm8, %v8087_v17, 0.0  ;;  %v8102_v4 = vpop.eup %6857  ;;  %v1907_v37 = vmul.f32 1.442695, %v1884_v1  ;;  %v1154_v1 = vsub.f32 %v7911_v62, %v8080_v14 }
 0x2ba   :  { %1956 = vadd.xlane.f32.xlu2 %v1955_v27  ;;  %v8104_v0 = vpop.eup %6859  ;;  %v1949_v32 = vsel %vm1092_vm8, %v8102_v4, 0.0  ;;  %v1151_v27 = vsub.f32 %v7921_v33, %v8021_v55 }
 0x2bb   :  { %6861 = vpow2.f32 %v1921_v2  ;;  %1944 = vadd.xlane.f32.xlu1 %v1943_v41  ;;  %1205 = vadd.xlane.f32.xlu0 %v1204_v8  ;;  %10530 = vst [vmem:[#allocation51_spill] sm:$0xff] %v8104_v0  ;;  %v1970_v63 = vsel %vm1092_vm8, %v8104_v0, 0.0  ;;  %v1147_v2 = vsub.f32 %v7909_v49, %v8019_v47  ;;  %v1183_v48 = vmul.f32 1.442695, %v1154_v1 }
 0x2bc   :  { %6863 = vpow2.f32 %v1919_v39  ;;  %v1177_v47 = vmul.f32 1.442695, %v1151_v27 }
 0x2bd   :  { %v8100_v18 = vpop.xlane.xlu2 %1115  ;;  %6865 = vpow2.f32 %v1915_v61  ;;  %v1169_v49 = vmul.f32 1.442695, %v1147_v2 }
 0x2be   :  { %6867 = vpow2.f32 %v1157_v28  ;;  %v8120_v40 = vpop.xlane.xlu0 %1127 }
 0x2bf   :  { %6869 = vpow2.f32 %v1917_v19 }
 0x2c0   :  { %6871 = vpow2.f32 %v1907_v37  ;;  %v1144_v37 = vsub.f32 %v7885_v31, %v8014_v53 }
 0x2c1   :  { %v8108_v21 = vpop.eup %6861  ;;  %6873 = vpow2.f32 %v1185_v3  ;;  %v1148_v3 = vsub.f32 %v7907_v13, %v8100_v18  ;;  %v1145_v18 = vsub.f32 %v7897_v46, %v8058_v54 }
 0x2c2   :  { %v1967_v12 = vsel %vm1092_vm8, %v8108_v21, 0.0  ;;  %v8122_v38 = vpop.eup %6863  ;;  %6875 = vpow2.f32 %v1169_v49 }
 0x2c3   :  { %1950 = vadd.xlane.f32.xlu1 %v1949_v32  ;;  %1968 = vadd.xlane.f32.xlu2 %v1967_v12  ;;  %v8124_v15 = vpop.eup %6865  ;;  %v1964_v41 = vsel %vm1092_vm8, %v8122_v38, 0.0  ;;  %6877 = vpow2.f32 %v1177_v47  ;;  %v1171_v53 = vmul.f32 1.442695, %v1148_v3 }
 0x2c4   :  { %1971 = vadd.xlane.f32.xlu0 %v1970_v63  ;;  %v8126_v11 = vpop.eup %6867  ;;  %v1958_v8 = vsel %vm1092_vm8, %v8124_v15, 0.0 }
 0x2c5   :  { %v1119_v23 = vpop.xlane.xlu2 %1118  ;;  %v1189_v39 = vsel %vm1092_vm8, %v8126_v11, 0.0  ;;  %v8139_v61 = vpop.eup %6869 }
 0x2c6   :  { %v1149_v26 = vsub.f32 %v7919_v58, %v1119_v23  ;;  %v8141_v55 = vpop.eup %6871  ;;  %v1140_v58 = vpop.xlane.xlu0 %1139  ;;  %v1961_v12 = vsel %vm1092_vm8, %v8139_v61, 0.0 }
 0x2c7   :  { %v8143_v28 = vpop.eup %6873  ;;  %v1156_v25 = vsub.f32 %v7943_v60, %v1140_v58  ;;  %v1946_v32 = vsel %vm1092_vm8, %v8141_v55, 0.0  ;;  %v1165_v58 = vmul.f32 1.442695, %v1145_v18 }
 0x2c8   :  { %v1173_v33 = vmul.f32 1.442695, %v1149_v26  ;;  %10531 = vst [vmem:[#allocation52_spill] sm:$0xff] %v8143_v28  ;;  %v1231_v63 = vsel %vm1092_vm8, %v8143_v28, 0.0  ;;  %v8156_v19 = vpop.eup %6875  ;;  %v1163_v26 = vmul.f32 1.442695, %v1144_v37 }
 0x2c9   :  { %v1187_v62 = vmul.f32 1.442695, %v1156_v25  ;;  %v8158_v14 = vpop.eup %6877  ;;  %v1207_v23 = vsel %vm1092_vm8, %v8156_v19, 0.0 }
 0x2ca   :  { %6879 = vpow2.f32 %v1173_v33  ;;  %10532 = vst [vmem:[#allocation53_spill] sm:$0xff] %v8158_v14  ;;  %v1219_v2 = vsel %vm1092_vm8, %v8158_v14, 0.0 }
 0x2cb   :  { %1965 = vadd.xlane.f32.xlu1 %v1964_v41  ;;  %1959 = vadd.xlane.f32.xlu2 %v1958_v8  ;;  %6881 = vpow2.f32 %v1175_v45 }
 0x2cc   :  { %1190 = vadd.xlane.f32.xlu0 %v1189_v39  ;;  %6883 = vpow2.f32 %v1183_v48 }
 0x2cd   :  { %6885 = vpow2.f32 %v1187_v62  ;;  %v1131_v41 = vpop.xlane.xlu2 %1130 }
 0x2ce   :  { %6887 = vpow2.f32 %v1163_v26  ;;  %v1153_v39 = vsub.f32 %v7903_v42, %v1131_v41  ;;  %v1152_v42 = vsub.f32 %v7931_v43, %v8120_v40 }
 0x2cf   :  { %6889 = vpow2.f32 %v1171_v53 }
 0x2d0   :  { %v8160_v60 = vpop.eup %6879  ;;  %v1181_v44 = vmul.f32 1.442695, %v1153_v39  ;;  %6891 = vpow2.f32 %v1165_v58 }
 0x2d1   :  { %10533 = vst [vmem:[#allocation54_spill] sm:$0xff] %v8160_v60  ;;  %v1213_v27 = vsel %vm1092_vm8, %v8160_v60, 0.0  ;;  %v8172_v31 = vpop.eup %6881 }
 0x2d2   :  { %10534 = vst [vmem:[#allocation55_spill] sm:$0xff] %v8172_v31  ;;  %v8174_v8 = vpop.eup %6883  ;;  %v1216_v49 = vsel %vm1092_vm8, %v8172_v31, 0.0  ;;  %6893 = vpow2.f32 %v1181_v44 }
 0x2d3   :  { %1947 = vadd.xlane.f32.xlu1 %v1946_v32  ;;  %1962 = vadd.xlane.f32.xlu2 %v1961_v12  ;;  %10535 = vst [vmem:[#allocation56_spill] sm:$0xff] %v8174_v8  ;;  %v8176_v13 = vpop.eup %6885  ;;  %v1228_v47 = vsel %vm1092_vm8, %v8174_v8, 0.0  ;;  %v1179_v32 = vmul.f32 1.442695, %v1152_v42 }
 0x2d4   :  { %1232 = vadd.xlane.f32.xlu0 %v1231_v63  ;;  %10536 = vst [vmem:[#allocation57_spill] sm:$0xff] %v8176_v13  ;;  %v1234_v33 = vsel %vm1092_vm8, %v8176_v13, 0.0  ;;  %v8187_v1 = vpop.eup %6887 }
 0x2d5   :  { %10537 = vst [vmem:[#allocation58_spill] sm:$0xff] %v8187_v1  ;;  %v8189_v46 = vpop.eup %6889  ;;  %v1198_v54 = vsel %vm1092_vm8, %v8187_v1, 0.0  ;;  %6895 = vpow2.f32 %v1179_v32 }
 0x2d6   :  { %10538 = vst [vmem:[#allocation59_spill] sm:$0xff] %v8189_v46  ;;  %v1210_v25 = vsel %vm1092_vm8, %v8189_v46, 0.0  ;;  %v8197_v12 = vpop.eup %6891  ;;  %v10559_v46 = vld [vmem:[#allocation44_spill] sm:$0xff] }
 0x2d7   :  { %10539 = vst [vmem:[#allocation60_spill] sm:$0xff] %v8197_v12  ;;  %v1201_v45 = vsel %vm1092_vm8, %v8197_v12, 0.0 }
 0x2d8   :  { %v8199_v63 = vpop.eup %6893 }
 0x2d9   :  { %10540 = vst [vmem:[#allocation61_spill] sm:$0xff] %v8199_v63  ;;  %v1225_v43 = vsel %vm1092_vm8, %v8199_v63, 0.0  ;;  %v10560_v63 = vld [vmem:[#allocation41_spill] sm:$0xff] }
 0x2db   :  { %1208 = vadd.xlane.f32.xlu1 %v1207_v23  ;;  %1220 = vadd.xlane.f32.xlu2 %v1219_v2  ;;  %v8205_v40 = vpop.eup %6895 }
 0x2dc   :  { %1214 = vadd.xlane.f32.xlu0 %v1213_v27  ;;  %10541 = vst [vmem:[#allocation62_spill] sm:$0xff] %v8205_v40  ;;  %v1222_v48 = vsel %vm1092_vm8, %v8205_v40, 0.0 }
 0x2e3   :  { %1217 = vadd.xlane.f32.xlu1 %v1216_v49  ;;  %1229 = vadd.xlane.f32.xlu2 %v1228_v47 }
 0x2e4   :  { %1235 = vadd.xlane.f32.xlu0 %v1234_v33  ;;  %v2422_v33 = vrot.slane %v7718_v5, 4 }
 0x2eb   :  { %1199 = vadd.xlane.f32.xlu1 %v1198_v54  ;;  %1211 = vadd.xlane.f32.xlu2 %v1210_v25 }
 0x2f3   :  { %1202 = vadd.xlane.f32.xlu1 %v1201_v45  ;;  %1226 = vadd.xlane.f32.xlu2 %v1225_v43 }
 0x2fb   :  { %1223 = vadd.xlane.f32.xlu1 %v1222_v48 }
 0x2fd   :  { %v1927_v62 = vpop.xlane.xlu0 %1926 }
 0x2fe   :  { %6897 = vrcp.f32 %v1927_v62  ;;  %v1984_v2 = vand.u32 2147483648, %v1927_v62  ;;  %v1982_v26 = vand.u32 2147483647, %v1927_v62  ;;  %vm1978_vm10 = vweird.f32 %v1927_v62 }
 0x300   :  { %v1985_v41 = vor.u32 1.1754944e-38, %v1984_v2  ;;  %vm1983_vm12 = vcmp.eq.f32.partialorder %v1982_v26, 8.507059e+37 }
 0x304   :  { %v6898_v37 = vpop.eup %6897 }
 0x305   :  { %v1974_v3 = vmul.f32 %v6898_v37, %v1927_v62  ;;  %vm1979_vm9 = vweird.f32 %v6898_v37 }
 0x306   :  { %vm1980_vm11 = vmor %vm1978_vm10, %vm1979_vm9 }
 0x307   :  { %v1975_v23 = vsub.f32 1.0, %v1974_v3 }
 0x309   :  { %v1976_v27 = vmul.f32 %v6898_v37, %v1975_v23 }
 0x30b   :  { %v1977_v53 = vadd.f32 %v6898_v37, %v1976_v27 }
 0x30d   :  { %v1981_v18 = vsel %vm1980_vm11, %v6898_v37, %v1977_v53 }
 0x30e   :  { %v1986_v39 = vsel %vm1983_vm12, %v1985_v41, %v1981_v18  ;;  %v1930_v49 = vpop.xlane.xlu0 %1929  ;;  %v8221_v41 = vrot.slane %v7722_v35, 2 }
 0x30f   :  { %v1987_v47 = vmul.f32 %v8023_v6, %v1986_v39  ;;  %6899 = vrcp.f32 %v1930_v49  ;;  %v1999_v32 = vand.u32 2147483648, %v1930_v49  ;;  %v1997_v43 = vand.u32 2147483647, %v1930_v49  ;;  %v8213_v6 = vpop.xlane.xlu2 %1193 }
 0x310   :  { %vm1993_vm15 = vweird.f32 %v1930_v49  ;;  %v2448_v35 = vrot.slane %v8221_v41, 4 }
 0x311   :  { %6468 = vmatmul.msk.f32.vlgmr.msra.gmra.mxu1 %vm2214_vm13, %v1987_v47  ;;  %v2000_v3 = vor.u32 1.1754944e-38, %v1999_v32  ;;  %vm1998_vm3 = vcmp.eq.f32.partialorder %v1997_v43, 8.507059e+37 }
 0x312   :  { %6483 = vmatpush.msk.msra.mxu1 %vm570_vm2, %v2422_v33 }
 0x315   :  { %v6900_v58 = vpop.eup %6899 }
 0x316   :  { %v1933_v44 = vpop.xlane.xlu1 %1932  ;;  %v1989_v42 = vmul.f32 %v6900_v58, %v1930_v49  ;;  %v1942_v54 = vpop.xlane.xlu0 %1941  ;;  %vm1994_vm14 = vweird.f32 %v6900_v58 }
 0x317   :  { %6901 = vrcp.f32 %v1933_v44  ;;  %vm1995_vm0 = vmor %vm1993_vm15, %vm1994_vm14  ;;  %v2012_v49 = vand.u32 2147483647, %v1933_v44  ;;  %v2057_v32 = vand.u32 2147483647, %v1942_v54  ;;  %vm2008_vm6 = vweird.f32 %v1933_v44 }
 0x318   :  { %6903 = vrcp.f32 %v1942_v54  ;;  %v1990_v25 = vsub.f32 1.0, %v1989_v42  ;;  %v2059_v42 = vand.u32 2147483648, %v1942_v54  ;;  %vm2053_vm9 = vweird.f32 %v1942_v54 }
 0x319   :  { %vm2013_vm11 = vcmp.eq.f32.partialorder %v2012_v49, 8.507059e+37  ;;  %vm2058_vm12 = vcmp.eq.f32.partialorder %v2057_v32, 8.507059e+37 }
 0x31a   :  { %v1991_v45 = vmul.f32 %v6900_v58, %v1990_v25 }
 0x31c   :  { %v1992_v62 = vadd.f32 %v6900_v58, %v1991_v45 }
 0x31d   :  { %v6902_v48 = vpop.eup %6901 }
 0x31e   :  { %v6904_v37 = vpop.eup %6903  ;;  %v2004_v23 = vmul.f32 %v6902_v48, %v1933_v44  ;;  %v8215_v2 = vpop.xlane.xlu1 %1953  ;;  %v1996_v27 = vsel %vm1995_vm0, %v6900_v58, %v1992_v62  ;;  %vm2009_vm4 = vweird.f32 %v6902_v48  ;;  %v2014_v58 = vand.u32 2147483648, %v1933_v44 }
 0x31f   :  { %v2049_v26 = vmul.f32 %v6904_v37, %v1942_v54  ;;  %6905 = vrcp.f32 %v8215_v2  ;;  %v8218_v53 = vpop.xlane.xlu0 %1938  ;;  %v2001_v18 = vsel %vm1998_vm3, %v2000_v3, %v1996_v27  ;;  %vm2054_vm5 = vweird.f32 %v6904_v37  ;;  %vm8235_vm7 = vmor %vm2008_vm6, %vm2009_vm4 }
 0x320   :  { %6907 = vrcp.f32 %v8213_v6  ;;  %v2005_v39 = vsub.f32 1.0, %v2004_v23  ;;  %v2002_v45 = vmul.f32 %v8033_v56, %v2001_v18  ;;  %v8230_v3 = vrot.slane %v7726_v34, 4  ;;  %vm2055_vm10 = vmor %vm2053_vm9, %vm2054_vm5 }
 0x321   :  { %v2050_v47 = vsub.f32 1.0, %v2049_v26  ;;  %6909 = vrcp.f32 %v8218_v53  ;;  %v8233_v23 = vrot.slane %v7778_v36, 2  ;;  %v2015_v18 = vor.u32 1.1754944e-38, %v2014_v58 }
 0x322   :  { %v2006_v33 = vmul.f32 %v6902_v48, %v2005_v39  ;;  %6470 = vmatmul.msk.f32.vlgmr.msrb.gmra.mxu2 %vm2214_vm13, %v2002_v45  ;;  %v2060_v34 = vor.u32 1.1754944e-38, %v2059_v42  ;;  %v2474_v42 = vrot.slane %v8230_v3, 4  ;;  %v2119_v49 = vand.u32 2147483648, %v8215_v2 }
 0x323   :  { %v2051_v25 = vmul.f32 %v6904_v37, %v2050_v47  ;;  %6485 = vmatpush.msk.msrb.mxu2 %vm570_vm2, %v2448_v35  ;;  %vm2113_vm0 = vweird.f32 %v8215_v2  ;;  %vm2038_vm4 = vweird.f32 %v8218_v53 }
 0x324   :  { %v2007_v43 = vadd.f32 %v6902_v48, %v2006_v33 }
 0x325   :  { %v8227_v62 = vpop.eup %6905  ;;  %v2052_v26 = vadd.f32 %v6904_v37, %v2051_v25 }
 0x326   :  { %v8240_v56 = vpop.eup %6907  ;;  %v2011_v44 = vsel %vm8235_vm7, %v6902_v48, %v2007_v43  ;;  %v2109_v36 = vmul.f32 %v8227_v62, %v8215_v2  ;;  %v8248_v39 = vpop.xlane.xlu1 %1935  ;;  %vm2114_vm14 = vweird.f32 %v8227_v62 }
 0x327   :  { %v6910_v47 = vpop.eup %6909  ;;  %v2056_v54 = vsel %vm2055_vm10, %v6904_v37, %v2052_v26  ;;  %6911 = vrcp.f32 %v8248_v39  ;;  %v2016_v33 = vsel %vm2013_vm11, %v2015_v18, %v2011_v44  ;;  %v8252_v45 = vpop.xlane.xlu0 %1196  ;;  %v1253_v43 = vmul.f32 %v8240_v56, %v8213_v6  ;;  %vm8272_vm3 = vmor %vm2113_vm0, %vm2114_vm14 }
 0x328   :  { %v2061_v25 = vsel %vm2058_vm12, %v2060_v34, %v2056_v54  ;;  %v2110_v48 = vsub.f32 1.0, %v2109_v36  ;;  %v2034_v58 = vmul.f32 %v6910_v47, %v8218_v53  ;;  %v2552_v37 = vrot.slane %v8233_v23, 4 }
 0x329   :  { %v2017_v32 = vmul.f32 %v8044_v59, %v2016_v33  ;;  %v2062_v26 = vmul.f32 %v8042_v24, %v2061_v25  ;;  %vm2039_vm15 = vweird.f32 %v6910_v47  ;;  %v2044_v34 = vand.u32 2147483648, %v8218_v53 }
 0x32a   :  { %v2111_v35 = vmul.f32 %v8227_v62, %v2110_v48  ;;  %v2035_v27 = vsub.f32 1.0, %v2034_v58  ;;  %v2117_v54 = vand.u32 2147483647, %v8215_v2  ;;  %v2042_v48 = vand.u32 2147483647, %v8218_v53  ;;  %vm2040_vm5 = vmor %vm2038_vm4, %vm2039_vm15 }
 0x32b   :  { %6472 = vmatmul.msk.f32.vlgmr.msra.gmra.mxu3 %vm2214_vm13, %v2017_v32  ;;  %6478 = vmatmul.msk.f32.vlgmr.msra.gmra.mxu2 %vm2214_vm13, %v2062_v26  ;;  %v1254_v58 = vsub.f32 1.0, %v1253_v43  ;;  %v2120_v53 = vor.u32 1.1754944e-38, %v2119_v49  ;;  %v2045_v32 = vor.u32 1.1754944e-38, %v2044_v34  ;;  %vm1258_vm10 = vweird.f32 %v8240_v56 }
 0x32c   :  { %v2112_v44 = vadd.f32 %v8227_v62, %v2111_v35  ;;  %v2036_v18 = vmul.f32 %v6910_v47, %v2035_v27  ;;  %6487 = vmatpush.msk.msra.mxu3 %vm570_vm2, %v2474_v42  ;;  %6493 = vmatpush.msk.msra.mxu2 %vm570_vm2, %v2552_v37  ;;  %vm2118_vm6 = vcmp.eq.f32.partialorder %v2117_v54, 8.507059e+37  ;;  %vm2043_vm7 = vcmp.eq.f32.partialorder %v2042_v48, 8.507059e+37 }
 0x32d   :  { %v8265_v36 = vpop.eup %6911  ;;  %v8283_v25 = vpop.xlane.xlu2 %1956  ;;  %v1255_v24 = vmul.f32 %v8240_v56, %v1254_v58  ;;  %vm2023_vm11 = vweird.f32 %v8248_v39  ;;  %vm1257_vm14 = vweird.f32 %v8213_v6 }
 0x32e   :  { %v2037_v59 = vadd.f32 %v6910_v47, %v2036_v18  ;;  %v2019_v33 = vmul.f32 %v8265_v36, %v8248_v39  ;;  %v8281_v2 = vpop.xlane.xlu1 %1944  ;;  %v2116_v35 = vsel %vm8272_vm3, %v8227_v62, %v2112_v44  ;;  %v10550_v62 = vld [vmem:[#allocation39_spill] sm:$0xff]  ;;  %vm2024_vm9 = vweird.f32 %v8265_v36  ;;  %vm8358_vm15 = vmor %vm1257_vm14, %vm1258_vm10 }
 0x32f   :  { %6913 = vrcp.f32 %v8281_v2  ;;  %v2121_v42 = vsel %vm2118_vm6, %v2120_v53, %v2116_v35  ;;  %v8292_v43 = vpop.xlane.xlu0 %1205  ;;  %v10546_v35 = vld [vmem:[#allocation36_spill] sm:$0xff]  ;;  %v8316_v49 = vrot.slane %v10550_v62, 4  ;;  %v2029_v62 = vand.u32 2147483648, %v8248_v39  ;;  %vm8341_vm12 = vmor %vm2023_vm11, %vm2024_vm9 }
 0x330   :  { %v2041_v27 = vsel %vm2040_vm5, %v6910_v47, %v2037_v59  ;;  %v2020_v26 = vsub.f32 1.0, %v2019_v33  ;;  %6915 = vrcp.f32 %v8252_v45  ;;  %v2656_v47 = vrot.slane %v7761_v57, 2  ;;  %v10556_v33 = vld [vmem:[#allocation43_spill] sm:$0xff] }
 0x331   :  { %v2046_v37 = vsel %vm2043_vm7, %v2045_v32, %v2041_v27  ;;  %6917 = vrcp.f32 %v8283_v25  ;;  %v2122_v59 = vmul.f32 %v8056_v7, %v2121_v42  ;;  %v8307_v53 = vrot.slane %v10546_v35, 6  ;;  %v10548_v27 = vld [vmem:[#allocation38_spill] sm:$0xff]  ;;  %10551 = vst [vmem:[#allocation39_spill] sm:$0xff] %v8316_v49  ;;  %v10552_v7 = vld [vmem:[#allocation40_spill] sm:$0xff] }
 0x332   :  { %v2021_v18 = vmul.f32 %v8265_v36, %v2020_v26  ;;  %v2047_v48 = vmul.f32 %v8060_v10, %v2046_v37  ;;  %v2526_v32 = vrot.slane %v10548_v27, 4  ;;  %v8324_v42 = vrot.slane %v10552_v7, 6 }
 0x333   :  { %10547 = vst [vmem:[#allocation36_spill] sm:$0xff] %v8307_v53  ;;  %6486 = vmatmul.msk.f32.vlgmr.msrb.gmra.mxu2 %vm2214_vm13, %v2122_v59  ;;  %v1256_v37 = vadd.f32 %v8240_v56, %v1255_v24  ;;  %v2027_v59 = vand.u32 2147483647, %v8248_v39  ;;  %v1263_v24 = vand.u32 2147483648, %v8213_v6  ;;  %v1261_v39 = vand.u32 2147483647, %v8213_v6 }
 0x334   :  { %v2022_v10 = vadd.f32 %v8265_v36, %v2021_v18  ;;  %6476 = vmatmul.msk.f32.vlgmr.msrb.gmra.mxu1 %vm2214_vm13, %v2047_v48  ;;  %6501 = vmatpush.msk.msrb.mxu2 %vm570_vm2, %v2656_v47  ;;  %v2500_v47 = vrot.slane %v8307_v53, 4  ;;  %v2030_v44 = vor.u32 1.1754944e-38, %v2029_v62  ;;  %v2074_v8 = vand.u32 2147483648, %v8281_v2 }
 0x335   :  { %v8300_v54 = vpop.eup %6913  ;;  %6491 = vmatpush.msk.msrb.mxu1 %vm570_vm2, %v2526_v32  ;;  %v10555_v32 = vld [vmem:[#allocation42_spill] sm:$0xff]  ;;  %vm2028_vm0 = vcmp.eq.f32.partialorder %v2027_v59, 8.507059e+37  ;;  %v1264_v34 = vor.u32 1.1754944e-38, %v1263_v24  ;;  %vm1262_vm3 = vcmp.eq.f32.partialorder %v1261_v39, 8.507059e+37  ;;  %v1276_v39 = vand.u32 2147483647, %v8252_v45 }
 0x336   :  { %v2064_v58 = vmul.f32 %v8300_v54, %v8281_v2  ;;  %v8312_v26 = vpop.xlane.xlu1 %1950  ;;  %v8331_v18 = vpop.xlane.xlu2 %1968  ;;  %vm2069_vm4 = vweird.f32 %v8300_v54  ;;  %vm2068_vm5 = vweird.f32 %v8281_v2  ;;  %vm1272_vm7 = vweird.f32 %v8252_v45 }
 0x337   :  { %6919 = vrcp.f32 %v8312_v26  ;;  %v8333_v48 = vpop.eup %6915  ;;  %v8372_v7 = vpop.xlane.xlu0 %1971  ;;  %vm8403_vm6 = vmor %vm2068_vm5, %vm2069_vm4  ;;  %vm8428_vm10 = vcmp.eq.f32.partialorder %v1276_v39, 8.507059e+37  ;;  %v1323_v28 = vand.u32 2147483648, %v8292_v43 }
 0x338   :  { %v2065_v35 = vsub.f32 1.0, %v2064_v58  ;;  %6921 = vrcp.f32 %v8292_v43  ;;  %v8348_v13 = vpop.eup %6917  ;;  %v2026_v58 = vsel %vm8341_vm12, %v8265_v36, %v2022_v10  ;;  %v1268_v57 = vmul.f32 %v8333_v48, %v8252_v45 }
 0x339   :  { %v1260_v36 = vsel %vm8358_vm15, %v8240_v56, %v1256_v37  ;;  %v2031_v29 = vsel %vm2028_vm0, %v2030_v44, %v2026_v58  ;;  %v2124_v60 = vmul.f32 %v8348_v13, %v8283_v25  ;;  %6923 = vrcp.f32 %v8331_v18 }
 0x33a   :  { %v2066_v10 = vmul.f32 %v8300_v54, %v2065_v35  ;;  %v1265_v59 = vsel %vm1262_vm3, %v1264_v34, %v1260_v36  ;;  %v1269_v35 = vsub.f32 1.0, %v1268_v57  ;;  %v2032_v58 = vmul.f32 %v8069_v30, %v2031_v29 }
 0x33b   :  { %v2125_v62 = vsub.f32 1.0, %v2124_v60  ;;  %v1278_v36 = vand.u32 2147483648, %v8252_v45  ;;  %vm1273_vm9 = vweird.f32 %v8333_v48  ;;  %vm2128_vm12 = vweird.f32 %v8283_v25 }
 0x33c   :  { %v2067_v24 = vadd.f32 %v8300_v54, %v2066_v10  ;;  %v2072_v10 = vand.u32 2147483647, %v8281_v2  ;;  %6474 = vmatmul.msk.f32.vlgmr.msrb.gmra.mxu0 %vm2214_vm13, %v2032_v58  ;;  %v1270_v29 = vmul.f32 %v8333_v48, %v1269_v35  ;;  %v10564_v35 = vld [vmem:[#allocation50_spill] sm:$0xff]  ;;  %vm2129_vm14 = vweird.f32 %v8348_v13  ;;  %vm8458_vm3 = vmor %vm1272_vm7, %vm1273_vm9 }
 0x33d   :  { %v8366_v27 = vpop.eup %6919  ;;  %6489 = vmatpush.msk.msrb.mxu0 %vm570_vm2, %v2500_v47  ;;  %v8417_v58 = vmul.f32 %v10564_v35, %v1265_v59  ;;  %v2075_v47 = vor.u32 1.1754944e-38, %v2074_v8  ;;  %v2126_v44 = vmul.f32 %v8348_v13, %v2125_v62  ;;  %v1279_v59 = vor.u32 1.1754944e-38, %v1278_v36  ;;  %vm8477_vm5 = vmor %vm2128_vm12, %vm2129_vm14 }
 0x33e   :  { %v8377_v12 = vpop.xlane.xlu1 %1965  ;;  %v8380_v1 = vpop.eup %6921  ;;  %v2094_v40 = vmul.f32 %v8366_v27, %v8312_v26  ;;  %v2071_v2 = vsel %vm8403_vm6, %v8300_v54, %v2067_v24  ;;  %vm2073_vm11 = vcmp.eq.f32.partialorder %v2072_v10, 8.507059e+37  ;;  %v1271_v8 = vadd.f32 %v8333_v48, %v1270_v29 }
 0x33f   :  { %6925 = vrcp.f32 %v8377_v12  ;;  %v1313_v57 = vmul.f32 %v8380_v1, %v8292_v43  ;;  %v8396_v34 = vpop.xlane.xlu2 %1959  ;;  %v8419_v52 = vpop.eup %6923  ;;  %v2076_v62 = vsel %vm2073_vm11, %v2075_v47, %v2071_v2  ;;  %vm1317_vm0 = vweird.f32 %v8292_v43 }
 0x340   :  { %v2095_v37 = vsub.f32 1.0, %v2094_v40  ;;  %v2132_v40 = vand.u32 2147483647, %v8283_v25  ;;  %6927 = vrcp.f32 %v8372_v7  ;;  %v8433_v30 = vpop.xlane.xlu0 %1190  ;;  %v1321_v36 = vand.u32 2147483647, %v8292_v43 }
 0x341   :  { %v1314_v60 = vsub.f32 1.0, %v1313_v57  ;;  %v2134_v57 = vand.u32 2147483648, %v8283_v25  ;;  %v2127_v10 = vadd.f32 %v8348_v13, %v2126_v44  ;;  %v2184_v2 = vmul.f32 %v8419_v52, %v8331_v18 }
 0x342   :  { %v2096_v24 = vmul.f32 %v8366_v27, %v2095_v37  ;;  %vm8439_vm15 = vcmp.eq.f32.partialorder %v2132_v40, 8.507059e+37  ;;  %6929 = vrcp.f32 %v8396_v34  ;;  %vm2099_vm4 = vweird.f32 %v8366_v27 }
 0x343   :  { %v1315_v29 = vmul.f32 %v8380_v1, %v1314_v60  ;;  %v2077_v44 = vmul.f32 %v8084_v16, %v2076_v62  ;;  %v1275_v60 = vsel %vm8458_vm3, %v8333_v48, %v1271_v8  ;;  %v2135_v51 = vor.u32 1.1754944e-38, %v2134_v57 }
 0x344   :  { %v2097_v47 = vadd.f32 %v8366_v27, %v2096_v24  ;;  %v2104_v45 = vand.u32 2147483648, %v8312_v26  ;;  %vm1318_vm6 = vweird.f32 %v8380_v1  ;;  %vm2098_vm7 = vweird.f32 %v8312_v26 }
 0x345   :  { %v8425_v53 = vpop.eup %6925  ;;  %v2102_v16 = vand.u32 2147483647, %v8312_v26  ;;  %6480 = vmatmul.msk.f32.vlgmr.msrb.gmra.mxu3 %vm2214_vm13, %v2077_v44  ;;  %vm8485_vm9 = vmor %vm2098_vm7, %vm2099_vm4  ;;  %v2185_v62 = vsub.f32 1.0, %v2184_v2  ;;  %v2194_v25 = vand.u32 2147483648, %v8331_v18  ;;  %v10575_v35 = vrot.slane %v8316_v49, 4 }
 0x346   :  { %v8423_v56 = vpop.xlane.xlu1 %1947  ;;  %v2169_v37 = vmul.f32 %v8425_v53, %v8377_v12  ;;  %v8452_v40 = vpop.eup %6927  ;;  %v1316_v44 = vadd.f32 %v8380_v1, %v1315_v29  ;;  %vm8502_vm11 = vcmp.eq.f32.partialorder %v1321_v36, 8.507059e+37  ;;  %v2101_v14 = vsel %vm8485_vm9, %v8366_v27, %v2097_v47 }
 0x347   :  { %6931 = vrcp.f32 %v8423_v56  ;;  %v8471_v6 = vpop.xlane.xlu2 %1962  ;;  %v2199_v57 = vmul.f32 %v8452_v40, %v8372_v7  ;;  %6495 = vmatpush.msk.msrb.mxu3 %vm570_vm2, %v10575_v35  ;;  %v8514_v35 = vsel %vm8428_vm10, %v1279_v59, %v1275_v60  ;;  %v1324_v24 = vor.u32 1.1754944e-38, %v1323_v28  ;;  %vm8530_vm10 = vmor %vm1317_vm0, %vm1318_vm6 }
 0x348   :  { %v2170_v48 = vsub.f32 1.0, %v2169_v37  ;;  %6933 = vrcp.f32 %v8433_v30  ;;  %v2131_v37 = vsel %vm8477_vm5, %v8348_v13, %v2127_v10  ;;  %v8510_v0 = vpop.eup %6929  ;;  %v2105_v13 = vor.u32 1.1754944e-38, %v2104_v45  ;;  %v8522_v47 = vpop.xlane.xlu0 %1232 }
 0x349   :  { %6935 = vrcp.f32 %v8471_v6  ;;  %v2192_v10 = vand.u32 2147483647, %v8331_v18  ;;  %vm2103_vm12 = vcmp.eq.f32.partialorder %v2102_v16, 8.507059e+37  ;;  %vm2188_vm14 = vweird.f32 %v8331_v18 }
 0x34a   :  { %v2207_v29 = vand.u32 2147483647, %v8372_v7  ;;  %v2171_v27 = vmul.f32 %v8425_v53, %v2170_v48  ;;  %v2136_v54 = vsel %vm8439_vm15, %v2135_v51, %v2131_v37  ;;  %v2106_v59 = vsel %vm2103_vm12, %v2105_v13, %v2101_v14 }
 0x34b   :  { %v2186_v60 = vmul.f32 %v8419_v52, %v2185_v62  ;;  %v2200_v45 = vsub.f32 1.0, %v2199_v57  ;;  %v1320_v16 = vsel %vm8530_vm10, %v8380_v1, %v1316_v44  ;;  %v2195_v48 = vor.u32 1.1754944e-38, %v2194_v25 }
 0x34c   :  { %v2209_v39 = vand.u32 2147483648, %v8372_v7  ;;  %vm2189_vm15 = vweird.f32 %v8419_v52  ;;  %vm8544_vm0 = vcmp.eq.f32.partialorder %v2192_v10, 8.507059e+37  ;;  %vm2203_vm3 = vweird.f32 %v8372_v7 }
 0x34d   :  { %v8517_v36 = vpop.eup %6931  ;;  %v2177_v14 = vand.u32 2147483647, %v8377_v12  ;;  %v2139_v1 = vmul.f32 %v8510_v0, %v8396_v34  ;;  %6937 = vrcp.f32 %v8522_v47  ;;  %v2172_v25 = vadd.f32 %v8425_v53, %v2171_v27  ;;  %vm8595_vm7 = vmor %vm2188_vm14, %vm2189_vm15 }
 0x34e   :  { %v8496_v26 = vpop.xlane.xlu1 %1208  ;;  %v2079_v51 = vmul.f32 %v8517_v36, %v8423_v56  ;;  %v8541_v8 = vpop.eup %6933  ;;  %vm2174_vm4 = vweird.f32 %v8425_v53  ;;  %v2107_v57 = vmul.f32 %v8102_v4, %v2106_v59  ;;  %v2137_v37 = vmul.f32 %v8087_v17, %v2136_v54 }
 0x34f   :  { %v8553_v62 = vpop.eup %6935  ;;  %v2187_v44 = vadd.f32 %v8419_v52, %v2186_v60  ;;  %v2201_v13 = vmul.f32 %v8452_v40, %v2200_v45  ;;  %v2179_v10 = vand.u32 2147483648, %v8377_v12  ;;  %v8564_v31 = vpop.xlane.xlu2 %1220  ;;  %vm2173_vm5 = vweird.f32 %v8377_v12 }
 0x350   :  { %v2154_v28 = vmul.f32 %v8553_v62, %v8471_v6  ;;  %v2149_v27 = vand.u32 2147483648, %v8396_v34  ;;  %v2080_v49 = vsub.f32 1.0, %v2079_v51  ;;  %6484 = vmatmul.msk.f32.vlgmr.msra.gmra.mxu1 %vm2214_vm13, %v2107_v57  ;;  %6488 = vmatmul.msk.f32.vlgmr.msra.gmra.mxu3 %vm2214_vm13, %v2137_v37  ;;  %6939 = vrcp.f32 %v8496_v26  ;;  %vm8577_vm6 = vmor %vm2173_vm5, %vm2174_vm4 }
 0x351   :  { %v8573_v17 = vsel %vm8502_vm11, %v1324_v24, %v1320_v16  ;;  %v2210_v4 = vor.u32 1.1754944e-38, %v2209_v39  ;;  %v2140_v12 = vsub.f32 1.0, %v2139_v1  ;;  %v1238_v59 = vmul.f32 %v8541_v8, %v8433_v30 }
 0x352   :  { %v10584_v60 = vrot.slane %v7747_v22, 2  ;;  %v10585_v45 = vrot.slane %v7825_v20, 2  ;;  %vm2204_vm9 = vweird.f32 %v8452_v40  ;;  %vm8600_vm11 = vcmp.eq.f32.partialorder %v2207_v29, 8.507059e+37 }
 0x353   :  { %v2176_v39 = vsel %vm8577_vm6, %v8425_v53, %v2172_v25  ;;  %vm2178_vm12 = vcmp.eq.f32.partialorder %v2177_v14, 8.507059e+37  ;;  %v2155_v51 = vsub.f32 1.0, %v2154_v28  ;;  %v8607_v1 = vpop.eup %6937  ;;  %v2191_v18 = vsel %vm8595_vm7, %v8419_v52, %v2187_v44  ;;  %vm8629_vm10 = vmor %vm2203_vm3, %vm2204_vm9 }
 0x354   :  { %6499 = vmatpush.msk.msra.mxu1 %vm570_vm2, %v10584_v60  ;;  %6503 = vmatpush.msk.msra.mxu3 %vm570_vm2, %v10585_v45  ;;  %v2202_v57 = vadd.f32 %v8452_v40, %v2201_v13  ;;  %v2180_v37 = vor.u32 1.1754944e-38, %v2179_v10  ;;  %v2147_v29 = vand.u32 2147483647, %v8396_v34  ;;  %vm2143_vm14 = vweird.f32 %v8396_v34 }
 0x355   :  { %v8615_v60 = vor.u32 1.1754944e-38, %v2149_v27  ;;  %v1246_v54 = vand.u32 2147483647, %v8433_v30  ;;  %v2081_v53 = vmul.f32 %v8517_v36, %v2080_v49  ;;  %v2141_v25 = vmul.f32 %v8510_v0, %v2140_v12 }
 0x356   :  { %v8589_v2 = vpop.xlane.xlu1 %1217  ;;  %v2181_v14 = vsel %vm2178_vm12, %v2180_v37, %v2176_v39  ;;  %v1239_v28 = vsub.f32 1.0, %v1238_v59  ;;  %v1248_v45 = vand.u32 2147483648, %v8433_v30  ;;  %v8621_v52 = vpop.eup %6939  ;;  %v2196_v44 = vsel %vm8544_vm0, %v2195_v48, %v2191_v18 }
 0x357   :  { %v2156_v49 = vmul.f32 %v8553_v62, %v2155_v51  ;;  %v1448_v10 = vmul.f32 %v8607_v1, %v8522_v47  ;;  %6941 = vrcp.f32 %v8564_v31  ;;  %v2206_v43 = vsel %vm8629_vm10, %v8452_v40, %v2202_v57  ;;  %v8657_v51 = vpop.xlane.xlu2 %1229 }
 0x358   :  { %vm2144_vm15 = vweird.f32 %v8510_v0  ;;  %vm8641_vm0 = vcmp.eq.f32.partialorder %v2147_v29, 8.507059e+37  ;;  %vm1242_vm3 = vweird.f32 %v8433_v30  ;;  %vm2083_vm4 = vweird.f32 %v8423_v56 }
 0x359   :  { %v1328_v7 = vmul.f32 %v8621_v52, %v8496_v26  ;;  %v2082_v27 = vadd.f32 %v8517_v36, %v2081_v53  ;;  %vm2084_vm5 = vweird.f32 %v8517_v36  ;;  %v2087_v12 = vand.u32 2147483647, %v8423_v56 }
 0x35a   :  { %v2182_v40 = vmul.f32 %v8122_v38, %v2181_v14  ;;  %v2142_v59 = vadd.f32 %v8510_v0, %v2141_v25  ;;  %v1240_v24 = vmul.f32 %v8541_v8, %v1239_v28  ;;  %v2089_v39 = vand.u32 2147483648, %v8423_v56  ;;  %vm8672_vm9 = vmor %vm2083_vm4, %vm2084_vm5 }
 0x35b   :  { %vm2159_vm6 = vweird.f32 %v8553_v62  ;;  %v2157_v18 = vadd.f32 %v8553_v62, %v2156_v49  ;;  %v1449_v57 = vsub.f32 1.0, %v1448_v10  ;;  %v2197_v37 = vmul.f32 %v8108_v21, %v2196_v44 }
 0x35c   :  { %6494 = vmatmul.msk.f32.vlgmr.msra.gmra.mxu2 %vm2214_vm13, %v2182_v40  ;;  %6943 = vrcp.f32 %v8589_v2  ;;  %v8665_v38 = vsel %vm8600_vm11, %v2210_v4, %v2206_v43  ;;  %vm1243_vm7 = vweird.f32 %v8541_v8  ;;  %v2164_v53 = vand.u32 2147483648, %v8471_v6  ;;  %vm8688_vm11 = vmor %vm2143_vm14, %vm2144_vm15 }
 0x35d   :  { %v1329_v14 = vsub.f32 1.0, %v1328_v7  ;;  %v10596_v21 = vrot.slane %v10555_v32, 2  ;;  %v8682_v4 = vpop.eup %6941  ;;  %v2086_v25 = vsel %vm8672_vm9, %v8517_v36, %v2082_v27  ;;  %vm2158_vm12 = vweird.f32 %v8471_v6  ;;  %6496 = vmatmul.msk.f32.vlgmr.msrb.gmra.mxu3 %vm2214_vm13, %v2197_v37  ;;  %vm8737_vm4 = vmor %vm1242_vm3, %vm1243_vm7 }
 0x35e   :  { %v8680_v16 = vpop.xlane.xlu1 %1199  ;;  %v2162_v28 = vand.u32 2147483647, %v8471_v6  ;;  %6945 = vrcp.f32 %v8657_v51  ;;  %v2146_v34 = vsel %vm8688_vm11, %v8510_v0, %v2142_v59  ;;  %v1241_v44 = vadd.f32 %v8541_v8, %v1240_v24  ;;  %vm8709_vm10 = vmor %vm2158_vm12, %vm2159_vm6  ;;  %v8724_v24 = vpop.xlane.xlu0 %1214 }
 0x35f   :  { %6509 = vmatpush.msk.msra.mxu2 %vm570_vm2, %v10596_v21  ;;  %vm8703_vm14 = vcmp.eq.f32.partialorder %v1246_v54, 8.507059e+37  ;;  %v2090_v49 = vor.u32 1.1754944e-38, %v2089_v39  ;;  %v1456_v6 = vand.u32 2147483647, %v8522_v47  ;;  %v10603_v10 = vrot.slane %v10556_v33, 2 }
 0x360   :  { %v1249_v0 = vor.u32 1.1754944e-38, %v1248_v45  ;;  %vm2088_vm15 = vcmp.eq.f32.partialorder %v2087_v12, 8.507059e+37  ;;  %v2161_v54 = vsel %vm8709_vm10, %v8553_v62, %v2157_v18  ;;  %v1450_v43 = vmul.f32 %v8607_v1, %v1449_v57 }
 0x361   :  { %6511 = vmatpush.msk.msrb.mxu3 %vm570_vm2, %v10603_v10  ;;  %v2091_v7 = vsel %vm2088_vm15, %v2090_v49, %v2086_v25  ;;  %v2165_v27 = vor.u32 1.1754944e-38, %v2164_v53  ;;  %v1330_v40 = vmul.f32 %v8621_v52, %v1329_v14  ;;  %v1388_v59 = vmul.f32 %v8682_v4, %v8564_v31  ;;  %v8766_v25 = vpop.xlane.xlu2 %1211 }
 0x362   :  { %v8726_v39 = vpop.eup %6943  ;;  %v8731_v45 = vsel %vm8641_vm0, %v8615_v60, %v2146_v34  ;;  %vm2163_vm5 = vcmp.eq.f32.partialorder %v2162_v28, 8.507059e+37  ;;  %vm1452_vm6 = vweird.f32 %v8522_v47  ;;  %v1458_v12 = vand.u32 2147483648, %v8522_v47 }
 0x363   :  { %v1245_v18 = vsel %vm8737_vm4, %v8541_v8, %v1241_v44  ;;  %v2166_v48 = vsel %vm2163_vm5, %v2165_v27, %v2161_v54  ;;  %vm1453_vm0 = vweird.f32 %v8607_v1  ;;  %vm8747_vm9 = vcmp.eq.f32.partialorder %v1456_v6, 8.507059e+37 }
 0x364   :  { %v1373_v30 = vmul.f32 %v8726_v39, %v8589_v2  ;;  %v8753_v57 = vpop.eup %6945  ;;  %v1451_v37 = vadd.f32 %v8607_v1, %v1450_v43  ;;  %v1336_v29 = vand.u32 2147483647, %v8496_v26  ;;  %6947 = vrcp.f32 %v8724_v24  ;;  %6502 = vmatmul.msk.f32.vlgmr.msrb.gmra.mxu2 %vm2214_vm13, %v8417_v58  ;;  %vm8778_vm11 = vmor %vm1452_vm6, %vm1453_vm0 }
 0x365   :  { %v2092_v8 = vmul.f32 %v8141_v55, %v2091_v7  ;;  %v1331_v53 = vadd.f32 %v8621_v52, %v1330_v40  ;;  %vm1333_vm3 = vweird.f32 %v8621_v52  ;;  %v1389_v14 = vsub.f32 1.0, %v1388_v59  ;;  %v10634_v59 = vld [vmem:[#allocation51_spill] sm:$0xff] }
 0x366   :  { %v1374_v21 = vsub.f32 1.0, %v1373_v30  ;;  %v10608_v56 = vrot.slane %v8221_v41, 2  ;;  %vm1332_vm7 = vweird.f32 %v8496_v26  ;;  %v1338_v28 = vand.u32 2147483648, %v8496_v26  ;;  %v8790_v6 = vpop.xlane.xlu1 %1202 }
 0x367   :  { %v1433_v55 = vmul.f32 %v8753_v57, %v8657_v51  ;;  %6482 = vmatmul.msk.f32.vlgmr.msra.gmra.mxu0 %vm2214_vm13, %v2092_v8  ;;  %v2167_v58 = vmul.f32 %v8139_v61, %v2166_v48  ;;  %v1396_v44 = vand.u32 2147483647, %v8564_v31  ;;  %v1398_v49 = vand.u32 2147483648, %v8564_v31  ;;  %vm8796_vm12 = vmor %vm1332_vm7, %vm1333_vm3 }
 0x368   :  { %6517 = vmatpush.msk.msrb.mxu2 %vm570_vm2, %v10608_v56  ;;  %v1375_v26 = vmul.f32 %v8726_v39, %v1374_v21  ;;  %v10611_v36 = vrot.slane %v8324_v42, 4  ;;  %v1281_v61 = vmul.f32 %v8071_v9, %v8514_v35  ;;  %v1250_v47 = vsel %vm8703_vm14, %v1249_v0, %v1245_v18  ;;  %v8831_v18 = vpop.xlane.xlu0 %1235 }
 0x369   :  { %v1459_v10 = vor.u32 1.1754944e-38, %v1458_v12  ;;  %vm1392_vm10 = vweird.f32 %v8564_v31  ;;  %6492 = vmatmul.msk.f32.vlgmr.msrb.gmra.mxu1 %vm2214_vm13, %v2167_v58  ;;  %6949 = vrcp.f32 %v8680_v16  ;;  %v1455_v9 = vsel %vm8778_vm11, %v8607_v1, %v1451_v37  ;;  %v8871_v58 = vpop.xlane.xlu2 %1226 }
 0x36a   :  { %6497 = vmatpush.msk.msra.mxu0 %vm570_vm2, %v10611_v36  ;;  %v1335_v35 = vsel %vm8796_vm12, %v8621_v52, %v1331_v53  ;;  %vm8809_vm14 = vcmp.eq.f32.partialorder %v1336_v29, 8.507059e+37  ;;  %v1390_v0 = vmul.f32 %v8682_v4, %v1389_v14  ;;  %6504 = vmatmul.msk.f32.vlgmr.msra.gmra.mxu3 %vm2214_vm13, %v1281_v61  ;;  %v10616_v43 = vrot.slane %v10560_v63, 2  ;;  %v8818_v7 = vpop.eup %6947  ;;  %v10635_v14 = vld [vmem:[#allocation53_spill] sm:$0xff] }
 0x36b   :  { %v1339_v27 = vor.u32 1.1754944e-38, %v1338_v28  ;;  %v1381_v1 = vand.u32 2147483647, %v8589_v2  ;;  %v1434_v40 = vsub.f32 1.0, %v1433_v55  ;;  %v10617_v52 = vrot.slane %v8230_v3, 2 }
 0x36c   :  { %6507 = vmatpush.msk.msrb.mxu1 %vm570_vm2, %v10616_v43  ;;  %6951 = vrcp.f32 %v8766_v25  ;;  %vm8825_vm15 = vcmp.eq.f32.partialorder %v1396_v44, 8.507059e+37  ;;  %v1399_v62 = vor.u32 1.1754944e-38, %v1398_v49  ;;  %v1376_v12 = vadd.f32 %v8726_v39, %v1375_v26 }
 0x36d   :  { %6519 = vmatpush.msk.msra.mxu3 %vm570_vm2, %v10617_v52  ;;  %vm1378_vm4 = vweird.f32 %v8726_v39  ;;  %v8835_v48 = vsel %vm8747_vm9, %v1459_v10, %v1455_v9  ;;  %v1340_v30 = vsel %vm8809_vm14, %v1339_v27, %v1335_v35  ;;  %vm1393_vm5 = vweird.f32 %v8682_v4  ;;  %v10629_v35 = vld [vmem:[#allocation39_spill] sm:$0xff] }
 0x36e   :  { %v1383_v37 = vand.u32 2147483648, %v8589_v2  ;;  %v1391_v29 = vadd.f32 %v8682_v4, %v1390_v0  ;;  %v8844_v8 = vmul.f32 %v8818_v7, %v8724_v24  ;;  %vm1377_vm6 = vweird.f32 %v8589_v2  ;;  %vm8879_vm3 = vmor %vm1392_vm10, %vm1393_vm5  ;;  %v8898_v49 = vpop.xlane.xlu1 %1223 }
 0x36f   :  { %v2152_v60 = vmul.f32 %v8124_v15, %v8731_v45  ;;  %v8849_v53 = vpop.eup %6949  ;;  %vm8851_vm0 = vmor %vm1377_vm6, %vm1378_vm4  ;;  %vm8855_vm9 = vcmp.eq.f32.partialorder %v1381_v1, 8.507059e+37  ;;  %v1435_v56 = vmul.f32 %v8753_v57, %v1434_v40  ;;  %6953 = vrcp.f32 %v8831_v18  ;;  %v10631_v40 = vld [vmem:[#allocation55_spill] sm:$0xff] }
 0x370   :  { %v1251_v28 = vmul.f32 %v8126_v11, %v1250_v47  ;;  %v1380_v15 = vsel %vm8851_vm0, %v8726_v39, %v1376_v12  ;;  %v1283_v2 = vmul.f32 %v8849_v53, %v8680_v16  ;;  %v1326_v45 = vmul.f32 %v8082_v50, %v8573_v17 }
 0x371   :  { %6490 = vmatmul.msk.f32.vlgmr.msrb.gmra.mxu0 %vm2214_vm13, %v2152_v60  ;;  %v1341_v55 = vmul.f32 %v8156_v19, %v1340_v30  ;;  %v1384_v39 = vor.u32 1.1754944e-38, %v1383_v37  ;;  %vm1437_vm7 = vweird.f32 %v8657_v51  ;;  %v1443_v44 = vand.u32 2147483648, %v8657_v51 }
 0x372   :  { %v8873_v34 = vpop.eup %6951  ;;  %6500 = vmatmul.msk.f32.vlgmr.msra.gmra.mxu1 %vm2214_vm13, %v1251_v28  ;;  %v10626_v50 = vrot.slane %v10559_v46, 2  ;;  %6955 = vrcp.f32 %v8790_v6  ;;  %v1395_v19 = vsel %vm8879_vm3, %v8682_v4, %v1391_v29  ;;  %vm1438_vm11 = vweird.f32 %v8753_v57  ;;  %6510 = vmatmul.msk.f32.vlgmr.msra.gmra.mxu2 %vm2214_vm13, %v1326_v45  ;;  %v10638_v45 = vld [vmem:[#allocation52_spill] sm:$0xff] }
 0x373   :  { %v1284_v31 = vsub.f32 1.0, %v1283_v2  ;;  %v1343_v17 = vmul.f32 %v8873_v34, %v8766_v25  ;;  %6512 = vmatmul.msk.f32.vlgmr.msrb.gmra.mxu3 %vm2214_vm13, %v1341_v55  ;;  %v1385_v26 = vsel %vm8855_vm9, %v1384_v39, %v1380_v15  ;;  %v1436_v36 = vadd.f32 %v8753_v57, %v1435_v56  ;;  %vm8929_vm10 = vmor %vm1437_vm7, %vm1438_vm11  ;;  %v10636_v15 = vld [vmem:[#allocation45_spill] sm:$0xff] }
 0x374   :  { %6505 = vmatpush.msk.msrb.mxu0 %vm570_vm2, %v10626_v50  ;;  %v1293_v61 = vand.u32 2147483648, %v8680_v16  ;;  %v10627_v4 = vrot.slane %v7718_v5, 2  ;;  %v10628_v47 = vrot.slane %v8233_v23, 2  ;;  %6957 = vrcp.f32 %v8871_v58 }
 0x375   :  { %v1285_v10 = vmul.f32 %v8849_v53, %v1284_v31  ;;  %vm1288_vm12 = vweird.f32 %v8849_v53  ;;  %v1291_v54 = vand.u32 2147483647, %v8680_v16  ;;  %v1344_v9 = vsub.f32 1.0, %v1343_v17  ;;  %v8917_v0 = vpop.eup %6953  ;;  %v10639_v31 = vld [vmem:[#allocation21_spill] sm:$0xff] }
 0x376   :  { %6515 = vmatpush.msk.msra.mxu1 %vm570_vm2, %v10627_v4  ;;  %6525 = vmatpush.msk.msra.mxu2 %vm570_vm2, %v10628_v47  ;;  %v10630_v13 = vrot.slane %v10629_v35, 2  ;;  %v1400_v43 = vsel %vm8825_vm15, %v1399_v62, %v1395_v19  ;;  %v1359_v27 = vsub.f32 1.0, %v8844_v8  ;;  %v1441_v1 = vand.u32 2147483647, %v8657_v51  ;;  %v10643_v47 = vld [vmem:[#allocation58_spill] sm:$0xff] }
 0x377   :  { %6959 = vrcp.f32 %v8898_v49  ;;  %v1386_v52 = vmul.f32 %v10631_v40, %v1385_v26  ;;  %v1286_v30 = vadd.f32 %v8849_v53, %v1285_v10  ;;  %vm1287_vm14 = vweird.f32 %v8680_v16  ;;  %v10646_v40 = vld [vmem:[#allocation56_spill] sm:$0xff] }
 0x378   :  { %6527 = vmatpush.msk.msrb.mxu3 %vm570_vm2, %v10630_v13  ;;  %v2212_v62 = vmul.f32 %v10634_v59, %v8665_v38  ;;  %v6956_v37 = vpop.eup %6955  ;;  %v1440_v29 = vsel %vm8929_vm10, %v8753_v57, %v1436_v36  ;;  %v1444_v8 = vor.u32 1.1754944e-38, %v1443_v44  ;;  %vm1289_vm15 = vmor %vm1287_vm14, %vm1288_vm12  ;;  %v1294_v51 = vor.u32 1.1754944e-38, %v1293_v61 }
 0x379   :  { %v1345_v60 = vmul.f32 %v8873_v34, %v1344_v9  ;;  %v1401_v21 = vmul.f32 %v10635_v14, %v1400_v43  ;;  %v1290_v56 = vsel %vm1289_vm15, %v8849_v53, %v1286_v30  ;;  %vm1292_vm4 = vcmp.eq.f32.partialorder %v1291_v54, 8.507059e+37  ;;  %v10647_v14 = vld [vmem:[#allocation36_spill] sm:$0xff] }
 0x37a   :  { %v1298_v16 = vmul.f32 %v6956_v37, %v8790_v6  ;;  %6498 = vmatmul.msk.f32.vlgmr.msra.gmra.mxu0 %vm2214_vm13, %v2212_v62  ;;  %v8947_v38 = vpop.eup %6957  ;;  %v1360_v57 = vmul.f32 %v8818_v7, %v1359_v27  ;;  %vm1362_vm5 = vweird.f32 %v8724_v24  ;;  %vm1442_vm6 = vcmp.eq.f32.partialorder %v1441_v1, 8.507059e+37  ;;  %6518 = vmatmul.msk.f32.vlgmr.msrb.gmra.mxu2 %vm2214_vm13, %v1386_v52 }
 0x37b   :  { %v1295_v28 = vsel %vm1292_vm4, %v1294_v51, %v1290_v56  ;;  %v10637_v2 = vrot.slane %v10636_v15, 2  ;;  %v1461_v53 = vmul.f32 %v10638_v45, %v8835_v48  ;;  %v1445_v55 = vsel %vm1442_vm6, %v1444_v8, %v1440_v29  ;;  %6520 = vmatmul.msk.f32.vlgmr.msra.gmra.mxu3 %vm2214_vm13, %v1401_v21  ;;  %v10641_v48 = vld [vmem:[#allocation22_spill] sm:$0xff]  ;;  %v10651_v56 = vld [vmem:[#allocation60_spill] sm:$0xff] }
 0x37c   :  { %v1299_v11 = vsub.f32 1.0, %v1298_v16  ;;  %v1306_v39 = vand.u32 2147483647, %v8790_v6  ;;  %v1346_v50 = vadd.f32 %v8873_v34, %v1345_v60  ;;  %vm1348_vm0 = vweird.f32 %v8873_v34 }
 0x37d   :  { %6513 = vmatpush.msk.msra.mxu0 %vm570_vm2, %v10637_v2  ;;  %v8959_v44 = vpop.eup %6959  ;;  %vm1303_vm9 = vweird.f32 %v6956_v37  ;;  %v1308_v19 = vand.u32 2147483648, %v8790_v6  ;;  %v10640_v17 = vrot.slane %v10639_v31, 6  ;;  %v10642_v26 = vrot.slane %v10641_v48, 6  ;;  %v10652_v2 = vld [vmem:[#allocation25_spill] sm:$0xff] }
 0x37e   :  { %v1300_v36 = vmul.f32 %v6956_v37, %v1299_v11  ;;  %v1418_v61 = vmul.f32 %v8947_v38, %v8871_v58  ;;  %v1403_v4 = vmul.f32 %v8959_v44, %v8898_v49  ;;  %v1296_v10 = vmul.f32 %v10643_v47, %v1295_v28 }
 0x37f   :  { %3085 = vmatpush.xpose.msrb.mxu2 %v10640_v17  ;;  %3107 = vmatpush.xpose.msra.mxu3 %v10642_v26  ;;  %v1361_v54 = vadd.f32 %v8818_v7, %v1360_v57  ;;  %vm1363_vm3 = vweird.f32 %v8818_v7  ;;  %vm1347_vm7 = vweird.f32 %v8766_v25  ;;  %v1353_v9 = vand.u32 2147483648, %v8766_v25  ;;  %v10657_v26 = vld [vmem:[#allocation59_spill] sm:$0xff] }
 0x380   :  { %vm8977_vm11 = vmor %vm1347_vm7, %vm1348_vm0  ;;  %v1351_v43 = vand.u32 2147483647, %v8766_v25  ;;  %v1301_v27 = vadd.f32 %v6956_v37, %v1300_v36  ;;  %vm1302_vm12 = vweird.f32 %v8790_v6  ;;  %v1404_v1 = vsub.f32 1.0, %v1403_v4 }
 0x381   :  { %v1446_v52 = vmul.f32 %v10646_v40, %v1445_v55  ;;  %v1463_v12 = vmul.f32 %v8917_v0, %v8831_v18  ;;  %vm1304_vm10 = vmor %vm1302_vm12, %vm1303_vm9  ;;  %vm1307_vm14 = vcmp.eq.f32.partialorder %v1306_v39, 8.507059e+37  ;;  %v1309_v30 = vor.u32 1.1754944e-38, %v1308_v19  ;;  %v10654_v55 = vld [vmem:[#allocation26_spill] sm:$0xff] }
 0x382   :  { %v1350_v59 = vsel %vm8977_vm11, %v8873_v34, %v1346_v50  ;;  %v1305_v62 = vsel %vm1304_vm10, %v6956_v37, %v1301_v27  ;;  %v1419_v29 = vsub.f32 1.0, %v1418_v61  ;;  %v1405_v25 = vmul.f32 %v8959_v44, %v1404_v1  ;;  %6506 = vmatmul.msk.f32.vlgmr.msrb.gmra.mxu0 %vm2214_vm13, %v1296_v10  ;;  %vm9001_vm15 = vmor %vm1362_vm5, %vm1363_vm3  ;;  %v10656_v39 = vld [vmem:[#allocation38_spill] sm:$0xff]  ;;  %v10659_v27 = vld [vmem:[#allocation29_spill] sm:$0xff] }
 0x383   :  { %v1366_v6 = vand.u32 2147483647, %v8724_v24  ;;  %v1368_v8 = vand.u32 2147483648, %v8724_v24  ;;  %v1354_v51 = vor.u32 1.1754944e-38, %v1353_v9  ;;  %v1310_v60 = vsel %vm1307_vm14, %v1309_v30, %v1305_v62  ;;  %6526 = vmatmul.msk.f32.vlgmr.msra.gmra.mxu2 %vm2214_vm13, %v1446_v52  ;;  %6528 = vmatmul.msk.f32.vlgmr.msrb.gmra.mxu3 %vm2214_vm13, %v1461_v53  ;;  %v10660_v52 = vld [vmem:[#allocation54_spill] sm:$0xff]  ;;  %v10665_v34 = vld [vmem:[#allocation23_spill] sm:$0xff] }
 0x384   :  { %v10648_v21 = vrot.slane %v10647_v14, 2  ;;  %vm1352_vm4 = vcmp.eq.f32.partialorder %v1351_v43, 8.507059e+37  ;;  %v1406_v37 = vadd.f32 %v8959_v44, %v1405_v25  ;;  %vm1408_vm6 = vweird.f32 %v8959_v44  ;;  %v10658_v43 = vld [vmem:[#allocation28_spill] sm:$0xff]  ;;  %v10664_v25 = vld [vmem:[#allocation62_spill] sm:$0xff] }
 0x385   :  { %v1311_v16 = vmul.f32 %v10651_v56, %v1310_v60  ;;  %v1365_v57 = vsel %vm9001_vm15, %v8818_v7, %v1361_v54  ;;  %v1355_v24 = vsel %vm1352_vm4, %v1354_v51, %v1350_v59  ;;  %v1413_v28 = vand.u32 2147483648, %v8898_v49  ;;  %v10663_v59 = vld [vmem:[#allocation20_spill] sm:$0xff] }
 0x386   :  { %6521 = vmatpush.msk.msrb.mxu0 %vm570_vm2, %v10648_v21  ;;  %v10653_v45 = vrot.slane %v10652_v2, 6  ;;  %v10655_v11 = vrot.slane %v10654_v55, 6  ;;  %v2942_v50 = vrot.slane %v10656_v39, 2  ;;  %v1464_v19 = vsub.f32 1.0, %v1463_v12 }
 0x387   :  { %v1420_v53 = vmul.f32 %v8947_v38, %v1419_v29  ;;  %vm1407_vm5 = vweird.f32 %v8898_v49  ;;  %v1411_v17 = vand.u32 2147483647, %v8898_v49  ;;  %6508 = vmatmul.msk.f32.vlgmr.msrb.gmra.mxu1 %vm2214_vm13, %v1311_v16  ;;  %v1369_v7 = vor.u32 1.1754944e-38, %v1368_v8  ;;  %v10666_v16 = vld [vmem:[#allocation32_spill] sm:$0xff] }
 0x388   :  { %3173 = vmatpush.xpose.msra.mxu2 %v10653_v45  ;;  %3195 = vmatpush.xpose.msrb.mxu3 %v10655_v11  ;;  %vm1409_vm0 = vmor %vm1407_vm5, %vm1408_vm6  ;;  %vm1367_vm9 = vcmp.eq.f32.partialorder %v1366_v6, 8.507059e+37  ;;  %v1356_v36 = vmul.f32 %v10657_v26, %v1355_v24  ;;  %v1414_v47 = vor.u32 1.1754944e-38, %v1413_v28  ;;  %v3020_v10 = vrot.slane %v8324_v42, 2  ;;  %v10667_v24 = vld [vmem:[#allocation33_spill] sm:$0xff] }
 0x389   :  { %6523 = vmatpush.msk.msrb.mxu1 %vm570_vm2, %v2942_v50  ;;  %v1410_v61 = vsel %vm1409_vm0, %v8959_v44, %v1406_v37  ;;  %v1370_v4 = vsel %vm1367_vm9, %v1369_v7, %v1365_v57  ;;  %v1465_v54 = vmul.f32 %v8917_v0, %v1464_v19  ;;  %v1421_v49 = vadd.f32 %v8947_v38, %v1420_v53  ;;  %v10668_v45 = vld [vmem:[#allocation61_spill] sm:$0xff]  ;;  %v10669_v50 = vld [vmem:[#allocation24_spill] sm:$0xff] }
 0x38a   :  { %vm1423_vm3 = vweird.f32 %v8947_v38  ;;  %vm1412_vm7 = vcmp.eq.f32.partialorder %v1411_v17, 8.507059e+37  ;;  %6514 = vmatmul.msk.f32.vlgmr.msra.gmra.mxu0 %vm2214_vm13, %v1356_v36  ;;  %v1428_v9 = vand.u32 2147483648, %v8871_v58  ;;  %v3244_v44 = vrot.slane %v10658_v43, 6  ;;  %v10670_v19 = vld [vmem:[#allocation57_spill] sm:$0xff]  ;;  %v10671_v17 = vld [vmem:[#allocation27_spill] sm:$0xff] }
 0x38b   :  { %v1415_v13 = vsel %vm1412_vm7, %v1414_v47, %v1410_v61  ;;  %6529 = vmatpush.msk.msra.mxu0 %vm570_vm2, %v3020_v10  ;;  %v3266_v1 = vrot.slane %v10659_v27, 6  ;;  %vm1422_vm11 = vweird.f32 %v8871_v58  ;;  %v1426_v40 = vand.u32 2147483647, %v8871_v58  ;;  %3086 = vmatmul.f32.vlgmr.msrb.gmra.mxu2 %v10639_v31  ;;  %v10672_v26 = vld [vmem:[#allocation37_spill] sm:$0xff]  ;;  %v10674_v10 = vld [vmem:[#allocation34_spill] sm:$0xff] }
 0x38c   :  { %3108 = vmatmul.f32.vlgmr.msra.gmra.mxu3 %v10641_v48  ;;  %v1371_v12 = vmul.f32 %v10660_v52, %v1370_v4  ;;  %vm9042_vm12 = vmor %vm1422_vm11, %vm1423_vm3  ;;  %3261 = vmatpush.xpose.msrb.mxu2 %v3244_v44  ;;  %v3046_v62 = vrot.slane %v10663_v59, 6  ;;  %v1466_v29 = vadd.f32 %v8917_v0, %v1465_v54  ;;  %vm1468_vm10 = vweird.f32 %v8917_v0  ;;  %v10673_v4 = vld [vmem:[#allocation30_spill] sm:$0xff] }
 0x38d   :  { %3283 = vmatpush.xpose.msra.mxu3 %v3266_v1  ;;  %v1425_v58 = vsel %vm9042_vm12, %v8947_v38, %v1421_v49  ;;  %v1416_v6 = vmul.f32 %v10664_v25, %v1415_v13  ;;  %v1473_v8 = vand.u32 2147483648, %v8831_v18  ;;  %v1429_v51 = vor.u32 1.1754944e-38, %v1428_v9  ;;  %v10675_v13 = vld [vmem:[#allocation31_spill] sm:$0xff] }
 0x38e   :  { %vm1467_vm14 = vweird.f32 %v8831_v18  ;;  %v1471_v60 = vand.u32 2147483647, %v8831_v18  ;;  %vm1427_vm15 = vcmp.eq.f32.partialorder %v1426_v40, 8.507059e+37  ;;  %v3112_v37 = vrot.slane %v10665_v34, 6  ;;  %v10676_v1 = vld [vmem:[#allocation35_spill] sm:$0xff]  ;;  %v2237_v25 = vpop.f32.mrf.mxu1 }
 0x38f   :  { %6516 = vmatmul.msk.f32.vlgmr.msra.gmra.mxu1 %vm2214_vm13, %v1371_v12  ;;  %vm1469_vm4 = vmor %vm1467_vm14, %vm1468_vm10  ;;  %v1430_v21 = vsel %vm1427_vm15, %v1429_v51, %v1425_v58  ;;  %v1474_v38 = vor.u32 1.1754944e-38, %v1473_v8  ;;  %v3332_v57 = vrot.slane %v10666_v16, 6  ;;  %v3354_v28 = vrot.slane %v10667_v24, 6 }
 0x390   :  { %3063 = vmatpush.xpose.msra.mxu1 %v3046_v62  ;;  %v1470_v56 = vsel %vm1469_vm4, %v8917_v0, %v1466_v29  ;;  %vm1472_vm6 = vcmp.eq.f32.partialorder %v1471_v60, 8.507059e+37  ;;  %v1431_v11 = vmul.f32 %v10668_v45, %v1430_v21  ;;  %v3134_v0 = vrot.slane %v10669_v50, 6 }
 0x391   :  { %v1475_v18 = vsel %vm1472_vm6, %v1474_v38, %v1470_v56  ;;  %v3200_v7 = vrot.slane %v10671_v17, 6  ;;  %v3808_v36 = vrot.slane %v10672_v26, 6  ;;  %v3834_v61 = vrot.slane %v7825_v20, 6 }
 0x392   :  { %6522 = vmatmul.msk.f32.vlgmr.msrb.gmra.mxu0 %vm2214_vm13, %v1416_v6  ;;  %v1476_v53 = vmul.f32 %v10670_v19, %v1475_v18  ;;  %v3222_v47 = vrot.slane %v10673_v4, 6  ;;  %v3288_v54 = vrot.slane %v10674_v10, 6  ;;  %v3912_v49 = vrot.slane %v10555_v32, 6 }
 0x393   :  { %3129 = vmatpush.xpose.msrb.mxu0 %v3112_v37  ;;  %3174 = vmatmul.f32.vlgmr.msra.gmra.mxu2 %v10652_v2  ;;  %v3938_v9 = vrot.slane %v10556_v33, 6  ;;  %v3310_v44 = vrot.slane %v10675_v13, 6  ;;  %v3376_v40 = vrot.slane %v10676_v1, 6  ;;  %v3782_v52 = vrot.slane %v7747_v22, 6 }
 0x394   :  { %3196 = vmatmul.f32.vlgmr.msrb.gmra.mxu3 %v10654_v55  ;;  %3349 = vmatpush.xpose.msra.mxu2 %v3332_v57  ;;  %v3860_v12 = vrot.slane %v10559_v46, 6  ;;  %v3886_v30 = vrot.slane %v10560_v63, 6  ;;  %v3964_v62 = vrot.slane %v10636_v15, 6 }
 0x395   :  { %3371 = vmatpush.xpose.msrb.mxu3 %v3354_v28 }
 0x397   :  { %6524 = vmatmul.msk.f32.vlgmr.msrb.gmra.mxu1 %vm2214_vm13, %v1431_v11 }
 0x398   :  { %3151 = vmatpush.xpose.msrb.mxu1 %v3134_v0 }
 0x39a   :  { %6530 = vmatmul.msk.f32.vlgmr.msra.gmra.mxu0 %vm2214_vm13, %v1476_v53 }
 0x39b   :  { %3217 = vmatpush.xpose.msra.mxu0 %v3200_v7  ;;  %3262 = vmatmul.f32.vlgmr.msrb.gmra.mxu2 %v10658_v43 }
 0x39c   :  { %3284 = vmatmul.f32.vlgmr.msra.gmra.mxu3 %v10659_v27  ;;  %6533 = vmatpush.msk.msrb.mxu2 %vm570_vm2, %v3808_v36 }
 0x39d   :  { %6535 = vmatpush.msk.msra.mxu3 %vm570_vm2, %v3834_v61 }
 0x39f   :  { %3064 = vmatmul.f32.vlgmr.msra.gmra.mxu1 %v10663_v59 }
 0x3a0   :  { %3239 = vmatpush.xpose.msra.mxu1 %v3222_v47 }
 0x3a2   :  { %3130 = vmatmul.f32.vlgmr.msrb.gmra.mxu0 %v10665_v34 }
 0x3a3   :  { %3305 = vmatpush.xpose.msrb.mxu0 %v3288_v54  ;;  %3350 = vmatmul.f32.vlgmr.msra.gmra.mxu2 %v10666_v16 }
 0x3a4   :  { %3372 = vmatmul.f32.vlgmr.msrb.gmra.mxu3 %v10667_v24  ;;  %6541 = vmatpush.msk.msra.mxu2 %vm570_vm2, %v3912_v49 }
 0x3a5   :  { %6543 = vmatpush.msk.msrb.mxu3 %vm570_vm2, %v3938_v9  ;;  %v2263_v29 = vpop.f32.mrf.mxu2 }
 0x3a7   :  { %3152 = vmatmul.f32.vlgmr.msrb.gmra.mxu1 %v10669_v50 }
 0x3a8   :  { %3327 = vmatpush.xpose.msrb.mxu1 %v3310_v44 }
 0x3aa   :  { %3218 = vmatmul.f32.vlgmr.msra.gmra.mxu0 %v10671_v17 }
 0x3ab   :  { %3393 = vmatpush.xpose.msra.mxu0 %v3376_v40 }
 0x3ae   :  { %v2289_v58 = vpop.f32.mrf.mxu3  ;;  %v9102_v6 = vpop.f32.mrf.mxu2 }
 0x3af   :  { %3240 = vmatmul.f32.vlgmr.msra.gmra.mxu1 %v10673_v4  ;;  %10677 = vst [vmem:[#allocation40_spill] sm:$0xff] %v9102_v6 }
 0x3b0   :  { %6531 = vmatpush.msk.msra.mxu1 %vm570_vm2, %v3782_v52 }
 0x3b1   :  { %v9106_v51 = vpop.f32.mrf.mxu1 }
 0x3b2   :  { %3306 = vmatmul.f32.vlgmr.msrb.gmra.mxu0 %v10674_v10  ;;  %10679 = vst [vmem:[#allocation43_spill] sm:$0xff] %v9106_v51 }
 0x3b3   :  { %6537 = vmatpush.msk.msrb.mxu0 %vm570_vm2, %v3860_v12 }
 0x3b6   :  { %v2471_v60 = vpop.f32.mrf.mxu2 }
 0x3b7   :  { %3328 = vmatmul.f32.vlgmr.msrb.gmra.mxu1 %v10675_v13 }
 0x3b8   :  { %6539 = vmatpush.msk.msrb.mxu1 %vm570_vm2, %v3886_v30 }
 0x3b9   :  { %v2315_v37 = vpop.f32.mrf.mxu0 }
 0x3ba   :  { %3394 = vmatmul.f32.vlgmr.msra.gmra.mxu0 %v10676_v1 }
 0x3bb   :  { %6545 = vmatpush.msk.msra.mxu0 %vm570_vm2, %v3964_v62 }
 0x3c8   :  { %v9104_v8 = vpop.f32.mrf.mxu3 }
 0x3c9   :  { %10678 = vst [vmem:[#allocation42_spill] sm:$0xff] %v9104_v8 }
 0x3cd   :  { %v2445_v56 = vpop.f32.mrf.mxu1 }
 0x3d3   :  { %v2497_v21 = vpop.f32.mrf.mxu3 }
 0x3df   :  { %v9108_v38 = vpop.f32.mrf.mxu2 }
 0x3e0   :  { %10680 = vst [vmem:[#allocation44_spill] sm:$0xff] %v9108_v38  ;;  %v9110_v57 = vpop.f32.mrf.mxu3 }
 0x3e1   :  { %10681 = vst [vmem:[#allocation41_spill] sm:$0xff] %v9110_v57 }
 0x3e4   :  { %v9112_v28 = vpop.f32.mrf.mxu0 }
 0x3e5   :  { %10682 = vst [vmem:[#allocation50_spill] sm:$0xff] %v9112_v28 }
 0x3e6   :  { %v9114_v45 = vpop.f32.mrf.mxu1 }
 0x3e7   :  { %10683 = vst [vmem:[#allocation39_spill] sm:$0xff] %v9114_v45  ;;  %v2679_v11 = vpop.f32.mrf.mxu2 }
 0x3e8   :  { %v9116_v18 = vadd.f32 %v2679_v11, %v2263_v29 }
 0x3ea   :  { %10684 = vst [vmem:[#allocation55_spill] sm:$0xff] %v9116_v18 }
 0x3ed   :  { %v2705_v0 = vpop.f32.mrf.mxu3 }
 0x3ee   :  { %v2523_v19 = vpop.f32.mrf.mxu0  ;;  %v9118_v53 = vadd.f32 %v2705_v0, %v2289_v58 }
 0x3ef   :  { %v2653_v7 = vpop.f32.mrf.mxu1 }
 0x3f0   :  { %10685 = vst [vmem:[#allocation51_spill] sm:$0xff] %v9118_v53  ;;  %v9120_v36 = vadd.f32 %v2653_v7, %v2237_v25 }
 0x3f2   :  { %10686 = vst [vmem:[#allocation53_spill] sm:$0xff] %v9120_v36 }
 0x3f5   :  { %v9122_v61 = vpop.f32.mrf.mxu2 }
 0x3f6   :  { %10687 = vst [vmem:[#allocation45_spill] sm:$0xff] %v9122_v61  ;;  %v9124_v47 = vpop.f32.mrf.mxu3 }
 0x3f7   :  { %10688 = vst [vmem:[#allocation52_spill] sm:$0xff] %v9124_v47  ;;  %v9126_v54 = vpop.f32.mrf.mxu0 }
 0x3f8   :  { %10689 = vst [vmem:[#allocation21_spill] sm:$0xff] %v9126_v54 }
 0x3fd   :  { %v2887_v49 = vpop.f32.mrf.mxu2 }
 0x3fe   :  { %v2913_v9 = vpop.f32.mrf.mxu3  ;;  %v9128_v44 = vadd.f32 %v2887_v49, %v2471_v60 }
 0x3ff   :  { %v9130_v40 = vadd.f32 %v2913_v9, %v2497_v21  ;;  %v2731_v52 = vpop.f32.mrf.mxu0 }
 0x400   :  { %10690 = vst [vmem:[#allocation22_spill] sm:$0xff] %v9128_v44  ;;  %v9132_v12 = vadd.f32 %v2731_v52, %v2315_v37 }
 0x401   :  { %10691 = vst [vmem:[#allocation58_spill] sm:$0xff] %v9130_v40 }
 0x402   :  { %10692 = vst [vmem:[#allocation56_spill] sm:$0xff] %v9132_v12 }
 0x404   :  { %v9134_v30 = vpop.f32.mrf.mxu1 }
 0x405   :  { %10693 = vst [vmem:[#allocation36_spill] sm:$0xff] %v9134_v30 }
 0x406   :  { %v9136_v62 = vpop.f32.mrf.mxu2  ;;  %v9138_v29 = vpop.f32.mrf.mxu3 }
 0x407   :  { %10694 = vst [vmem:[#allocation60_spill] sm:$0xff] %v9136_v62  ;;  %v9140_v58 = vpop.f32.mrf.mxu0 }
 0x408   :  { %10695 = vst [vmem:[#allocation25_spill] sm:$0xff] %v9138_v29 }
 0x409   :  { %10696 = vst [vmem:[#allocation26_spill] sm:$0xff] %v9140_v58 }
 0x40c   :  { %v2861_v25 = vpop.f32.mrf.mxu1 }
 0x40d   :  { %v9142_v11 = vadd.f32 %v2861_v25, %v2445_v56 }
 0x40e   :  { %v3087_v0 = vpop.f32.mrf.mxu2 }
 0x40f   :  { %10697 = vst [vmem:[#allocation38_spill] sm:$0xff] %v9142_v11  ;;  %v3109_v7 = vpop.f32.mrf.mxu3  ;;  %v3401_v60 = vsel %vm1092_vm8, %v3087_v0, -inf  ;;  %v2939_v21 = vpop.f32.mrf.mxu0 }
 0x410   :  { %v3404_v49 = vsel %vm1092_vm8, %v3109_v7, -inf  ;;  %3402 = vmax.xlane.f32.xlu1 %v3401_v60  ;;  %v9146_v37 = vadd.f32 %v2939_v21, %v2523_v19 }
 0x411   :  { %3405 = vmax.xlane.f32.xlu2 %v3404_v49 }
 0x412   :  { %10698 = vst [vmem:[#allocation59_spill] sm:$0xff] %v9146_v37 }
 0x414   :  { %v9148_v9 = vpop.f32.mrf.mxu1 }
 0x415   :  { %10699 = vst [vmem:[#allocation54_spill] sm:$0xff] %v9148_v9 }
 0x416   :  { %v3175_v52 = vpop.f32.mrf.mxu2 }
 0x417   :  { %v3197_v62 = vpop.f32.mrf.mxu3  ;;  %v3413_v38 = vsel %vm1092_vm8, %v3175_v52, -inf  ;;  %v9152_v25 = vpop.f32.mrf.mxu0 }
 0x418   :  { %v3416_v56 = vsel %vm1092_vm8, %v3197_v62, -inf  ;;  %10700 = vst [vmem:[#allocation20_spill] sm:$0xff] %v9152_v25  ;;  %3414 = vmax.xlane.f32.xlu0 %v3413_v38 }
 0x419   :  { %3417 = vmax.xlane.f32.xlu1 %v3416_v56 }
 0x41c   :  { %v3065_v54 = vpop.f32.mrf.mxu1 }
 0x41d   :  { %v3398_v29 = vsel %vm1092_vm8, %v3065_v54, -inf }
 0x41e   :  { %3399 = vmax.xlane.f32.xlu2 %v3398_v29  ;;  %v9155_v60 = vpop.f32.mrf.mxu2 }
 0x41f   :  { %v3425_v19 = vsel %vm1092_vm8, %v9155_v60, -inf  ;;  %v9159_v21 = vpop.f32.mrf.mxu0  ;;  %v9161_v49 = vpop.f32.mrf.mxu3 }
 0x420   :  { %v3407_v57 = vsel %vm1092_vm8, %v9159_v21, -inf  ;;  %v3428_v56 = vsel %vm1092_vm8, %v9161_v49, -inf }
 0x421   :  { %3426 = vmax.xlane.f32.xlu1 %v3425_v19  ;;  %3408 = vmax.xlane.f32.xlu0 %v3407_v57 }
 0x424   :  { %v9165_v38 = vpop.f32.mrf.mxu1 }
 0x425   :  { %v3410_v29 = vsel %vm1092_vm8, %v9165_v38, -inf }
 0x426   :  { %3429 = vmax.xlane.f32.xlu2 %v3428_v56  ;;  %v9173_v9 = vpop.f32.mrf.mxu2 }
 0x427   :  { %v9171_v25 = vpop.f32.mrf.mxu0  ;;  %v3437_v57 = vsel %vm1092_vm8, %v9173_v9, -inf  ;;  %v9181_v58 = vpop.f32.mrf.mxu3 }
 0x428   :  { %v3419_v19 = vsel %vm1092_vm8, %v9171_v25, -inf  ;;  %v3440_v61 = vsel %vm1092_vm8, %v9181_v58, -inf }
 0x429   :  { %3411 = vmax.xlane.f32.xlu0 %v3410_v29  ;;  %3420 = vmax.xlane.f32.xlu1 %v3419_v19 }
 0x42c   :  { %v9177_v45 = vpop.f32.mrf.mxu1 }
 0x42d   :  { %v3422_v56 = vsel %vm1092_vm8, %v9177_v45, -inf }
 0x42e   :  { %3438 = vmax.xlane.f32.xlu2 %v3437_v57 }
 0x42f   :  { %v9185_v28 = vpop.f32.mrf.mxu0 }
 0x430   :  { %v3431_v19 = vsel %vm1092_vm8, %v9185_v28, -inf }
 0x431   :  { %3441 = vmax.xlane.f32.xlu0 %v3440_v61  ;;  %3423 = vmax.xlane.f32.xlu1 %v3422_v56 }
 0x434   :  { %v9189_v29 = vpop.f32.mrf.mxu1 }
 0x435   :  { %v3434_v57 = vsel %vm1092_vm8, %v9189_v29, -inf }
 0x436   :  { %3432 = vmax.xlane.f32.xlu2 %v3431_v19 }
 0x437   :  { %v9195_v6 = vpop.f32.mrf.mxu0 }
 0x438   :  { %v3443_v47 = vsel %vm1092_vm8, %v9195_v6, -inf }
 0x439   :  { %3435 = vmax.xlane.f32.xlu0 %v3434_v57  ;;  %3444 = vmax.xlane.f32.xlu1 %v3443_v47 }
 0x483   :  { %v3403_v8 = vpop.xlane.xlu1 %3402 }
 0x484   :  { %v3406_v30 = vpop.xlane.xlu2 %3405  ;;  %v3447_v61 = vsub.f32 %v3087_v0, %v3403_v8 }
 0x485   :  { %v3448_v56 = vsub.f32 %v3109_v7, %v3406_v30 }
 0x486   :  { %v3464_v51 = vmul.f32 1.442695, %v3447_v61 }
 0x487   :  { %v3466_v37 = vmul.f32 1.442695, %v3448_v56 }
 0x488   :  { %6961 = vpow2.f32 %v3464_v51 }
 0x489   :  { %6963 = vpow2.f32 %v3466_v37 }
 0x48b   :  { %v3415_v19 = vpop.xlane.xlu0 %3414 }
 0x48c   :  { %v3418_v11 = vpop.xlane.xlu1 %3417  ;;  %v3451_v44 = vsub.f32 %v3175_v52, %v3415_v19 }
 0x48d   :  { %v3452_v40 = vsub.f32 %v3197_v62, %v3418_v11 }
 0x48e   :  { %v9199_v12 = vpop.eup %6961  ;;  %v3472_v53 = vmul.f32 1.442695, %v3451_v44 }
 0x48f   :  { %v3474_v36 = vmul.f32 1.442695, %v3452_v40  ;;  %v9201_v18 = vpop.eup %6963  ;;  %v3497_v47 = vsel %vm1092_vm8, %v9199_v12, 0.0 }
 0x490   :  { %v3500_v8 = vsel %vm1092_vm8, %v9201_v18, 0.0  ;;  %3498 = vadd.xlane.f32.xlu2 %v3497_v47 }
 0x491   :  { %v3400_v57 = vpop.xlane.xlu2 %3399  ;;  %6965 = vpow2.f32 %v3474_v36  ;;  %3501 = vadd.xlane.f32.xlu0 %v3500_v8 }
 0x492   :  { %v3446_v51 = vsub.f32 %v3065_v54, %v3400_v57  ;;  %6967 = vpow2.f32 %v3472_v53 }
 0x494   :  { %v3462_v30 = vmul.f32 1.442695, %v3446_v51  ;;  %v3427_v62 = vpop.xlane.xlu1 %3426  ;;  %v3409_v44 = vpop.xlane.xlu0 %3408 }
 0x495   :  { %v3455_v11 = vsub.f32 %v9155_v60, %v3427_v62  ;;  %v3449_v40 = vsub.f32 %v9159_v21, %v3409_v44 }
 0x496   :  { %6969 = vpow2.f32 %v3462_v30 }
 0x497   :  { %v9209_v0 = vpop.eup %6965  ;;  %v3480_v7 = vmul.f32 1.442695, %v3455_v11  ;;  %v3468_v36 = vmul.f32 1.442695, %v3449_v40 }
 0x498   :  { %v9211_v37 = vpop.eup %6967  ;;  %v3512_v52 = vsel %vm1092_vm8, %v9209_v0, 0.0 }
 0x499   :  { %v3430_v54 = vpop.xlane.xlu2 %3429  ;;  %6971 = vpow2.f32 %v3480_v7  ;;  %3513 = vadd.xlane.f32.xlu2 %v3512_v52  ;;  %v3509_v53 = vsel %vm1092_vm8, %v9211_v37, 0.0 }
 0x49a   :  { %v3456_v60 = vsub.f32 %v9161_v49, %v3430_v54  ;;  %6973 = vpow2.f32 %v3468_v36  ;;  %3510 = vadd.xlane.f32.xlu1 %v3509_v53 }
 0x49c   :  { %v9218_v21 = vpop.eup %6969  ;;  %v3482_v61 = vmul.f32 1.442695, %v3456_v60  ;;  %v3421_v19 = vpop.xlane.xlu1 %3420 }
 0x49d   :  { %v3494_v56 = vsel %vm1092_vm8, %v9218_v21, 0.0  ;;  %v3412_v47 = vpop.xlane.xlu0 %3411  ;;  %v3453_v57 = vsub.f32 %v9171_v25, %v3421_v19 }
 0x49e   :  { %6975 = vpow2.f32 %v3482_v61  ;;  %3495 = vadd.xlane.f32.xlu0 %v3494_v56  ;;  %v3450_v8 = vsub.f32 %v9165_v38, %v3412_v47 }
 0x49f   :  { %v9224_v51 = vpop.eup %6971  ;;  %v3476_v49 = vmul.f32 1.442695, %v3453_v57 }
 0x4a0   :  { %v9226_v30 = vpop.eup %6973  ;;  %v3470_v62 = vmul.f32 1.442695, %v3450_v8  ;;  %v3521_v11 = vsel %vm1092_vm8, %v9224_v51, 0.0 }
 0x4a1   :  { %v3439_v44 = vpop.xlane.xlu2 %3438  ;;  %3522 = vadd.xlane.f32.xlu2 %v3521_v11  ;;  %v3503_v40 = vsel %vm1092_vm8, %v9226_v30, 0.0  ;;  %6977 = vpow2.f32 %v3476_v49 }
 0x4a2   :  { %v3459_v7 = vsub.f32 %v9173_v9, %v3439_v44  ;;  %3504 = vadd.xlane.f32.xlu1 %v3503_v40  ;;  %6979 = vpow2.f32 %v3470_v62 }
 0x4a4   :  { %v9233_v25 = vpop.eup %6975  ;;  %v3488_v38 = vmul.f32 1.442695, %v3459_v7  ;;  %v3424_v52 = vpop.xlane.xlu1 %3423 }
 0x4a5   :  { %v3524_v36 = vsel %vm1092_vm8, %v9233_v25, 0.0  ;;  %v3442_v54 = vpop.xlane.xlu0 %3441  ;;  %v3454_v53 = vsub.f32 %v9177_v45, %v3424_v52 }
 0x4a6   :  { %6981 = vpow2.f32 %v3488_v38  ;;  %3525 = vadd.xlane.f32.xlu0 %v3524_v36  ;;  %v3460_v60 = vsub.f32 %v9181_v58, %v3442_v54 }
 0x4a7   :  { %v9239_v61 = vpop.eup %6977  ;;  %v3478_v9 = vmul.f32 1.442695, %v3454_v53 }
 0x4a8   :  { %v3490_v56 = vmul.f32 1.442695, %v3460_v60  ;;  %v9241_v47 = vpop.eup %6979  ;;  %v3515_v57 = vsel %vm1092_vm8, %v9239_v61, 0.0 }
 0x4a9   :  { %v3433_v19 = vpop.xlane.xlu2 %3432  ;;  %6983 = vpow2.f32 %v3478_v9  ;;  %3516 = vadd.xlane.f32.xlu2 %v3515_v57  ;;  %v3506_v49 = vsel %vm1092_vm8, %v9241_v47, 0.0 }
 0x4aa   :  { %v3457_v8 = vsub.f32 %v9185_v28, %v3433_v19  ;;  %6985 = vpow2.f32 %v3490_v56  ;;  %3507 = vadd.xlane.f32.xlu1 %v3506_v49 }
 0x4ac   :  { %v9248_v45 = vpop.eup %6981  ;;  %v3484_v58 = vmul.f32 1.442695, %v3457_v8  ;;  %v3445_v11 = vpop.xlane.xlu1 %3444 }
 0x4ad   :  { %v3533_v62 = vsel %vm1092_vm8, %v9248_v45, 0.0  ;;  %v3436_v44 = vpop.xlane.xlu0 %3435  ;;  %v3461_v40 = vsub.f32 %v9195_v6, %v3445_v11 }
 0x4ae   :  { %6987 = vpow2.f32 %v3484_v58  ;;  %3534 = vadd.xlane.f32.xlu0 %v3533_v62  ;;  %v3458_v28 = vsub.f32 %v9189_v29, %v3436_v44 }
 0x4af   :  { %v9254_v7 = vpop.eup %6983  ;;  %v3492_v38 = vmul.f32 1.442695, %v3461_v40 }
 0x4b0   :  { %v3486_v36 = vmul.f32 1.442695, %v3458_v28  ;;  %v9256_v52 = vpop.eup %6985  ;;  %v3518_v54 = vsel %vm1092_vm8, %v9254_v7, 0.0 }
 0x4b1   :  { %6989 = vpow2.f32 %v3492_v38  ;;  %3519 = vadd.xlane.f32.xlu2 %v3518_v54  ;;  %v3536_v53 = vsel %vm1092_vm8, %v9256_v52, 0.0 }
 0x4b2   :  { %6991 = vpow2.f32 %v3486_v36  ;;  %3537 = vadd.xlane.f32.xlu1 %v3536_v53 }
 0x4b4   :  { %v9262_v60 = vpop.eup %6987 }
 0x4b5   :  { %v3527_v6 = vsel %vm1092_vm8, %v9262_v60, 0.0 }
 0x4b6   :  { %3528 = vadd.xlane.f32.xlu0 %v3527_v6 }
 0x4b7   :  { %v9266_v29 = vpop.eup %6989 }
 0x4b8   :  { %v9268_v9 = vpop.eup %6991  ;;  %v3539_v56 = vsel %vm1092_vm8, %v9266_v29, 0.0 }
 0x4b9   :  { %3540 = vadd.xlane.f32.xlu2 %v3539_v56  ;;  %v3530_v19 = vsel %vm1092_vm8, %v9268_v9, 0.0 }
 0x4ba   :  { %3531 = vadd.xlane.f32.xlu1 %v3530_v19 }
 0x503   :  { %v3499_v57 = vpop.xlane.xlu2 %3498 }
 0x504   :  { %6993 = vrcp.f32 %v3499_v57  ;;  %v3502_v8 = vpop.xlane.xlu0 %3501  ;;  %v3566_v44 = vand.u32 2147483647, %v3499_v57  ;;  %v3568_v36 = vand.u32 2147483648, %v3499_v57  ;;  %vm3562_vm5 = vweird.f32 %v3499_v57 }
 0x505   :  { %6995 = vrcp.f32 %v3502_v8  ;;  %v3581_v19 = vand.u32 2147483647, %v3502_v8  ;;  %v3583_v58 = vand.u32 2147483648, %v3502_v8  ;;  %vm3577_vm3 = vweird.f32 %v3502_v8 }
 0x506   :  { %vm9286_vm9 = vcmp.eq.f32.partialorder %v3566_v44, 8.507059e+37 }
 0x507   :  { %vm9293_vm11 = vcmp.eq.f32.partialorder %v3581_v19, 8.507059e+37  ;;  %v3584_v28 = vor.u32 1.1754944e-38, %v3583_v58 }
 0x50a   :  { %v6994_v49 = vpop.eup %6993 }
 0x50b   :  { %v6996_v62 = vpop.eup %6995  ;;  %v3558_v11 = vmul.f32 %v6994_v49, %v3499_v57  ;;  %vm3563_vm0 = vweird.f32 %v6994_v49 }
 0x50c   :  { %v9275_v40 = vpop.xlane.xlu2 %3513  ;;  %v3573_v54 = vmul.f32 %v6996_v62, %v3502_v8  ;;  %vm3578_vm7 = vweird.f32 %v6996_v62  ;;  %vm3564_vm10 = vmor %vm3562_vm5, %vm3563_vm0 }
 0x50d   :  { %6997 = vrcp.f32 %v9275_v40  ;;  %v9280_v53 = vpop.xlane.xlu1 %3510  ;;  %v3559_v56 = vsub.f32 1.0, %v3558_v11  ;;  %v3569_v11 = vor.u32 1.1754944e-38, %v3568_v36  ;;  %vm3637_vm12 = vweird.f32 %v9275_v40  ;;  %vm3579_vm15 = vmor %vm3577_vm3, %vm3578_vm7 }
 0x50e   :  { %6999 = vrcp.f32 %v9280_v53  ;;  %v3574_v1 = vsub.f32 1.0, %v3573_v54  ;;  %v3641_v10 = vand.u32 2147483647, %v9275_v40  ;;  %v3643_v36 = vand.u32 2147483648, %v9275_v40 }
 0x50f   :  { %v3560_v38 = vmul.f32 %v6994_v49, %v3559_v56  ;;  %vm3622_vm14 = vweird.f32 %v9280_v53  ;;  %v3626_v58 = vand.u32 2147483647, %v9280_v53  ;;  %v3628_v19 = vand.u32 2147483648, %v9280_v53 }
 0x510   :  { %v3575_v6 = vmul.f32 %v6996_v62, %v3574_v1  ;;  %vm9321_vm4 = vcmp.eq.f32.partialorder %v3641_v10, 8.507059e+37  ;;  %v10709_v10 = vrot.slane %v8221_v41, 6 }
 0x511   :  { %v9290_v17 = vpop.xlane.xlu0 %3495  ;;  %v3561_v16 = vadd.f32 %v6994_v49, %v3560_v38  ;;  %vm9325_vm5 = vcmp.eq.f32.partialorder %v3626_v58, 8.507059e+37  ;;  %v3629_v54 = vor.u32 1.1754944e-38, %v3628_v19  ;;  %v10712_v58 = vrot.slane %v8230_v3, 6 }
 0x512   :  { %7001 = vrcp.f32 %v9290_v17  ;;  %v3576_v56 = vadd.f32 %v6996_v62, %v3575_v6 }
 0x513   :  { %v6998_v44 = vpop.eup %6997  ;;  %v3565_v4 = vsel %vm3564_vm10, %v6994_v49, %v3561_v16  ;;  %v3551_v16 = vand.u32 2147483647, %v9290_v17 }
 0x514   :  { %v7000_v1 = vpop.eup %6999  ;;  %v3633_v38 = vmul.f32 %v6998_v44, %v9275_v40  ;;  %v9306_v24 = vpop.xlane.xlu2 %3522  ;;  %v3570_v57 = vsel %vm9286_vm9, %v3569_v11, %v3565_v4  ;;  %v3580_v6 = vsel %vm3579_vm15, %v6996_v62, %v3576_v56  ;;  %v3644_v62 = vor.u32 1.1754944e-38, %v3643_v36 }
 0x515   :  { %v3618_v34 = vmul.f32 %v7000_v1, %v9280_v53  ;;  %v9311_v43 = vpop.xlane.xlu1 %3504  ;;  %v3571_v8 = vmul.f32 %v9199_v12, %v3570_v57  ;;  %v3585_v49 = vsel %vm9293_vm11, %v3584_v28, %v3580_v6  ;;  %7003 = vrcp.f32 %v9306_v24 }
 0x516   :  { %v3634_v50 = vsub.f32 1.0, %v3633_v38  ;;  %v3586_v13 = vmul.f32 %v9201_v18, %v3585_v49  ;;  %vm3638_vm6 = vweird.f32 %v6998_v44  ;;  %7005 = vrcp.f32 %v9311_v43 }
 0x517   :  { %v3619_v11 = vsub.f32 1.0, %v3618_v34  ;;  %6534 = vmatmul.msk.f32.vlgmr.msrb.gmra.mxu2 %vm2214_vm13, %v3571_v8  ;;  %vm3623_vm0 = vweird.f32 %v7000_v1  ;;  %vm3547_vm9 = vweird.f32 %v9290_v17  ;;  %vm9340_vm3 = vcmp.eq.f32.partialorder %v3551_v16, 8.507059e+37  ;;  %vm3639_vm7 = vmor %vm3637_vm12, %vm3638_vm6 }
 0x518   :  { %v9318_v27 = vpop.eup %7001  ;;  %v3635_v56 = vmul.f32 %v6998_v44, %v3634_v50  ;;  %6536 = vmatmul.msk.f32.vlgmr.msra.gmra.mxu3 %vm2214_vm13, %v3586_v13  ;;  %6549 = vmatpush.msk.msrb.mxu2 %vm570_vm2, %v10709_v10  ;;  %v3553_v38 = vand.u32 2147483648, %v9290_v17  ;;  %v3686_v57 = vand.u32 2147483647, %v9306_v24  ;;  %v3688_v6 = vand.u32 2147483648, %v9306_v24  ;;  %vm3624_vm11 = vmor %vm3622_vm14, %vm3623_vm0 }
 0x519   :  { %v3620_v28 = vmul.f32 %v7000_v1, %v3619_v11  ;;  %v9336_v34 = vpop.xlane.xlu0 %3525  ;;  %v3543_v18 = vmul.f32 %v9318_v27, %v9290_v17  ;;  %6551 = vmatpush.msk.msra.mxu3 %vm570_vm2, %v10712_v58  ;;  %v3596_v16 = vand.u32 2147483647, %v9311_v43  ;;  %v3598_v13 = vand.u32 2147483648, %v9311_v43 }
 0x51a   :  { %v3636_v50 = vadd.f32 %v6998_v44, %v3635_v56  ;;  %7007 = vrcp.f32 %v9336_v34  ;;  %vm3548_vm12 = vweird.f32 %v9318_v27  ;;  %vm3682_vm10 = vweird.f32 %v9306_v24 }
 0x51b   :  { %v3621_v19 = vadd.f32 %v7000_v1, %v3620_v28  ;;  %v7004_v8 = vpop.eup %7003  ;;  %v3544_v11 = vsub.f32 1.0, %v3543_v18  ;;  %vm9375_vm14 = vcmp.eq.f32.partialorder %v3686_v57, 8.507059e+37  ;;  %vm3592_vm15 = vweird.f32 %v9311_v43  ;;  %vm3549_vm6 = vmor %vm3547_vm9, %vm3548_vm12 }
 0x51c   :  { %v3640_v49 = vsel %vm3639_vm7, %v6998_v44, %v3636_v50  ;;  %v3678_v28 = vmul.f32 %v7004_v8, %v9306_v24  ;;  %v9363_v10 = vpop.xlane.xlu2 %3516  ;;  %v7006_v44 = vpop.eup %7005  ;;  %v3554_v12 = vor.u32 1.1754944e-38, %v3553_v38  ;;  %v3689_v57 = vor.u32 1.1754944e-38, %v3688_v6 }
 0x51d   :  { %v3645_v40 = vsel %vm9321_vm4, %v3644_v62, %v3640_v49  ;;  %v3625_v56 = vsel %vm3624_vm11, %v7000_v1, %v3621_v19  ;;  %v3545_v18 = vmul.f32 %v9318_v27, %v3544_v11  ;;  %7009 = vrcp.f32 %v9363_v10  ;;  %v9370_v58 = vpop.xlane.xlu1 %3507 }
 0x51e   :  { %v3646_v50 = vmul.f32 %v9209_v0, %v3645_v40  ;;  %v3630_v53 = vsel %vm9325_vm5, %v3629_v54, %v3625_v56  ;;  %v3679_v4 = vsub.f32 1.0, %v3678_v28  ;;  %v3588_v62 = vmul.f32 %v7006_v44, %v9311_v43 }
 0x51f   :  { %v3631_v1 = vmul.f32 %v9211_v37, %v3630_v53  ;;  %v3546_v0 = vadd.f32 %v9318_v27, %v3545_v18  ;;  %vm3683_vm4 = vweird.f32 %v7004_v8  ;;  %7011 = vrcp.f32 %v9370_v58 }
 0x520   :  { %v3680_v54 = vmul.f32 %v7004_v8, %v3679_v4  ;;  %v3589_v49 = vsub.f32 1.0, %v3588_v62  ;;  %6544 = vmatmul.msk.f32.vlgmr.msrb.gmra.mxu3 %vm2214_vm13, %v3646_v50  ;;  %v9388_v37 = vpop.eup %7007  ;;  %vm9390_vm5 = vcmp.eq.f32.partialorder %v3596_v16, 8.507059e+37  ;;  %v3599_v38 = vor.u32 1.1754944e-38, %v3598_v13  ;;  %vm3684_vm9 = vmor %vm3682_vm10, %vm3683_vm4 }
 0x521   :  { %6542 = vmatmul.msk.f32.vlgmr.msra.gmra.mxu2 %vm2214_vm13, %v3631_v1  ;;  %v3550_v40 = vsel %vm3549_vm6, %v9318_v27, %v3546_v0  ;;  %v10717_v56 = vrot.slane %v8233_v23, 6  ;;  %v10718_v17 = vrot.slane %v10629_v35, 6  ;;  %vm3593_vm0 = vweird.f32 %v7006_v44 }
 0x522   :  { %v3681_v28 = vadd.f32 %v7004_v8, %v3680_v54  ;;  %v3590_v50 = vmul.f32 %v7006_v44, %v3589_v49  ;;  %v3555_v6 = vsel %vm9340_vm3, %v3554_v12, %v3550_v40  ;;  %vm3652_vm7 = vweird.f32 %v9363_v10  ;;  %vm3594_vm3 = vmor %vm3592_vm15, %vm3593_vm0 }
 0x523   :  { %6557 = vmatpush.msk.msra.mxu2 %vm570_vm2, %v10717_v56  ;;  %6559 = vmatpush.msk.msrb.mxu3 %vm570_vm2, %v10718_v17  ;;  %v7010_v16 = vpop.eup %7009  ;;  %v3556_v27 = vmul.f32 %v9218_v21, %v3555_v6  ;;  %v3693_v13 = vmul.f32 %v9388_v37, %v9336_v34  ;;  %vm3697_vm11 = vweird.f32 %v9336_v34  ;;  %v3658_v36 = vand.u32 2147483648, %v9363_v10 }
 0x524   :  { %v3685_v53 = vsel %vm3684_vm9, %v7004_v8, %v3681_v28  ;;  %v3591_v18 = vadd.f32 %v7006_v44, %v3590_v50  ;;  %v3648_v1 = vmul.f32 %v7010_v16, %v9363_v10  ;;  %v9413_v4 = vpop.xlane.xlu2 %3519  ;;  %v3656_v21 = vand.u32 2147483647, %v9363_v10 }
 0x525   :  { %v3690_v24 = vsel %vm9375_vm14, %v3689_v57, %v3685_v53  ;;  %v3694_v62 = vsub.f32 1.0, %v3693_v13  ;;  %vm3698_vm12 = vweird.f32 %v9388_v37  ;;  %6532 = vmatmul.msk.f32.vlgmr.msra.gmra.mxu1 %vm2214_vm13, %v3556_v27  ;;  %v7012_v8 = vpop.eup %7011  ;;  %v3703_v49 = vand.u32 2147483648, %v9336_v34  ;;  %v9424_v40 = vpop.xlane.xlu1 %3537 }
 0x526   :  { %v3691_v0 = vmul.f32 %v9224_v51, %v3690_v24  ;;  %v3595_v12 = vsel %vm3594_vm3, %v7006_v44, %v3591_v18  ;;  %v3649_v54 = vsub.f32 1.0, %v3648_v1  ;;  %v10719_v19 = vrot.slane %v7718_v5, 6  ;;  %vm3699_vm14 = vmor %vm3697_vm11, %vm3698_vm12  ;;  %v9446_v13 = vpop.xlane.xlu0 %3534 }
 0x527   :  { %v3600_v43 = vsel %vm9390_vm5, %v3599_v38, %v3595_v12  ;;  %v3603_v57 = vmul.f32 %v7012_v8, %v9370_v58  ;;  %v3695_v56 = vmul.f32 %v9388_v37, %v3694_v62  ;;  %v3701_v17 = vand.u32 2147483647, %v9336_v34 }
 0x528   :  { %6547 = vmatpush.msk.msra.mxu1 %vm570_vm2, %v10719_v19  ;;  %v3601_v51 = vmul.f32 %v9226_v30, %v3600_v43  ;;  %v3650_v44 = vmul.f32 %v7010_v16, %v3649_v54  ;;  %vm3653_vm10 = vweird.f32 %v7010_v16  ;;  %v3659_v28 = vor.u32 1.1754944e-38, %v3658_v36 }
 0x529   :  { %6550 = vmatmul.msk.f32.vlgmr.msrb.gmra.mxu2 %vm2214_vm13, %v3691_v0  ;;  %v3604_v50 = vsub.f32 1.0, %v3603_v57  ;;  %v3611_v6 = vand.u32 2147483647, %v9370_v58  ;;  %v3696_v27 = vadd.f32 %v9388_v37, %v3695_v56  ;;  %7013 = vrcp.f32 %v9413_v4  ;;  %vm3654_vm15 = vmor %vm3652_vm7, %vm3653_vm10 }
 0x52a   :  { %4249 = vmatpush.xpose.msrb.mxu2 %v10672_v26  ;;  %v3651_v11 = vadd.f32 %v7010_v16, %v3650_v44  ;;  %v3613_v38 = vand.u32 2147483648, %v9370_v58  ;;  %v3704_v30 = vor.u32 1.1754944e-38, %v3703_v49  ;;  %7015 = vrcp.f32 %v9424_v40  ;;  %6538 = vmatmul.msk.f32.vlgmr.msrb.gmra.mxu0 %vm2214_vm13, %v3601_v51 }
 0x52b   :  { %v3605_v26 = vmul.f32 %v7012_v8, %v3604_v50  ;;  %vm3608_vm4 = vweird.f32 %v7012_v8  ;;  %v3700_v53 = vsel %vm3699_vm14, %v9388_v37, %v3696_v27  ;;  %vm3702_vm6 = vcmp.eq.f32.partialorder %v3701_v17, 8.507059e+37 }
 0x52c   :  { %v10720_v18 = vrot.slane %v10647_v14, 6  ;;  %v3655_v34 = vsel %vm3654_vm15, %v7010_v16, %v3651_v11  ;;  %vm3657_vm5 = vcmp.eq.f32.partialorder %v3656_v21, 8.507059e+37  ;;  %v3705_v1 = vsel %vm3702_vm6, %v3704_v30, %v3700_v53  ;;  %v9458_v10 = vpop.xlane.xlu2 %3540 }
 0x52d   :  { %v3660_v36 = vsel %vm3657_vm5, %v3659_v28, %v3655_v34  ;;  %v3606_v24 = vadd.f32 %v7012_v8, %v3605_v26  ;;  %vm3607_vm0 = vweird.f32 %v9370_v58  ;;  %v3706_v62 = vmul.f32 %v9233_v25, %v3705_v1  ;;  %v9465_v25 = vpop.xlane.xlu1 %3531 }
 0x52e   :  { %6553 = vmatpush.msk.msrb.mxu0 %vm570_vm2, %v10720_v18  ;;  %v3661_v0 = vmul.f32 %v9239_v61, %v3660_v36  ;;  %vm3609_vm9 = vmor %vm3607_vm0, %vm3608_vm4  ;;  %v3614_v37 = vor.u32 1.1754944e-38, %v3613_v38  ;;  %7017 = vrcp.f32 %v9446_v13  ;;  %vm3612_vm7 = vcmp.eq.f32.partialorder %v3611_v6, 8.507059e+37  ;;  %v9481_v28 = vpop.xlane.xlu0 %3528 }
 0x52f   :  { %v7014_v12 = vpop.eup %7013  ;;  %v3610_v54 = vsel %vm3609_vm9, %v7012_v8, %v3606_v24  ;;  %6552 = vmatmul.msk.f32.vlgmr.msra.gmra.mxu3 %vm2214_vm13, %v3706_v62  ;;  %7019 = vrcp.f32 %v9458_v10  ;;  %v4094_v19 = vrot.slane %v10656_v39, 6  ;;  %v4172_v8 = vrot.slane %v8324_v42, 6 }
 0x530   :  { %v7016_v16 = vpop.eup %7015  ;;  %v3615_v21 = vsel %vm3612_vm7, %v3614_v37, %v3610_v54  ;;  %v3663_v49 = vmul.f32 %v7014_v12, %v9413_v4  ;;  %4269 = vmatpush.xpose.msra.mxu3 %v7825_v20  ;;  %v3671_v57 = vand.u32 2147483647, %v9413_v4  ;;  %v3673_v56 = vand.u32 2147483648, %v9413_v4 }
 0x531   :  { %v3616_v61 = vmul.f32 %v9241_v47, %v3615_v21  ;;  %v3753_v58 = vmul.f32 %v7016_v16, %v9424_v40  ;;  %v3761_v17 = vand.u32 2147483647, %v9424_v40  ;;  %7021 = vrcp.f32 %v9465_v25 }
 0x532   :  { %v3664_v43 = vsub.f32 1.0, %v3663_v49  ;;  %6546 = vmatmul.msk.f32.vlgmr.msra.gmra.mxu0 %vm2214_vm13, %v3661_v0  ;;  %vm3667_vm11 = vweird.f32 %v9413_v4  ;;  %vm3668_vm3 = vweird.f32 %v7014_v12  ;;  %v3763_v44 = vand.u32 2147483648, %v9424_v40 }
 0x533   :  { %v3754_v51 = vsub.f32 1.0, %v3753_v58  ;;  %6540 = vmatmul.msk.f32.vlgmr.msrb.gmra.mxu1 %vm2214_vm13, %v3616_v61  ;;  %6561 = vmatpush.msk.msra.mxu0 %vm570_vm2, %v4172_v8  ;;  %vm3757_vm12 = vweird.f32 %v9424_v40  ;;  %vm3758_vm10 = vweird.f32 %v7016_v16  ;;  %vm3672_vm14 = vcmp.eq.f32.partialorder %v3671_v57, 8.507059e+37  ;;  %vm3669_vm4 = vmor %vm3667_vm11, %vm3668_vm3 }
 0x534   :  { %v7018_v20 = vpop.eup %7017  ;;  %v3665_v47 = vmul.f32 %v7014_v12, %v3664_v43  ;;  %6555 = vmatpush.msk.msrb.mxu1 %vm570_vm2, %v4094_v19  ;;  %v3674_v38 = vor.u32 1.1754944e-38, %v3673_v56  ;;  %vm9488_vm15 = vcmp.eq.f32.partialorder %v3761_v17, 8.507059e+37  ;;  %v3746_v53 = vand.u32 2147483647, %v9446_v13  ;;  %vm3759_vm6 = vmor %vm3757_vm12, %vm3758_vm10 }
 0x535   :  { %v3755_v50 = vmul.f32 %v7016_v16, %v3754_v51  ;;  %v3738_v6 = vmul.f32 %v7018_v20, %v9446_v13  ;;  %v9486_v27 = vpop.eup %7019  ;;  %7023 = vrcp.f32 %v9481_v28  ;;  %v3764_v18 = vor.u32 1.1754944e-38, %v3763_v44 }
 0x536   :  { %v3666_v11 = vadd.f32 %v7014_v12, %v3665_v47  ;;  %vm3743_vm5 = vweird.f32 %v7018_v20  ;;  %v3748_v34 = vand.u32 2147483648, %v9446_v13  ;;  %v3768_v0 = vmul.f32 %v9486_v27, %v9458_v10 }
 0x537   :  { %v3756_v30 = vadd.f32 %v7016_v16, %v3755_v50  ;;  %v3739_v26 = vsub.f32 1.0, %v3738_v6  ;;  %v7022_v1 = vpop.eup %7021  ;;  %vm3742_vm0 = vweird.f32 %v9446_v13  ;;  %vm3747_vm7 = vcmp.eq.f32.partialorder %v3746_v53, 8.507059e+37  ;;  %v10731_v53 = vld [vmem:[#allocation32_spill] sm:$0xff] }
 0x538   :  { %v3670_v40 = vsel %vm3669_vm4, %v7014_v12, %v3666_v11  ;;  %v3723_v21 = vmul.f32 %v7022_v1, %v9465_v25  ;;  %vm3744_vm9 = vmor %vm3742_vm0, %vm3743_vm5  ;;  %v3749_v61 = vor.u32 1.1754944e-38, %v3748_v34  ;;  %v3769_v8 = vsub.f32 1.0, %v3768_v0  ;;  %v10734_v34 = vld [vmem:[#allocation34_spill] sm:$0xff] }
 0x539   :  { %v3675_v36 = vsel %vm3672_vm14, %v3674_v38, %v3670_v40  ;;  %v3760_v24 = vsel %vm3759_vm6, %v7016_v16, %v3756_v30  ;;  %v3740_v62 = vmul.f32 %v7018_v20, %v3739_v26  ;;  %v3733_v43 = vand.u32 2147483648, %v9465_v25  ;;  %v10730_v26 = vld [vmem:[#allocation30_spill] sm:$0xff]  ;;  %v10732_v40 = vld [vmem:[#allocation27_spill] sm:$0xff] }
 0x53a   :  { %v3676_v37 = vmul.f32 %v9254_v7, %v3675_v36  ;;  %v3765_v54 = vsel %vm9488_vm15, %v3764_v18, %v3760_v24  ;;  %v3724_v16 = vsub.f32 1.0, %v3723_v21  ;;  %v3731_v7 = vand.u32 2147483647, %v9465_v25  ;;  %v10733_v18 = vld [vmem:[#allocation31_spill] sm:$0xff] }
 0x53b   :  { %v3766_v12 = vmul.f32 %v9256_v52, %v3765_v54  ;;  %v3741_v49 = vadd.f32 %v7018_v20, %v3740_v62  ;;  %v7024_v58 = vpop.eup %7023  ;;  %vm3728_vm11 = vweird.f32 %v7022_v1  ;;  %vm3727_vm3 = vweird.f32 %v9465_v25  ;;  %v10735_v36 = vld [vmem:[#allocation35_spill] sm:$0xff] }
 0x53c   :  { %6548 = vmatmul.msk.f32.vlgmr.msra.gmra.mxu1 %vm2214_vm13, %v3676_v37  ;;  %v3725_v57 = vmul.f32 %v7022_v1, %v3724_v16  ;;  %v3708_v13 = vmul.f32 %v7024_v58, %v9481_v28  ;;  %vm3729_vm12 = vmor %vm3727_vm3, %vm3728_vm11  ;;  %vm3732_vm10 = vcmp.eq.f32.partialorder %v3731_v7, 8.507059e+37  ;;  %v3716_v47 = vand.u32 2147483647, %v9481_v28  ;;  %v10736_v62 = vld [vmem:[#allocation55_spill] sm:$0xff] }
 0x53d   :  { %v3745_v19 = vsel %vm3744_vm9, %v7018_v20, %v3741_v49  ;;  %6560 = vmatmul.msk.f32.vlgmr.msrb.gmra.mxu3 %vm2214_vm13, %v3766_v12  ;;  %4229 = vmatpush.xpose.msra.mxu1 %v7747_v22  ;;  %v3734_v20 = vor.u32 1.1754944e-38, %v3733_v43  ;;  %v3718_v22 = vand.u32 2147483648, %v9481_v28  ;;  %v3770_v44 = vmul.f32 %v9486_v27, %v3769_v8  ;;  %v10738_v49 = vld [vmem:[#allocation53_spill] sm:$0xff]  ;;  %v10740_v43 = vld [vmem:[#allocation22_spill] sm:$0xff] }
 0x53e   :  { %v3750_v52 = vsel %vm3747_vm7, %v3749_v61, %v3745_v19  ;;  %4349 = vmatpush.xpose.msrb.mxu3 %v10556_v33  ;;  %v3726_v17 = vadd.f32 %v7022_v1, %v3725_v57  ;;  %v3709_v51 = vsub.f32 1.0, %v3708_v13  ;;  %vm3713_vm14 = vweird.f32 %v7024_v58 }
 0x53f   :  { %v3751_v56 = vmul.f32 %v9248_v45, %v3750_v52  ;;  %vm3712_vm15 = vweird.f32 %v9481_v28  ;;  %v3719_v11 = vor.u32 1.1754944e-38, %v3718_v22  ;;  %v3771_v38 = vadd.f32 %v9486_v27, %v3770_v44 }
 0x540   :  { %v3730_v50 = vsel %vm3729_vm12, %v7022_v1, %v3726_v17  ;;  %v3710_v6 = vmul.f32 %v7024_v58, %v3709_v51  ;;  %vm3714_vm4 = vmor %vm3712_vm15, %vm3713_vm14  ;;  %vm3773_vm6 = vweird.f32 %v9486_v27  ;;  %vm3717_vm5 = vcmp.eq.f32.partialorder %v3716_v47, 8.507059e+37 }
 0x541   :  { %6558 = vmatmul.msk.f32.vlgmr.msra.gmra.mxu2 %vm2214_vm13, %v3751_v56  ;;  %v3735_v33 = vsel %vm3732_vm10, %v3734_v20, %v3730_v50  ;;  %vm3772_vm0 = vweird.f32 %v9458_v10  ;;  %v3776_v28 = vand.u32 2147483647, %v9458_v10  ;;  %v10741_v56 = vld [vmem:[#allocation58_spill] sm:$0xff] }
 0x542   :  { %4329 = vmatpush.xpose.msra.mxu2 %v10555_v32  ;;  %v3736_v45 = vmul.f32 %v9268_v9, %v3735_v33  ;;  %v3711_v25 = vadd.f32 %v7024_v58, %v3710_v6  ;;  %v3778_v32 = vand.u32 2147483648, %v9458_v10  ;;  %vm3774_vm9 = vmor %vm3772_vm0, %vm3773_vm6  ;;  %v10742_v20 = vld [vmem:[#allocation38_spill] sm:$0xff] }
 0x543   :  { %v3775_v30 = vsel %vm3774_vm9, %v9486_v27, %v3771_v38  ;;  %vm3777_vm7 = vcmp.eq.f32.partialorder %v3776_v28, 8.507059e+37  ;;  %v10728_v27 = vld [vmem:[#allocation23_spill] sm:$0xff] }
 0x544   :  { %v3715_v4 = vsel %vm3714_vm4, %v7024_v58, %v3711_v25  ;;  %6556 = vmatmul.msk.f32.vlgmr.msrb.gmra.mxu1 %vm2214_vm13, %v3736_v45  ;;  %v10739_v58 = vld [vmem:[#allocation56_spill] sm:$0xff]  ;;  %v10743_v45 = vld [vmem:[#allocation59_spill] sm:$0xff] }
 0x545   :  { %4270 = vmatmul.f32.vlgmr.msra.gmra.mxu3 %v10641_v48  ;;  %v3720_v9 = vsel %vm3717_vm5, %v3719_v11, %v3715_v4  ;;  %4309 = vmatpush.xpose.msrb.mxu1 %v10560_v63  ;;  %v9537_v63 = vld [vmem:[%s10390_s4 + $0x8] ss:$0 sm:$0xff]  ;;  %s10802_s4 = sld [smem:[#allocation67_spill]] }
 0x546   :  { %4429 = vmatpush.xpose.msra.mxu3 %v8230_v3  ;;  %v3721_v48 = vmul.f32 %v9262_v60, %v3720_v9  ;;  %v3779_v3 = vor.u32 1.1754944e-38, %v3778_v32  ;;  %v10724_v60 = vld [vmem:[#allocation29_spill] sm:$0xff] }
 0x548   :  { %6554 = vmatmul.msk.f32.vlgmr.msrb.gmra.mxu0 %vm2214_vm13, %v3721_v48  ;;  %v3780_v10 = vsel %vm3777_vm7, %v3779_v3, %v3775_v30 }
 0x549   :  { %4250 = vmatmul.f32.vlgmr.msrb.gmra.mxu2 %v10639_v31  ;;  %4289 = vmatpush.xpose.msrb.mxu0 %v10559_v46  ;;  %v10723_v31 = vld [vmem:[#allocation46_spill] sm:$0xff]  ;;  %v3781_v46 = vmul.f32 %v9266_v29, %v3780_v10 }
 0x54a   :  { %4409 = vmatpush.xpose.msrb.mxu2 %v8221_v41  ;;  %v501_v41 = vadd.f32 %v9537_v63, %v10723_v31 }
 0x54c   :  { %4230 = vmatmul.f32.vlgmr.msra.gmra.mxu1 %v10663_v59  ;;  %v10725_v59 = vld [vmem:[#allocation24_spill] sm:$0xff] }
 0x54d   :  { %4350 = vmatmul.f32.vlgmr.msrb.gmra.mxu3 %v10654_v55  ;;  %4389 = vmatpush.xpose.msra.mxu1 %v7718_v5  ;;  %v599_v55 = vrot.slane %v501_v41, 4  ;;  %v590_v5 = vrot.slane %v501_v41, 2 }
 0x54e   :  { %4509 = vmatpush.xpose.msrb.mxu3 %v10629_v35  ;;  %v10726_v35 = vld [vmem:[#allocation47_spill] sm:$0xff] }
 0x54f   :  { %v503_v29 = vadd.f32 %v9537_v63, %v10726_v35 }
 0x550   :  { %6562 = vmatmul.msk.f32.vlgmr.msra.gmra.mxu0 %vm2214_vm13, %v3781_v46 }
 0x551   :  { %4330 = vmatmul.f32.vlgmr.msra.gmra.mxu2 %v10652_v2  ;;  %4369 = vmatpush.xpose.msra.mxu0 %v10636_v15  ;;  %v10727_v2 = vld [vmem:[#allocation28_spill] sm:$0xff]  ;;  %v10729_v15 = vld [vmem:[#allocation33_spill] sm:$0xff]  ;;  %v641_v1 = vrot.slane %v503_v29, 6 }
 0x552   :  { %4489 = vmatpush.xpose.msra.mxu2 %v8233_v23  ;;  %v632_v23 = vrot.slane %v503_v29, 4 }
 0x554   :  { %4310 = vmatmul.f32.vlgmr.msrb.gmra.mxu1 %v10725_v59 }
 0x555   :  { %4430 = vmatmul.f32.vlgmr.msra.gmra.mxu3 %v10724_v60  ;;  %4469 = vmatpush.xpose.msrb.mxu1 %v10656_v39  ;;  %v623_v39 = vrot.slane %v503_v29, 2 }
 0x556   :  { %6567 = vmatpush.msk.msra.mxu3 %vm570_vm2, %v599_v55 }
 0x558   :  { %4290 = vmatmul.f32.vlgmr.msrb.gmra.mxu0 %v10728_v27 }
 0x559   :  { %4410 = vmatmul.f32.vlgmr.msrb.gmra.mxu2 %v10727_v2  ;;  %4449 = vmatpush.xpose.msrb.mxu0 %v10647_v14  ;;  %v608_v14 = vrot.slane %v501_v41, 6 }
 0x55a   :  { %6565 = vmatpush.msk.msrb.mxu2 %vm570_vm2, %v590_v5 }
 0x55c   :  { %4390 = vmatmul.f32.vlgmr.msra.gmra.mxu1 %v10730_v26 }
 0x55d   :  { %4510 = vmatmul.f32.vlgmr.msrb.gmra.mxu3 %v10729_v15  ;;  %6563 = vmatpush.msk.msra.mxu1 %vm570_vm2, %v501_v41 }
 0x55e   :  { %6575 = vmatpush.msk.msrb.mxu3 %vm570_vm2, %v632_v23 }
 0x560   :  { %4370 = vmatmul.f32.vlgmr.msra.gmra.mxu0 %v10732_v40 }
 0x561   :  { %4490 = vmatmul.f32.vlgmr.msra.gmra.mxu2 %v10731_v53  ;;  %4529 = vmatpush.xpose.msra.mxu0 %v8324_v42  ;;  %v10737_v42 = vld [vmem:[#allocation51_spill] sm:$0xff] }
 0x562   :  { %6573 = vmatpush.msk.msra.mxu2 %vm570_vm2, %v623_v39 }
 0x564   :  { %4470 = vmatmul.f32.vlgmr.msrb.gmra.mxu1 %v10733_v18 }
 0x565   :  { %6571 = vmatpush.msk.msrb.mxu1 %vm570_vm2, %v503_v29 }
 0x568   :  { %4450 = vmatmul.f32.vlgmr.msrb.gmra.mxu0 %v10734_v34 }
 0x569   :  { %6569 = vmatpush.msk.msrb.mxu0 %vm570_vm2, %v608_v14 }
 0x570   :  { %4530 = vmatmul.f32.vlgmr.msra.gmra.mxu0 %v10735_v36 }
 0x571   :  { %6577 = vmatpush.msk.msra.mxu0 %vm570_vm2, %v641_v1 }
 0x59a   :  { %v3831_v24 = vpop.f32.mrf.mxu2 }
 0x59b   :  { %v9575_v0 = vadd.f32 %v3831_v24, %v10736_v62  ;;  %v3857_v37 = vpop.f32.mrf.mxu3 }
 0x59c   :  { %v9578_v54 = vadd.f32 %v3857_v37, %v10737_v42 }
 0x5a2   :  { %v3805_v21 = vpop.f32.mrf.mxu1 }
 0x5a3   :  { %v9583_v61 = vadd.f32 %v3805_v21, %v10738_v49  ;;  %v9588_v8 = vpop.f32.mrf.mxu3 }
 0x5a4   :  { %v9580_v12 = vpop.f32.mrf.mxu2 }
 0x5a7   :  { %v3883_v16 = vpop.f32.mrf.mxu0 }
 0x5a8   :  { %v9586_v19 = vadd.f32 %v3883_v16, %v10739_v58 }
 0x5ac   :  { %v4039_v7 = vpop.f32.mrf.mxu2 }
 0x5ad   :  { %v9591_v52 = vadd.f32 %v4039_v7, %v10740_v43 }
 0x5af   :  { %v9601_v22 = vpop.f32.mrf.mxu0 }
 0x5b0   :  { %v9593_v57 = vpop.f32.mrf.mxu1 }
 0x5b2   :  { %v4065_v13 = vpop.f32.mrf.mxu3 }
 0x5b3   :  { %v9596_v17 = vadd.f32 %v4065_v13, %v10741_v56 }
 0x5b9   :  { %v4013_v51 = vpop.f32.mrf.mxu1 }
 0x5ba   :  { %v9599_v47 = vadd.f32 %v4013_v51, %v10742_v20 }
 0x5c0   :  { %v9603_v44 = vpop.f32.mrf.mxu3 }
 0x5c1   :  { %v9605_v50 = vpop.f32.mrf.mxu1 }
 0x5c4   :  { %v9607_v6 = vpop.f32.mrf.mxu2 }
 0x5c5   :  { %v4091_v33 = vpop.f32.mrf.mxu0 }
 0x5c6   :  { %v9610_v25 = vadd.f32 %v4091_v33, %v10743_v45 }
 0x5c8   :  { %v9612_v11 = vpop.f32.mrf.mxu3 }
 0x5c9   :  { %v4231_v38 = vpop.f32.mrf.mxu1  ;;  %v4540_v60 = vsel %vm1092_vm8, %v9612_v11, -inf }
 0x5ca   :  { %v4534_v32 = vsel %vm1092_vm8, %v4231_v38, -inf }
 0x5cb   :  { %4535 = vmax.xlane.f32.xlu2 %v4534_v32 }
 0x5cc   :  { %v9614_v4 = vpop.f32.mrf.mxu2 }
 0x5cd   :  { %v9617_v9 = vpop.f32.mrf.mxu0  ;;  %v4537_v55 = vsel %vm1092_vm8, %v9614_v4, -inf }
 0x5d0   :  { %v4351_v28 = vpop.f32.mrf.mxu3 }
 0x5d1   :  { %v4311_v48 = vpop.f32.mrf.mxu1  ;;  %v4552_v10 = vsel %vm1092_vm8, %v4351_v28, -inf }
 0x5d2   :  { %v4546_v3 = vsel %vm1092_vm8, %v4311_v48, -inf }
 0x5d3   :  { %4547 = vmax.xlane.f32.xlu0 %v4546_v3  ;;  %4553 = vmax.xlane.f32.xlu2 %v4552_v10 }
 0x5d4   :  { %v4331_v30 = vpop.f32.mrf.mxu2 }
 0x5d5   :  { %v4549_v31 = vsel %vm1092_vm8, %v4331_v30, -inf  ;;  %v9622_v41 = vpop.f32.mrf.mxu0 }
 0x5d6   :  { %4550 = vmax.xlane.f32.xlu1 %v4549_v31  ;;  %v4543_v29 = vsel %vm1092_vm8, %v9622_v41, -inf }
 0x5d8   :  { %v9639_v23 = vpop.f32.mrf.mxu3 }
 0x5d9   :  { %v9631_v35 = vpop.f32.mrf.mxu1  ;;  %v4564_v26 = vsel %vm1092_vm8, %v9639_v23, -inf }
 0x5da   :  { %v4558_v53 = vsel %vm1092_vm8, %v9631_v35, -inf }
 0x5db   :  { %4538 = vmax.xlane.f32.xlu0 %v4537_v55 }
 0x5dc   :  { %v4411_v46 = vpop.f32.mrf.mxu2 }
 0x5dd   :  { %v4561_v59 = vsel %vm1092_vm8, %v4411_v46, -inf  ;;  %v9629_v5 = vpop.f32.mrf.mxu0 }
 0x5de   :  { %4541 = vmax.xlane.f32.xlu1 %v4540_v60  ;;  %4562 = vmax.xlane.f32.xlu2 %v4561_v59  ;;  %v4555_v2 = vsel %vm1092_vm8, %v9629_v5, -inf }
 0x5e0   :  { %v9653_v14 = vpop.f32.mrf.mxu3 }
 0x5e1   :  { %v9645_v39 = vpop.f32.mrf.mxu1  ;;  %v4576_v1 = vsel %vm1092_vm8, %v9653_v14, -inf }
 0x5e2   :  { %v4570_v40 = vsel %vm1092_vm8, %v9645_v39, -inf }
 0x5e3   :  { %4544 = vmax.xlane.f32.xlu0 %v4543_v29 }
 0x5e4   :  { %v9651_v18 = vpop.f32.mrf.mxu2 }
 0x5e5   :  { %v9637_v27 = vpop.f32.mrf.mxu0  ;;  %v4573_v34 = vsel %vm1092_vm8, %v9651_v18, -inf }
 0x5e6   :  { %4556 = vmax.xlane.f32.xlu1 %v4555_v2  ;;  %v4567_v15 = vsel %vm1092_vm8, %v9637_v27, -inf }
 0x5e7   :  { %4568 = vmax.xlane.f32.xlu2 %v4567_v15 }
 0x5eb   :  { %4565 = vmax.xlane.f32.xlu0 %v4564_v26 }
 0x5ed   :  { %v9659_v36 = vpop.f32.mrf.mxu0 }
 0x5ee   :  { %4559 = vmax.xlane.f32.xlu1 %v4558_v53  ;;  %v4579_v24 = vsel %vm1092_vm8, %v9659_v36, -inf }
 0x5ef   :  { %4571 = vmax.xlane.f32.xlu2 %v4570_v40 }
 0x5f3   :  { %4574 = vmax.xlane.f32.xlu0 %v4573_v34 }
 0x5f6   :  { %4577 = vmax.xlane.f32.xlu1 %v4576_v1 }
 0x5fb   :  { %4580 = vmax.xlane.f32.xlu0 %v4579_v24 }
 0x63e   :  { %v4536_v62 = vpop.xlane.xlu2 %4535 }
 0x63f   :  { %v4582_v37 = vsub.f32 %v4231_v38, %v4536_v62 }
 0x641   :  { %v4598_v42 = vmul.f32 1.442695, %v4582_v37 }
 0x643   :  { %7025 = vpow2.f32 %v4598_v42 }
 0x646   :  { %v4554_v21 = vpop.xlane.xlu2 %4553  ;;  %v4548_v49 = vpop.xlane.xlu0 %4547 }
 0x647   :  { %v4588_v58 = vsub.f32 %v4351_v28, %v4554_v21  ;;  %v4586_v7 = vsub.f32 %v4311_v48, %v4548_v49 }
 0x649   :  { %v4551_v16 = vpop.xlane.xlu1 %4550  ;;  %v9663_v13 = vpop.eup %7025  ;;  %v4610_v56 = vmul.f32 1.442695, %v4588_v58  ;;  %v4606_v51 = vmul.f32 1.442695, %v4586_v7 }
 0x64a   :  { %v4587_v43 = vsub.f32 %v4331_v30, %v4551_v16  ;;  %v4630_v33 = vsel %vm1092_vm8, %v9663_v13, 0.0 }
 0x64b   :  { %7027 = vpow2.f32 %v4610_v56  ;;  %4631 = vadd.xlane.f32.xlu0 %v4630_v33 }
 0x64c   :  { %v4608_v20 = vmul.f32 1.442695, %v4587_v43 }
 0x64e   :  { %7029 = vpow2.f32 %v4608_v20  ;;  %v4539_v45 = vpop.xlane.xlu0 %4538 }
 0x64f   :  { %7031 = vpow2.f32 %v4606_v51  ;;  %v4583_v3 = vsub.f32 %v9614_v4, %v4539_v45 }
 0x651   :  { %v4542_v38 = vpop.xlane.xlu1 %4541  ;;  %v4563_v32 = vpop.xlane.xlu2 %4562  ;;  %v4600_v10 = vmul.f32 1.442695, %v4583_v3 }
 0x652   :  { %v4584_v28 = vsub.f32 %v9612_v11, %v4542_v38  ;;  %v4591_v48 = vsub.f32 %v4411_v46, %v4563_v32  ;;  %v9669_v30 = vpop.eup %7027 }
 0x653   :  { %v4648_v59 = vsel %vm1092_vm8, %v9669_v30, 0.0  ;;  %7033 = vpow2.f32 %v4600_v10 }
 0x654   :  { %v9671_v31 = vpop.eup %7029  ;;  %v4602_v55 = vmul.f32 1.442695, %v4584_v28  ;;  %v4616_v60 = vmul.f32 1.442695, %v4591_v48  ;;  %4649 = vadd.xlane.f32.xlu0 %v4648_v59 }
 0x655   :  { %v9675_v29 = vpop.eup %7031  ;;  %v4645_v2 = vsel %vm1092_vm8, %v9671_v31, 0.0 }
 0x656   :  { %7035 = vpow2.f32 %v4602_v55  ;;  %4646 = vadd.xlane.f32.xlu2 %v4645_v2  ;;  %v4642_v11 = vsel %vm1092_vm8, %v9675_v29, 0.0  ;;  %v4545_v4 = vpop.xlane.xlu0 %4544 }
 0x657   :  { %7037 = vpow2.f32 %v4616_v60  ;;  %4643 = vadd.xlane.f32.xlu1 %v4642_v11  ;;  %v4585_v15 = vsub.f32 %v9622_v41, %v4545_v4 }
 0x659   :  { %v4557_v46 = vpop.xlane.xlu1 %4556  ;;  %v9683_v53 = vpop.eup %7033  ;;  %v4604_v40 = vmul.f32 1.442695, %v4585_v15 }
 0x65a   :  { %v4589_v26 = vsub.f32 %v9629_v5, %v4557_v46  ;;  %v4569_v24 = vpop.xlane.xlu2 %4568  ;;  %v4633_v62 = vsel %vm1092_vm8, %v9683_v53, 0.0 }
 0x65b   :  { %v4593_v42 = vsub.f32 %v9637_v27, %v4569_v24  ;;  %7039 = vpow2.f32 %v4604_v40 }
 0x65c   :  { %v9685_v34 = vpop.eup %7035  ;;  %v4612_v1 = vmul.f32 1.442695, %v4589_v26 }
 0x65d   :  { %v9689_v37 = vpop.eup %7037  ;;  %v4636_v41 = vsel %vm1092_vm8, %v9685_v34, 0.0  ;;  %v4620_v21 = vmul.f32 1.442695, %v4593_v42 }
 0x65e   :  { %7041 = vpow2.f32 %v4612_v1  ;;  %4637 = vadd.xlane.f32.xlu2 %v4636_v41  ;;  %v4657_v5 = vsel %vm1092_vm8, %v9689_v37, 0.0  ;;  %v4566_v49 = vpop.xlane.xlu0 %4565 }
 0x65f   :  { %4658 = vadd.xlane.f32.xlu0 %v4657_v5  ;;  %4634 = vadd.xlane.f32.xlu1 %v4633_v62  ;;  %7043 = vpow2.f32 %v4620_v21  ;;  %v4592_v58 = vsub.f32 %v9639_v23, %v4566_v49 }
 0x661   :  { %v4560_v16 = vpop.xlane.xlu1 %4559  ;;  %v9698_v27 = vpop.eup %7039  ;;  %v4618_v43 = vmul.f32 1.442695, %v4592_v58 }
 0x662   :  { %v4590_v7 = vsub.f32 %v9631_v35, %v4560_v16  ;;  %v4572_v20 = vpop.xlane.xlu2 %4571  ;;  %v4639_v33 = vsel %vm1092_vm8, %v9698_v27, 0.0 }
 0x663   :  { %v4594_v45 = vsub.f32 %v9645_v39, %v4572_v20  ;;  %7045 = vpow2.f32 %v4618_v43  ;;  %v10744_v20 = vld [vmem:[#allocation48_spill] sm:$0xff] }
 0x664   :  { %v9700_v56 = vpop.eup %7041  ;;  %v4614_v51 = vmul.f32 1.442695, %v4590_v7 }
 0x665   :  { %v4651_v38 = vsel %vm1092_vm8, %v9700_v56, 0.0  ;;  %v9707_v23 = vpop.eup %7043  ;;  %v4622_v35 = vmul.f32 1.442695, %v4594_v45  ;;  %v10745_v45 = vld [vmem:[#allocation49_spill] sm:$0xff] }
 0x666   :  { %7047 = vpow2.f32 %v4614_v51  ;;  %4652 = vadd.xlane.f32.xlu2 %v4651_v38  ;;  %v4663_v32 = vsel %vm1092_vm8, %v9707_v23, 0.0  ;;  %v4575_v3 = vpop.xlane.xlu0 %4574  ;;  %v9750_v38 = vadd.f32 %v9537_v63, %v10745_v45 }
 0x667   :  { %4640 = vadd.xlane.f32.xlu1 %v4639_v33  ;;  %7049 = vpow2.f32 %v4622_v35  ;;  %4664 = vadd.xlane.f32.xlu0 %v4663_v32  ;;  %v4595_v48 = vsub.f32 %v9651_v18, %v4575_v3  ;;  %v9746_v33 = vadd.f32 %v9537_v63, %v10744_v20 }
 0x669   :  { %v4578_v28 = vpop.xlane.xlu1 %4577  ;;  %v9713_v10 = vpop.eup %7045  ;;  %v4624_v55 = vmul.f32 1.442695, %v4595_v48 }
 0x66a   :  { %v4596_v39 = vsub.f32 %v9653_v14, %v4578_v28  ;;  %v4660_v2 = vsel %vm1092_vm8, %v9713_v10, 0.0 }
 0x66b   :  { %7051 = vpow2.f32 %v4624_v55 }
 0x66c   :  { %v9715_v60 = vpop.eup %7047  ;;  %v4626_v59 = vmul.f32 1.442695, %v4596_v39 }
 0x66d   :  { %v4654_v11 = vsel %vm1092_vm8, %v9715_v60, 0.0  ;;  %v9721_v4 = vpop.eup %7049 }
 0x66e   :  { %7053 = vpow2.f32 %v4626_v59  ;;  %4655 = vadd.xlane.f32.xlu2 %v4654_v11  ;;  %v4666_v18 = vsel %vm1092_vm8, %v9721_v4, 0.0  ;;  %v4581_v14 = vpop.xlane.xlu0 %4580 }
 0x66f   :  { %4661 = vadd.xlane.f32.xlu1 %v4660_v2  ;;  %4667 = vadd.xlane.f32.xlu0 %v4666_v18  ;;  %v4597_v46 = vsub.f32 %v9659_v36, %v4581_v14 }
 0x671   :  { %v9726_v15 = vpop.eup %7051  ;;  %v4628_v26 = vmul.f32 1.442695, %v4597_v46 }
 0x672   :  { %v4669_v1 = vsel %vm1092_vm8, %v9726_v15, 0.0 }
 0x673   :  { %7055 = vpow2.f32 %v4628_v26 }
 0x674   :  { %v9728_v40 = vpop.eup %7053 }
 0x675   :  { %v4672_v24 = vsel %vm1092_vm8, %v9728_v40, 0.0 }
 0x676   :  { %4673 = vadd.xlane.f32.xlu2 %v4672_v24 }
 0x677   :  { %4670 = vadd.xlane.f32.xlu1 %v4669_v1 }
 0x679   :  { %v9734_v62 = vpop.eup %7055 }
 0x67a   :  { %v4675_v42 = vsel %vm1092_vm8, %v9734_v62, 0.0 }
 0x67f   :  { %4676 = vadd.xlane.f32.xlu1 %v4675_v42 }
 0x6be   :  { %v4632_v36 = vpop.xlane.xlu0 %4631 }
 0x6bf   :  { %7057 = vrcp.f32 %v4632_v36  ;;  %v4689_v7 = vand.u32 2147483648, %v4632_v36  ;;  %v4687_v51 = vand.u32 2147483647, %v4632_v36  ;;  %vm4683_vm8 = vweird.f32 %v4632_v36 }
 0x6c1   :  { %v4690_v3 = vor.u32 1.1754944e-38, %v4689_v7  ;;  %vm4688_vm12 = vcmp.eq.f32.partialorder %v4687_v51, 8.507059e+37 }
 0x6c5   :  { %v7058_v41 = vpop.eup %7057 }
 0x6c6   :  { %v4679_v5 = vmul.f32 %v7058_v41, %v4632_v36  ;;  %vm4684_vm11 = vweird.f32 %v7058_v41 }
 0x6c7   :  { %v9738_v21 = vpop.xlane.xlu0 %4649  ;;  %vm4685_vm3 = vmor %vm4683_vm8, %vm4684_vm11 }
 0x6c8   :  { %7059 = vrcp.f32 %v9738_v21  ;;  %v4680_v16 = vsub.f32 1.0, %v4679_v5  ;;  %v4777_v20 = vand.u32 2147483647, %v9738_v21  ;;  %v4779_v45 = vand.u32 2147483648, %v9738_v21 }
 0x6c9   :  { %v9740_v49 = vpop.xlane.xlu2 %4646  ;;  %vm4773_vm14 = vweird.f32 %v9738_v21 }
 0x6ca   :  { %7061 = vrcp.f32 %v9740_v49  ;;  %v4644_v58 = vpop.xlane.xlu1 %4643  ;;  %v4681_v43 = vmul.f32 %v7058_v41, %v4680_v16  ;;  %v4764_v16 = vand.u32 2147483648, %v9740_v49  ;;  %vm4758_vm15 = vweird.f32 %v9740_v49 }
 0x6cb   :  { %7063 = vrcp.f32 %v4644_v58  ;;  %v4749_v51 = vand.u32 2147483648, %v4644_v58  ;;  %vm4743_vm4 = vweird.f32 %v4644_v58  ;;  %vm9789_vm9 = vcmp.eq.f32.partialorder %v4777_v20, 8.507059e+37 }
 0x6cc   :  { %v4682_v35 = vadd.f32 %v7058_v41, %v4681_v43 }
 0x6ce   :  { %v9752_v32 = vpop.eup %7059  ;;  %v4686_v48 = vsel %vm4685_vm3, %v7058_v41, %v4682_v35  ;;  %v4762_v35 = vand.u32 2147483647, %v9740_v49 }
 0x6cf   :  { %v4769_v39 = vmul.f32 %v9752_v32, %v9738_v21  ;;  %v4691_v63 = vsel %vm4688_vm12, %v4690_v3, %v4686_v48  ;;  %vm4774_vm0 = vweird.f32 %v9752_v32 }
 0x6d0   :  { %v9754_v28 = vpop.eup %7061  ;;  %v4692_v26 = vmul.f32 %v9663_v13, %v4691_v63  ;;  %v4747_v13 = vand.u32 2147483647, %v4644_v58  ;;  %v4765_v63 = vor.u32 1.1754944e-38, %v4764_v16  ;;  %vm9794_vm11 = vcmp.eq.f32.partialorder %v4762_v35, 8.507059e+37  ;;  %vm9822_vm12 = vmor %vm4773_vm14, %vm4774_vm0 }
 0x6d1   :  { %v7064_v55 = vpop.eup %7063  ;;  %v4754_v11 = vmul.f32 %v9754_v28, %v9740_v49  ;;  %v9762_v18 = vpop.xlane.xlu2 %4637  ;;  %v4770_v41 = vsub.f32 1.0, %v4769_v39  ;;  %vm4759_vm7 = vweird.f32 %v9754_v28 }
 0x6d2   :  { %v4739_v1 = vmul.f32 %v7064_v55, %v4644_v58  ;;  %v9767_v24 = vpop.xlane.xlu1 %4634  ;;  %7065 = vrcp.f32 %v9762_v18  ;;  %v9774_v43 = vpop.xlane.xlu0 %4658  ;;  %6564 = vmatmul.msk.f32.vlgmr.msra.gmra.mxu1 %vm2214_vm13, %v4692_v26  ;;  %vm4744_vm10 = vweird.f32 %v7064_v55  ;;  %v4717_v26 = vand.u32 2147483647, %v9762_v18 }
 0x6d3   :  { %v4755_v5 = vsub.f32 1.0, %v4754_v11  ;;  %7067 = vrcp.f32 %v9767_v24  ;;  %6579 = vmatpush.msk.msra.mxu1 %vm570_vm2, %v9746_v33  ;;  %v4771_v48 = vmul.f32 %v9752_v32, %v4770_v41  ;;  %vm4745_vm6 = vmor %vm4743_vm4, %vm4744_vm10  ;;  %vm4748_vm5 = vcmp.eq.f32.partialorder %v4747_v13, 8.507059e+37 }
 0x6d4   :  { %v4740_v7 = vsub.f32 1.0, %v4739_v1  ;;  %7069 = vrcp.f32 %v9774_v43  ;;  %v4780_v58 = vor.u32 1.1754944e-38, %v4779_v45  ;;  %vm4713_vm8 = vweird.f32 %v9762_v18 }
 0x6d5   :  { %v4756_v39 = vmul.f32 %v9754_v28, %v4755_v5  ;;  %v4772_v14 = vadd.f32 %v9752_v32, %v4771_v48  ;;  %v4719_v45 = vand.u32 2147483648, %v9762_v18  ;;  %vm9809_vm3 = vcmp.eq.f32.partialorder %v4717_v26, 8.507059e+37 }
 0x6d6   :  { %v4741_v3 = vmul.f32 %v7064_v55, %v4740_v7  ;;  %v4750_v7 = vor.u32 1.1754944e-38, %v4749_v51  ;;  %v4704_v48 = vand.u32 2147483648, %v9767_v24  ;;  %vm4698_vm4 = vweird.f32 %v9767_v24 }
 0x6d7   :  { %v4757_v35 = vadd.f32 %v9754_v28, %v4756_v39 }
 0x6d8   :  { %v4742_v11 = vadd.f32 %v7064_v55, %v4741_v3  ;;  %v7066_v1 = vpop.eup %7065 }
 0x6d9   :  { %v7068_v41 = vpop.eup %7067  ;;  %v4709_v3 = vmul.f32 %v7066_v1, %v9762_v18  ;;  %v9800_v13 = vpop.xlane.xlu2 %4652  ;;  %vm4714_vm10 = vweird.f32 %v7066_v1 }
 0x6da   :  { %v4746_v16 = vsel %vm4745_vm6, %v7064_v55, %v4742_v11  ;;  %v9802_v51 = vpop.xlane.xlu1 %4640  ;;  %v4694_v46 = vmul.f32 %v7068_v41, %v9767_v24  ;;  %v9813_v59 = vpop.eup %7069  ;;  %7071 = vrcp.f32 %v9800_v13  ;;  %vm9836_vm6 = vmor %vm4758_vm15, %vm4759_vm7  ;;  %vm4699_vm14 = vweird.f32 %v7068_v41 }
 0x6db   :  { %v4751_v20 = vsel %vm4748_vm5, %v4750_v7, %v4746_v16  ;;  %v4710_v55 = vsub.f32 1.0, %v4709_v3  ;;  %v4702_v7 = vand.u32 2147483647, %v9767_v24  ;;  %v9829_v26 = vpop.xlane.xlu0 %4664  ;;  %v4776_v16 = vsel %vm9822_vm12, %v9752_v32, %v4772_v14  ;;  %vm4715_vm15 = vmor %vm4713_vm8, %vm4714_vm10 }
 0x6dc   :  { %v4752_v42 = vmul.f32 %v9675_v29, %v4751_v20  ;;  %v4695_v2 = vsub.f32 1.0, %v4694_v46  ;;  %v4814_v46 = vmul.f32 %v9813_v59, %v9774_v43  ;;  %7073 = vrcp.f32 %v9802_v51  ;;  %vm4700_vm0 = vmor %vm4698_vm4, %vm4699_vm14 }
 0x6dd   :  { %v4711_v39 = vmul.f32 %v7066_v1, %v4710_v55  ;;  %v4720_v20 = vor.u32 1.1754944e-38, %v4719_v45  ;;  %vm4703_vm5 = vcmp.eq.f32.partialorder %v4702_v7, 8.507059e+37  ;;  %v4705_v32 = vor.u32 1.1754944e-38, %v4704_v48 }
 0x6de   :  { %6572 = vmatmul.msk.f32.vlgmr.msrb.gmra.mxu1 %vm2214_vm13, %v4752_v42  ;;  %v4696_v3 = vmul.f32 %v7068_v41, %v4695_v2  ;;  %v4761_v42 = vsel %vm9836_vm6, %v9754_v28, %v4757_v35  ;;  %v4815_v55 = vsub.f32 1.0, %v4814_v46  ;;  %7075 = vrcp.f32 %v9829_v26 }
 0x6df   :  { %6587 = vmatpush.msk.msrb.mxu1 %vm570_vm2, %v9750_v38  ;;  %v4712_v49 = vadd.f32 %v7066_v1, %v4711_v39  ;;  %v4781_v2 = vsel %vm9789_vm9, %v4780_v58, %v4776_v16  ;;  %v4822_v45 = vand.u32 2147483647, %v9774_v43  ;;  %v4766_v7 = vsel %vm9794_vm11, %v4765_v63, %v4761_v42 }
 0x6e0   :  { %v4697_v29 = vadd.f32 %v7068_v41, %v4696_v3  ;;  %v4816_v28 = vmul.f32 %v9813_v59, %v4815_v55  ;;  %v9861_v18 = vpop.eup %7071  ;;  %vm4818_vm9 = vweird.f32 %v9774_v43  ;;  %v4782_v5 = vmul.f32 %v9669_v30, %v4781_v2 }
 0x6e1   :  { %v4716_v14 = vsel %vm4715_vm15, %v7066_v1, %v4712_v49  ;;  %v4824_v1 = vand.u32 2147483648, %v9774_v43  ;;  %v4784_v39 = vmul.f32 %v9861_v18, %v9800_v13  ;;  %v9872_v46 = vpop.xlane.xlu2 %4655  ;;  %vm4819_vm7 = vweird.f32 %v9813_v59 }
 0x6e2   :  { %v9859_v35 = vpop.xlane.xlu1 %4661  ;;  %v4721_v48 = vsel %vm9809_vm3, %v4720_v20, %v4716_v14  ;;  %v4701_v36 = vsel %vm4700_vm0, %v7068_v41, %v4697_v29  ;;  %v7074_v21 = vpop.eup %7073  ;;  %v4817_v11 = vadd.f32 %v9813_v59, %v4816_v28  ;;  %v4767_v41 = vmul.f32 %v9671_v31, %v4766_v7  ;;  %vm9896_vm8 = vmor %vm4818_vm9, %vm4819_vm7 }
 0x6e3   :  { %v4722_v24 = vmul.f32 %v9685_v34, %v4721_v48  ;;  %v4706_v58 = vsel %vm4703_vm5, %v4705_v32, %v4701_v36  ;;  %vm9879_vm11 = vcmp.eq.f32.partialorder %v4822_v45, 8.507059e+37  ;;  %v4785_v16 = vsub.f32 1.0, %v4784_v39  ;;  %v9913_v45 = vpop.xlane.xlu0 %4667 }
 0x6e4   :  { %v4707_v63 = vmul.f32 %v9683_v53, %v4706_v58  ;;  %v4724_v3 = vmul.f32 %v7074_v21, %v9802_v51  ;;  %v9885_v42 = vpop.eup %7075  ;;  %v4825_v30 = vor.u32 1.1754944e-38, %v4824_v1  ;;  %v4794_v53 = vand.u32 2147483648, %v9800_v13 }
 0x6e5   :  { %6568 = vmatmul.msk.f32.vlgmr.msra.gmra.mxu3 %vm2214_vm13, %v4722_v24  ;;  %v4732_v49 = vand.u32 2147483647, %v9802_v51  ;;  %7077 = vrcp.f32 %v9872_v46  ;;  %v10758_v31 = vrot.slane %v9746_v33, 4  ;;  %v4792_v55 = vand.u32 2147483647, %v9800_v13 }
 0x6e6   :  { %6566 = vmatmul.msk.f32.vlgmr.msrb.gmra.mxu2 %vm2214_vm13, %v4707_v63  ;;  %v4725_v29 = vsub.f32 1.0, %v4724_v3  ;;  %v4734_v32 = vand.u32 2147483648, %v9802_v51  ;;  %v4844_v2 = vmul.f32 %v9885_v42, %v9829_v26  ;;  %v10761_v14 = vrot.slane %v9746_v33, 2 }
 0x6e7   :  { %6583 = vmatpush.msk.msra.mxu3 %vm570_vm2, %v10758_v31  ;;  %v4821_v43 = vsel %vm9896_vm8, %v9813_v59, %v4817_v11  ;;  %v4786_v28 = vmul.f32 %v9861_v18, %v4785_v16  ;;  %vm4788_vm3 = vweird.f32 %v9800_v13  ;;  %7079 = vrcp.f32 %v9859_v35 }
 0x6e8   :  { %6581 = vmatpush.msk.msrb.mxu2 %vm570_vm2, %v10761_v14  ;;  %v4726_v7 = vmul.f32 %v7074_v21, %v4725_v29  ;;  %vm4729_vm12 = vweird.f32 %v7074_v21  ;;  %v4845_v48 = vsub.f32 1.0, %v4844_v2  ;;  %v4854_v36 = vand.u32 2147483648, %v9829_v26 }
 0x6e9   :  { %v4795_v24 = vor.u32 1.1754944e-38, %v4794_v53  ;;  %vm4728_vm10 = vweird.f32 %v9802_v51  ;;  %vm9919_vm4 = vcmp.eq.f32.partialorder %v4732_v49, 8.507059e+37  ;;  %vm4848_vm6 = vweird.f32 %v9829_v26  ;;  %v9946_v2 = vpop.xlane.xlu2 %4673 }
 0x6ea   :  { %v9916_v1 = vpop.xlane.xlu1 %4670  ;;  %v4826_v58 = vsel %vm9879_vm11, %v4825_v30, %v4821_v43  ;;  %vm9926_vm14 = vcmp.eq.f32.partialorder %v4792_v55, 8.507059e+37  ;;  %v4727_v63 = vadd.f32 %v7074_v21, %v4726_v7  ;;  %v4735_v11 = vor.u32 1.1754944e-38, %v4734_v32  ;;  %vm4730_vm5 = vmor %vm4728_vm10, %vm4729_vm12 }
 0x6eb   :  { %7081 = vrcp.f32 %v9913_v45  ;;  %v7078_v16 = vpop.eup %7077  ;;  %v4787_v51 = vadd.f32 %v9861_v18, %v4786_v28  ;;  %vm4789_vm15 = vweird.f32 %v9861_v18  ;;  %v4846_v3 = vmul.f32 %v9885_v42, %v4845_v48 }
 0x6ec   :  { %v4852_v34 = vand.u32 2147483647, %v9829_v26  ;;  %v4731_v30 = vsel %vm4730_vm5, %v7074_v21, %v4727_v63  ;;  %v9936_v53 = vor.u32 1.1754944e-38, %v4854_v36  ;;  %v4799_v49 = vmul.f32 %v7078_v16, %v9872_v46  ;;  %vm9956_vm9 = vmor %vm4788_vm3, %vm4789_vm15 }
 0x6ed   :  { %vm4803_vm0 = vweird.f32 %v9872_v46  ;;  %6576 = vmatmul.msk.f32.vlgmr.msrb.gmra.mxu3 %vm2214_vm13, %v4782_v5  ;;  %v7080_v31 = vpop.eup %7079  ;;  %v4827_v20 = vmul.f32 %v9689_v37, %v4826_v58  ;;  %v4736_v55 = vsel %vm9919_vm4, %v4735_v11, %v4731_v30  ;;  %v4807_v29 = vand.u32 2147483647, %v9872_v46 }
 0x6ee   :  { %v4809_v32 = vand.u32 2147483648, %v9872_v46  ;;  %v10766_v21 = vrot.slane %v9750_v38, 4  ;;  %6574 = vmatmul.msk.f32.vlgmr.msra.gmra.mxu2 %vm2214_vm13, %v4767_v41  ;;  %v4737_v5 = vmul.f32 %v9698_v27, %v4736_v55  ;;  %vm4849_vm7 = vweird.f32 %v9885_v42 }
 0x6ef   :  { %v4800_v14 = vsub.f32 1.0, %v4799_v49  ;;  %v4829_v43 = vmul.f32 %v7080_v31, %v9859_v35  ;;  %v10769_v28 = vrot.slane %v9750_v38, 2  ;;  %v4791_v41 = vsel %vm9956_vm9, %v9861_v18, %v4787_v51  ;;  %vm9991_vm10 = vmor %vm4848_vm6, %vm4849_vm7 }
 0x6f0   :  { %6591 = vmatpush.msk.msrb.mxu3 %vm570_vm2, %v10766_v21  ;;  %v4847_v13 = vadd.f32 %v9885_v42, %v4846_v3  ;;  %vm9970_vm11 = vcmp.eq.f32.partialorder %v4852_v34, 8.507059e+37  ;;  %v4837_v27 = vand.u32 2147483647, %v9859_v35  ;;  %v4839_v48 = vand.u32 2147483648, %v9859_v35  ;;  %6570 = vmatmul.msk.f32.vlgmr.msrb.gmra.mxu0 %vm2214_vm13, %v4737_v5 }
 0x6f1   :  { %6589 = vmatpush.msk.msra.mxu2 %vm570_vm2, %v10769_v28  ;;  %v7082_v36 = vpop.eup %7081  ;;  %v4801_v59 = vmul.f32 %v7078_v16, %v4800_v14  ;;  %vm4804_vm8 = vweird.f32 %v7078_v16  ;;  %v4830_v58 = vsub.f32 1.0, %v4829_v43  ;;  %7083 = vrcp.f32 %v9946_v2 }
 0x6f2   :  { %vm9978_vm3 = vcmp.eq.f32.partialorder %v4807_v29, 8.507059e+37  ;;  %v4810_v63 = vor.u32 1.1754944e-38, %v4809_v32  ;;  %vm4833_vm12 = vweird.f32 %v9859_v35  ;;  %v4859_v11 = vmul.f32 %v7082_v36, %v9913_v45  ;;  %v9996_v49 = vpop.xlane.xlu1 %4676  ;;  %vm4805_vm15 = vmor %vm4803_vm0, %vm4804_vm8 }
 0x6f3   :  { %v10774_v51 = vrot.slane %v9746_v33, 6  ;;  %v4802_v34 = vadd.f32 %v7078_v16, %v4801_v59  ;;  %v4831_v30 = vmul.f32 %v7080_v31, %v4830_v58  ;;  %vm4834_vm4 = vweird.f32 %v7080_v31 }
 0x6f4   :  { %7085 = vrcp.f32 %v9916_v1  ;;  %v4796_v33 = vsel %vm9926_vm14, %v4795_v24, %v4791_v41  ;;  %vm10003_vm5 = vcmp.eq.f32.partialorder %v4837_v27, 8.507059e+37  ;;  %v4840_v55 = vor.u32 1.1754944e-38, %v4839_v48  ;;  %vm4835_vm6 = vmor %vm4833_vm12, %vm4834_vm4 }
 0x6f5   :  { %6585 = vmatpush.msk.msrb.mxu0 %vm570_vm2, %v10774_v51  ;;  %v4860_v29 = vsub.f32 1.0, %v4859_v11  ;;  %v4851_v32 = vsel %vm9991_vm10, %v9885_v42, %v4847_v13  ;;  %v4806_v21 = vsel %vm4805_vm15, %v7078_v16, %v4802_v34  ;;  %v4832_v37 = vadd.f32 %v7080_v31, %v4831_v30 }
 0x6f6   :  { %v4869_v5 = vand.u32 2147483648, %v9913_v45  ;;  %v4811_v24 = vsel %vm9978_vm3, %v4810_v63, %v4806_v21  ;;  %vm4864_vm14 = vweird.f32 %v7082_v36  ;;  %7087 = vrcp.f32 %v9996_v49  ;;  %6582 = vmatmul.msk.f32.vlgmr.msrb.gmra.mxu2 %vm2214_vm13, %v4827_v20 }
 0x6f7   :  { %v4861_v46 = vmul.f32 %v7082_v36, %v4860_v29  ;;  %v7084_v39 = vpop.eup %7083  ;;  %v4797_v14 = vmul.f32 %v9700_v56, %v4796_v33  ;;  %v4812_v42 = vmul.f32 %v9715_v60, %v4811_v24  ;;  %v4836_v16 = vsel %vm4835_vm6, %v7080_v31, %v4832_v37 }
 0x6f8   :  { %v4867_v43 = vand.u32 2147483647, %v9913_v45  ;;  %v4841_v28 = vsel %vm10003_vm5, %v4840_v55, %v4836_v16  ;;  %vm4863_vm0 = vweird.f32 %v9913_v45  ;;  %v4889_v35 = vmul.f32 %v7084_v39, %v9946_v2 }
 0x6f9   :  { %v4862_v41 = vadd.f32 %v7082_v36, %v4861_v46  ;;  %v4856_v20 = vsel %vm9970_vm11, %v9936_v53, %v4851_v32  ;;  %v4842_v56 = vmul.f32 %v9713_v10, %v4841_v28  ;;  %vm4865_vm9 = vmor %vm4863_vm0, %vm4864_vm14  ;;  %v4897_v60 = vand.u32 2147483647, %v9946_v2  ;;  %6580 = vmatmul.msk.f32.vlgmr.msra.gmra.mxu1 %vm2214_vm13, %v4812_v42  ;;  %6578 = vmatmul.msk.f32.vlgmr.msra.gmra.mxu0 %vm2214_vm13, %v4797_v14  ;;  %v10780_v28 = vld [vmem:[#allocation43_spill] sm:$0xff] }
 0x6fa   :  { %v7086_v13 = vpop.eup %7085  ;;  %v4870_v27 = vor.u32 1.1754944e-38, %v4869_v5  ;;  %v4890_v45 = vsub.f32 1.0, %v4889_v35  ;;  %v10779_v59 = vrot.slane %v9750_v38, 6  ;;  %vm4868_vm7 = vcmp.eq.f32.partialorder %v4867_v43, 8.507059e+37  ;;  %v6762_v43 = vld [vmem:[%s10391_s5 + $0x20] sm:$0xff] }
 0x6fb   :  { %v4866_v31 = vsel %vm4865_vm9, %v7082_v36, %v4862_v41  ;;  %v4874_v48 = vmul.f32 %v7086_v13, %v9916_v1  ;;  %v4899_v10 = vand.u32 2147483648, %v9946_v2  ;;  %v4884_v53 = vand.u32 2147483648, %v9916_v1  ;;  %6584 = vmatmul.msk.f32.vlgmr.msra.gmra.mxu3 %vm2214_vm13, %v4842_v56  ;;  %v10781_v41 = vld [vmem:[#allocation36_spill] sm:$0xff] }
 0x6fc   :  { %6593 = vmatpush.msk.msra.mxu0 %vm570_vm2, %v10779_v59  ;;  %v7088_v7 = vpop.eup %7087  ;;  %v4871_v58 = vsel %vm4868_vm7, %v4870_v27, %v4866_v31  ;;  %v4891_v18 = vmul.f32 %v7084_v39, %v4890_v45  ;;  %vm4894_vm11 = vweird.f32 %v7084_v39  ;;  %v4857_v63 = vmul.f32 %v9707_v23, %v4856_v20  ;;  %v6761_v20 = vld [vmem:[%s10391_s5 + $0x18] sm:$0xff]  ;;  %v6759_v31 = vld [vmem:[%s10391_s5 + $0x8] sm:$0xff] }
 0x6fd   :  { %v4875_v36 = vsub.f32 1.0, %v4874_v48  ;;  %vm4893_vm8 = vweird.f32 %v9946_v2  ;;  %vm4898_vm3 = vcmp.eq.f32.partialorder %v4897_v60, 8.507059e+37  ;;  %v4904_v38 = vmul.f32 %v7088_v7, %v9996_v49 }
 0x6fe   :  { %v4892_v11 = vadd.f32 %v7084_v39, %v4891_v18  ;;  %vm4879_vm12 = vweird.f32 %v7086_v13  ;;  %v4882_v3 = vand.u32 2147483647, %v9916_v1  ;;  %v4872_v34 = vmul.f32 %v9721_v4, %v4871_v58  ;;  %vm4895_vm10 = vmor %vm4893_vm8, %vm4894_vm11  ;;  %v10784_v58 = vld [vmem:[#allocation40_spill] sm:$0xff]  ;;  %v10785_v18 = vld [vmem:[#allocation45_spill] sm:$0xff] }
 0x6ff   :  { %v4876_v51 = vmul.f32 %v7086_v13, %v4875_v36  ;;  %v4900_v30 = vor.u32 1.1754944e-38, %v4899_v10  ;;  %vm4878_vm4 = vweird.f32 %v9916_v1  ;;  %v4905_v33 = vsub.f32 1.0, %v4904_v38  ;;  %v10782_v10 = vld [vmem:[#allocation42_spill] sm:$0xff] }
 0x700   :  { %v4896_v26 = vsel %vm4895_vm10, %v7084_v39, %v4892_v11  ;;  %v4885_v23 = vor.u32 1.1754944e-38, %v4884_v53  ;;  %v4914_v2 = vand.u32 2147483648, %v9996_v49  ;;  %vm4880_vm15 = vmor %vm4878_vm4, %vm4879_vm12  ;;  %vm4909_vm5 = vweird.f32 %v7088_v7  ;;  %v10783_v53 = vld [vmem:[#allocation52_spill] sm:$0xff] }
 0x701   :  { %v4877_v55 = vadd.f32 %v7086_v13, %v4876_v51  ;;  %v4901_v29 = vsel %vm4898_vm3, %v4900_v30, %v4896_v26  ;;  %v4906_v32 = vmul.f32 %v7088_v7, %v4905_v33  ;;  %v4912_v21 = vand.u32 2147483647, %v9996_v49  ;;  %6588 = vmatmul.msk.f32.vlgmr.msrb.gmra.mxu1 %vm2214_vm13, %v4872_v34  ;;  %6586 = vmatmul.msk.f32.vlgmr.msrb.gmra.mxu0 %vm2214_vm13, %v4857_v63  ;;  %v10786_v30 = vld [vmem:[#allocation50_spill] sm:$0xff] }
 0x702   :  { %v4902_v4 = vmul.f32 %v9728_v40, %v4901_v29  ;;  %vm4883_vm6 = vcmp.eq.f32.partialorder %v4882_v3, 8.507059e+37  ;;  %vm4908_vm14 = vweird.f32 %v9996_v49  ;;  %v4915_v46 = vor.u32 1.1754944e-38, %v4914_v2  ;;  %v6765_v40 = vld [vmem:[%s10391_s5 + $0x38] sm:$0xff]  ;;  %v6763_v49 = vld [vmem:[%s10391_s5 + $0x28] sm:$0xff]  ;;  %v10787_v33 = vld [vmem:[#allocation26_spill] sm:$0xff] }
 0x703   :  { %v4881_v37 = vsel %vm4880_vm15, %v7086_v13, %v4877_v55  ;;  %v4907_v5 = vadd.f32 %v7088_v7, %v4906_v32  ;;  %vm4910_vm0 = vmor %vm4908_vm14, %vm4909_vm5  ;;  %vm4913_vm9 = vcmp.eq.f32.partialorder %v4912_v21, 8.507059e+37  ;;  %5451 = vmatpush.bf16.msra.mxu1 %v6765_v40  ;;  %v2758_v35 = vadd.f32 %v10781_v41, %v10780_v28  ;;  %v10788_v21 = vld [vmem:[#allocation39_spill] sm:$0xff]  ;;  %v10791_v40 = vld [vmem:[#allocation25_spill] sm:$0xff] }
 0x704   :  { %v4886_v1 = vsel %vm4883_vm6, %v4885_v23, %v4881_v37  ;;  %6592 = vmatmul.msk.f32.vlgmr.msrb.gmra.mxu3 %vm2214_vm13, %v4902_v4  ;;  %v2784_v36 = vadd.f32 %v10785_v18, %v10784_v58  ;;  %v2836_v26 = vadd.f32 %v10787_v33, %v10786_v30  ;;  %v10789_v4 = vld [vmem:[#allocation54_spill] sm:$0xff]  ;;  %v7286_v33 = vmov 32.0  }
 0x705   :  { %v4887_v24 = vmul.f32 %v9726_v15, %v4886_v1  ;;  %v4911_v39 = vsel %vm4910_vm0, %v7088_v7, %v4907_v5  ;;  %v6764_v15 = vld [vmem:[%s10391_s5 + $0x30] sm:$0xff]  ;;  %v4202_v13 = vadd.f32 %v9593_v57, %v2758_v35  ;;  %v6758_v57 = vld [vmem:[%s10391_s5] sm:$0xff]  ;;  %v2810_v7 = vadd.f32 %v10783_v53, %v10782_v10 }
 0x706   :  { %v4916_v14 = vsel %vm4913_vm9, %v4915_v46, %v4911_v39  ;;  %v4203_v51 = vadd.f32 %v9580_v12, %v2784_v36  ;;  %v4205_v55 = vadd.f32 %v9601_v22, %v2836_v26  ;;  %v2966_v37 = vadd.f32 %v10789_v4, %v10788_v21 }
 0x707   :  { %6590 = vmatmul.msk.f32.vlgmr.msra.gmra.mxu2 %vm2214_vm13, %v4887_v24  ;;  %v4917_v42 = vmul.f32 %v9734_v62, %v4916_v14  ;;  %5452 = vmatpush.bf16.msra.mxu1 %v6764_v15  ;;  %v4204_v38 = vadd.f32 %v9588_v8, %v2810_v7  ;;  %v10797_v7 = vld [vmem:[#allocation17_spill] sm:$0xff]  ;;  %7089 = vrcp.f32 %v7286_v33  ;;  %vm5674_vm9 = vcmask 523264  }
 0x708   :  { %v4210_v1 = vadd.f32 %v9605_v50, %v2966_v37  ;;  %v10794_v50 = vld [vmem:[#allocation44_spill] sm:$0xff] }
 0x709   :  { %6594 = vmatmul.msk.f32.vlgmr.msra.gmra.mxu0 %vm2214_vm13, %v4917_v42 }
 0x70b   :  { %5453 = vmatpush.bf16.msra.mxu1 %v6763_v49  ;;  %v10792_v49 = vld [vmem:[#allocation21_spill] sm:$0xff] }
 0x70d   :  { %v7090_v26 = vpop.eup %7089 }
 0x70e   :  { %vm5493_vm13 = vweird.f32 %v7090_v26 }
 0x70f   :  { %5454 = vmatpush.bf16.msra.mxu1 %v6762_v43  ;;  %v10795_v43 = vld [vmem:[#allocation60_spill] sm:$0xff] }
 0x710   :  { %v2992_v28 = vadd.f32 %v10795_v43, %v10794_v50 }
 0x713   :  { %5455 = vmatpush.bf16.msra.mxu1 %v6761_v20 }
 0x74f   :  { %v4940_v16 = vpop.f32.mrf.mxu1 }
 0x750   :  { %v5318_v62 = vadd.f32 %v4940_v16, %v9583_v61  ;;  %v6760_v61 = vld [vmem:[%s10391_s5 + $0x10] sm:$0xff]  ;;  %v10793_v16 = vld [vmem:[#allocation20_spill] sm:$0xff] }
 0x751   :  { %5456 = vmatpush.bf16.msra.mxu1 %v6760_v61 }
 0x752   :  { %5350 = vst [vmem:[#allocation1] ss:$4 sm:$0xff] %v5318_v62  ;;  %v3044_v62 = vadd.f32 %v10793_v16, %v10792_v49 }
 0x754   :  { %v4213_v41 = vadd.f32 %v9617_v9, %v3044_v62 }
 0x755   :  { %5457 = vmatpush.bf16.msra.mxu1 %v6759_v31 }
 0x759   :  { %5458 = vmatpush.bf16.msra.mxu1 %v6758_v57 }
 0x75b   :  { %v5040_v56 = vpop.f32.mrf.mxu1 }
 0x75c   :  { %v5322_v60 = vadd.f32 %v5040_v56, %v4202_v13  ;;  %v4211_v13 = vadd.f32 %v9607_v6, %v2992_v28 }
 0x75e   :  { %5358 = vst [vmem:[#allocation1 + $0x20] ss:$4 sm:$0xff] %v5322_v60 }
 0x768   :  { %v4990_v27 = vpop.f32.mrf.mxu3 }
 0x769   :  { %v5320_v45 = vadd.f32 %v4990_v27, %v9578_v54  ;;  %v4965_v48 = vpop.f32.mrf.mxu2 }
 0x76a   :  { %v5319_v59 = vadd.f32 %v4965_v48, %v9575_v0  ;;  %v10796_v48 = vld [vmem:[#allocation16_spill] sm:$0xff] }
 0x76b   :  { %5354 = vst [vmem:[#allocation1 + $0x2] ss:$4 sm:$0xff] %v5320_v45 }
 0x76c   :  { %5352 = vst [vmem:[#allocation1 + $0x1] ss:$4 sm:$0xff] %v5319_v59 }
 0x76d   :  { %v5015_v63 = vpop.f32.mrf.mxu0 }
 0x76e   :  { %v5321_v11 = vadd.f32 %v5015_v63, %v9586_v19 }
 0x770   :  { %v5090_v3 = vpop.f32.mrf.mxu3  ;;  %5356 = vst [vmem:[#allocation1 + $0x3] ss:$4 sm:$0xff] %v5321_v11 }
 0x771   :  { %v5324_v54 = vadd.f32 %v5090_v3, %v4204_v38  ;;  %v5065_v34 = vpop.f32.mrf.mxu2  ;;  %v10798_v38 = vld [vmem:[#allocation18_spill] sm:$0xff] }
 0x772   :  { %v5323_v0 = vadd.f32 %v5065_v34, %v4203_v51  ;;  %v10799_v34 = vld [vmem:[#allocation19_spill] sm:$0xff] }
 0x773   :  { %5362 = vst [vmem:[#allocation1 + $0x22] ss:$4 sm:$0xff] %v5324_v54 }
 0x774   :  { %5360 = vst [vmem:[#allocation1 + $0x21] ss:$4 sm:$0xff] %v5323_v0 }
 0x776   :  { %v5140_v23 = vpop.f32.mrf.mxu1  ;;  %v5115_v2 = vpop.f32.mrf.mxu0 }
 0x777   :  { %v5326_v8 = vadd.f32 %v5140_v23, %v9599_v47  ;;  %v5325_v29 = vadd.f32 %v5115_v2, %v4205_v55  ;;  %v5365_v19 = vld.sshfl [vmem:[#allocation1] sm:$0xff pattern:$0x73625140]  ;;  %v5489_v55 = vmul.f32 32.0, %v7090_v26 }
 0x779   :  { %5367 = vst [vmem:[#allocation1] ss:$4 sm:$0xff] %v5326_v8  ;;  %v5165_v12 = vpop.f32.mrf.mxu2  ;;  %v5490_v23 = vsub.f32 1.0, %v5489_v55 }
 0x77a   :  { %5364 = vst [vmem:[#allocation1 + $0x23] ss:$4 sm:$0xff] %v5325_v29  ;;  %v5327_v32 = vadd.f32 %v5165_v12, %v9591_v52  ;;  %v10790_v52 = vld [vmem:[#allocation41_spill] sm:$0xff] }
 0x77b   :  { %v3018_v15 = vadd.f32 %v10791_v40, %v10790_v52  ;;  %v5491_v2 = vmul.f32 %v7090_v26, %v5490_v23 }
 0x77c   :  { %5368 = vst [vmem:[#allocation1 + $0x1] ss:$4 sm:$0xff] %v5327_v32 }
 0x77d   :  { %v5492_v8 = vadd.f32 %v7090_v26, %v5491_v2 }
 0x77e   :  { %v5190_v5 = vpop.f32.mrf.mxu3  ;;  %v5240_v24 = vpop.f32.mrf.mxu1 }
 0x77f   :  { %v5328_v22 = vadd.f32 %v5190_v5, %v9596_v17  ;;  %v5215_v46 = vpop.f32.mrf.mxu0  ;;  %v5330_v39 = vadd.f32 %v5240_v24, %v4210_v1  ;;  %v4212_v17 = vadd.f32 %v9603_v44, %v3018_v15  ;;  %v6825_v44 = vld [vmem:[%s10392_s6] ss:$0 sm:$0xff]  ;;  %v10123_v29 = vsel %vm5493_vm13, %v7090_v26, %v5492_v8 }
 0x780   :  { %v5329_v47 = vadd.f32 %v5215_v46, %v9610_v25 }
 0x781   :  { %5369 = vst [vmem:[#allocation1 + $0x2] ss:$4 sm:$0xff] %v5328_v22  ;;  %v5366_v14 = vld.sshfl [vmem:[#allocation1 + $0x20] sm:$0xff pattern:$0x73625140] }
 0x782   :  { %5371 = vst [vmem:[#allocation1 + $0x20] ss:$4 sm:$0xff] %v5330_v39  ;;  %v5381_v42 = vpack.c.bf16 %v5366_v14, %v5365_v19 }
 0x783   :  { %5370 = vst [vmem:[#allocation1 + $0x3] ss:$4 sm:$0xff] %v5329_v47 }
 0x784   :  { %5459 = vmatmul.bf16.vlgmr.msra.gmra.mxu1 %v5381_v42 }
 0x787   :  { %v5290_v25 = vpop.f32.mrf.mxu3  ;;  %v5315_v35 = vpop.f32.mrf.mxu0 }
 0x788   :  { %v5332_v20 = vadd.f32 %v5290_v25, %v4212_v17  ;;  %v5333_v56 = vadd.f32 %v5315_v35, %v4213_v41 }
 0x78a   :  { %v5265_v60 = vpop.f32.mrf.mxu2  ;;  %5373 = vst [vmem:[#allocation1 + $0x22] ss:$4 sm:$0xff] %v5332_v20  ;;  %v5375_v31 = vld.sshfl [vmem:[#allocation1] sm:$0xff pattern:$0x73625140] }
 0x78b   :  { %v5331_v61 = vadd.f32 %v5265_v60, %v4211_v13  ;;  %5374 = vst [vmem:[#allocation1 + $0x23] ss:$4 sm:$0xff] %v5333_v56  ;;  %v6767_v56 = vld [vmem:[%s10395_s9 + $0x8] sm:$0xff] }
 0x78c   :  { %5619 = vmatpush.bf16.msrb.mxu2 %v6767_v56 }
 0x78d   :  { %5372 = vst [vmem:[#allocation1 + $0x21] ss:$4 sm:$0xff] %v5331_v61 }
 0x794   :  { %v5376_v57 = vld.sshfl [vmem:[#allocation1 + $0x20] sm:$0xff pattern:$0x73625140] }
 0x795   :  { %v5382_v27 = vpack.c.bf16 %v5376_v57, %v5375_v31 }
 0x797   :  { %5464 = vmatmul.bf16.gmra.mxu1 %v5382_v27  ;;  %v6766_v27 = vld [vmem:[%s10395_s9] sm:$0xff] }
 0x798   :  { %5620 = vmatpush.bf16.msrb.mxu2 %v6766_v27 }
 0x801   :  { %v5460_v9 = vpop.f32.mrf.mxu1 }
 0x802   :  { %v5461_v45 = vadd.f32 %v6825_v44, %v5460_v9 }
 0x804   :  { %v5470_v59 = vadd.f32 %v5461_v45, %v10796_v48 }
 0x806   :  { %v5476_v6 = vsel %vm332_vm1, %v5470_v59, 0.0 }
 0x807   :  { %5477 = vadd.xlane.f32.xlu2 %v5476_v6 }
 0x809   :  { %v5462_v10 = vpop.f32.mrf.mxu1 }
 0x80a   :  { %v5463_v53 = vadd.f32 %v6825_v44, %v5462_v10 }
 0x80c   :  { %v5471_v58 = vadd.f32 %v5463_v53, %v10797_v7  ;;  %v6826_v7 = vld [vmem:[#allocation7] ss:$0 sm:$0xff] }
 0x80e   :  { %v5479_v18 = vsel %vm332_vm1, %v5471_v58, 0.0 }
 0x80f   :  { %5480 = vadd.xlane.f32.xlu0 %v5479_v18 }
 0x814   :  { %v5465_v36 = vpop.f32.mrf.mxu1 }
 0x815   :  { %v5466_v63 = vadd.f32 %v6825_v44, %v5465_v36 }
 0x817   :  { %v5472_v11 = vadd.f32 %v5466_v63, %v10798_v38 }
 0x819   :  { %v5482_v51 = vsel %vm332_vm1, %v5472_v11, 0.0 }
 0x81a   :  { %5483 = vadd.xlane.f32.xlu1 %v5482_v51 }
 0x81c   :  { %v5467_v3 = vpop.f32.mrf.mxu1 }
 0x81d   :  { %v5468_v54 = vadd.f32 %v6825_v44, %v5467_v3  ;;  %v6827_v3 = vld [vmem:[#allocation8] ss:$0 sm:$0xff] }
 0x81f   :  { %v5473_v0 = vadd.f32 %v5468_v54, %v10799_v34 }
 0x821   :  { %v5485_v30 = vsel %vm332_vm1, %v5473_v0, 0.0 }
 0x822   :  { %5486 = vadd.xlane.f32.xlu2 %v5485_v30 }
 0x87a   :  { %v5478_v19 = vpop.xlane.xlu2 %5477 }
 0x87b   :  { %v5495_v12 = vmul.f32 %v10123_v29, %v5478_v19 }
 0x87d   :  { %v5499_v32 = vsub.f32 %v5470_v59, %v5495_v12 }
 0x87f   :  { %v5503_v21 = vmul.f32 %v5499_v32, %v5499_v32 }
 0x881   :  { %v5507_v4 = vsel %vm332_vm1, %v5503_v21, 0.0 }
 0x882   :  { %v5481_v37 = vpop.xlane.xlu0 %5480  ;;  %5508 = vadd.xlane.f32.xlu0 %v5507_v4 }
 0x883   :  { %v5496_v1 = vmul.f32 %v10123_v29, %v5481_v37 }
 0x885   :  { %v5500_v5 = vsub.f32 %v5471_v58, %v5496_v1 }
 0x887   :  { %v5504_v24 = vmul.f32 %v5500_v5, %v5500_v5 }
 0x889   :  { %v5510_v22 = vsel %vm332_vm1, %v5504_v24, 0.0 }
 0x88a   :  { %5511 = vadd.xlane.f32.xlu1 %v5510_v22 }
 0x88d   :  { %v5484_v46 = vpop.xlane.xlu1 %5483 }
 0x88e   :  { %v5497_v39 = vmul.f32 %v10123_v29, %v5484_v46 }
 0x890   :  { %v10130_v47 = vsub.f32 %v5472_v11, %v5497_v39 }
 0x892   :  { %v5505_v14 = vmul.f32 %v10130_v47, %v10130_v47 }
 0x894   :  { %v5513_v42 = vsel %vm332_vm1, %v5505_v14, 0.0 }
 0x895   :  { %v5487_v52 = vpop.xlane.xlu2 %5486  ;;  %5514 = vadd.xlane.f32.xlu2 %v5513_v42 }
 0x896   :  { %v5498_v40 = vmul.f32 %v10123_v29, %v5487_v52 }
 0x898   :  { %v10136_v15 = vsub.f32 %v5473_v0, %v5498_v40  ;;  %v6771_v40 = vld [vmem:[%s10397_s11 + $0x18] sm:$0xff] }
 0x899   :  { %5685 = vmatpush.bf16.msra.mxu3 %v6771_v40 }
 0x89a   :  { %v5506_v49 = vmul.f32 %v10136_v15, %v10136_v15 }
 0x89c   :  { %v5516_v16 = vsel %vm332_vm1, %v5506_v49, 0.0  ;;  %v6768_v49 = vld [vmem:[%s10397_s11] sm:$0xff] }
 0x89d   :  { %5517 = vadd.xlane.f32.xlu0 %v5516_v16 }
 0x8f5   :  { %v5509_v62 = vpop.xlane.xlu0 %5508 }
 0x8f6   :  { %v5519_v50 = vmul.f32 %v5509_v62, %v10123_v29  ;;  %v6828_v62 = vld [vmem:[%s10396_s10] ss:$0 sm:$0xff] }
 0x8f8   :  { %v5523_v43 = vadd.f32 1e-05, %v5519_v50 }
 0x8fa   :  { %7091 = vrsqrt.f32 %v5523_v43  ;;  %vm5533_vm11 = vweird.f32 %v5523_v43 }
 0x8fd   :  { %v5512_v28 = vpop.xlane.xlu1 %5511 }
 0x8fe   :  { %v5520_v17 = vmul.f32 %v5512_v28, %v10123_v29 }
 0x900   :  { %v7092_v41 = vpop.eup %7091  ;;  %v5524_v25 = vadd.f32 1e-05, %v5520_v17 }
 0x901   :  { %v5528_v35 = vmul.f32 %v7092_v41, %v5523_v43  ;;  %vm5534_vm7 = vweird.f32 %v7092_v41 }
 0x902   :  { %7093 = vrsqrt.f32 %v5524_v25  ;;  %vm5535_vm8 = vmor %vm5533_vm11, %vm5534_vm7  ;;  %vm5543_vm12 = vweird.f32 %v5524_v25 }
 0x903   :  { %v5529_v13 = vmul.f32 %v7092_v41, %v5528_v35 }
 0x905   :  { %v5530_v20 = vmul.f32 0.5, %v5529_v13 }
 0x907   :  { %v5531_v60 = vsub.f32 1.5, %v5530_v20 }
 0x908   :  { %v5515_v61 = vpop.xlane.xlu2 %5514  ;;  %v7094_v31 = vpop.eup %7093 }
 0x909   :  { %v5521_v57 = vmul.f32 %v5515_v61, %v10123_v29  ;;  %v5532_v44 = vmul.f32 %v7092_v41, %v5531_v60  ;;  %v5538_v9 = vmul.f32 %v7094_v31, %v5524_v25  ;;  %vm5544_vm3 = vweird.f32 %v7094_v31 }
 0x90a   :  { %vm5545_vm10 = vmor %vm5543_vm12, %vm5544_vm3 }
 0x90b   :  { %v5525_v45 = vadd.f32 1e-05, %v5521_v57  ;;  %v5539_v48 = vmul.f32 %v7094_v31, %v5538_v9  ;;  %v5536_v59 = vsel %vm5535_vm8, %v7092_v41, %v5532_v44  ;;  %v6829_v57 = vld [vmem:[%s10398_s12] ss:$0 sm:$0xff] }
 0x90c   :  { %v5567_v58 = vmul.f32 %v5536_v59, %v5499_v32 }
 0x90d   :  { %7095 = vrsqrt.f32 %v5525_v45  ;;  %v5540_v6 = vmul.f32 0.5, %v5539_v48  ;;  %vm5553_vm15 = vweird.f32 %v5525_v45 }
 0x90e   :  { %v5574_v54 = vmul.f32 %v6826_v7, %v5567_v58 }
 0x90f   :  { %v5541_v10 = vsub.f32 1.5, %v5540_v6 }
 0x910   :  { %v5518_v53 = vpop.xlane.xlu0 %5517  ;;  %v5581_v26 = vadd.f32 %v6827_v3, %v5574_v54 }
 0x911   :  { %v5522_v18 = vmul.f32 %v5518_v53, %v10123_v29  ;;  %v5542_v36 = vmul.f32 %v7094_v31, %v5541_v10 }
 0x913   :  { %v7096_v63 = vpop.eup %7095  ;;  %v5526_v38 = vadd.f32 1e-05, %v5522_v18  ;;  %v5546_v11 = vsel %vm5545_vm10, %v7094_v31, %v5542_v36 }
 0x914   :  { %v5548_v51 = vmul.f32 %v7096_v63, %v5525_v45  ;;  %v5568_v34 = vmul.f32 %v5546_v11, %v5500_v5  ;;  %vm5554_vm4 = vweird.f32 %v7096_v63 }
 0x915   :  { %7097 = vrsqrt.f32 %v5526_v38  ;;  %vm5555_vm5 = vmor %vm5553_vm15, %vm5554_vm4  ;;  %vm5563_vm14 = vweird.f32 %v5526_v38 }
 0x916   :  { %v5549_v0 = vmul.f32 %v7096_v63, %v5548_v51  ;;  %v5575_v30 = vmul.f32 %v6826_v7, %v5568_v34 }
 0x918   :  { %v5550_v33 = vmul.f32 0.5, %v5549_v0  ;;  %v5582_v55 = vadd.f32 %v6827_v3, %v5575_v30 }
 0x91a   :  { %v5551_v23 = vsub.f32 1.5, %v5550_v33  ;;  %v5585_v8 = vpack.c.bf16 %v5582_v55, %v5581_v26 }
 0x91b   :  { %v7098_v2 = vpop.eup %7097 }
 0x91c   :  { %v5552_v19 = vmul.f32 %v7096_v63, %v5551_v23  ;;  %v5558_v12 = vmul.f32 %v7098_v2, %v5526_v38  ;;  %6635 = vmatmul.msk.bf16.vlgmr.msrb.gmra.mxu2 %vm332_vm1, %v5585_v8  ;;  %vm5564_vm6 = vweird.f32 %v7098_v2 }
 0x91d   :  { %vm5565_vm0 = vmor %vm5563_vm14, %vm5564_vm6 }
 0x91e   :  { %v5559_v32 = vmul.f32 %v7098_v2, %v5558_v12  ;;  %v5556_v21 = vsel %vm5555_vm5, %v7096_v63, %v5552_v19 }
 0x91f   :  { %v5569_v1 = vmul.f32 %v5556_v21, %v10130_v47  ;;  %v6770_v47 = vld [vmem:[%s10397_s11 + $0x10] sm:$0xff] }
 0x920   :  { %v5560_v4 = vmul.f32 0.5, %v5559_v32  ;;  %5686 = vmatpush.bf16.msra.mxu3 %v6770_v47 }
 0x921   :  { %v5576_v46 = vmul.f32 %v6826_v7, %v5569_v1 }
 0x922   :  { %v5561_v37 = vsub.f32 1.5, %v5560_v4 }
 0x923   :  { %v5583_v14 = vadd.f32 %v6827_v3, %v5576_v46 }
 0x924   :  { %v5562_v5 = vmul.f32 %v7098_v2, %v5561_v37 }
 0x926   :  { %v5566_v24 = vsel %vm5565_vm0, %v7098_v2, %v5562_v5 }
 0x927   :  { %v5570_v22 = vmul.f32 %v5566_v24, %v10136_v15  ;;  %v6769_v15 = vld [vmem:[%s10397_s11 + $0x8] sm:$0xff] }
 0x928   :  { %5687 = vmatpush.bf16.msra.mxu3 %v6769_v15 }
 0x929   :  { %v5577_v39 = vmul.f32 %v6826_v7, %v5570_v22 }
 0x92b   :  { %v5584_v42 = vadd.f32 %v6827_v3, %v5577_v39 }
 0x92c   :  { %5688 = vmatpush.bf16.msra.mxu3 %v6768_v49  ;;  %v6677_v49 = vld [vmem:[%s10401_s15 + $0x28] sm:$0xf] }
 0x92d   :  { %v5586_v52 = vpack.c.bf16 %v5584_v42, %v5583_v14 }
 0x92f   :  { %6636 = vmatmul.msk.bf16.gmra.mxu2 %vm332_vm1, %v5586_v52 }
 0x99f   :  { %v5622_v16 = vpop.f32.mrf.mxu2 }
 0x9a0   :  { %v5623_v50 = vadd.f32 %v6828_v62, %v5622_v16  ;;  %v6779_v16 = vld [vmem:[%s10401_s15 + $0x38] sm:$0xf0] }
 0x9a2   :  { %v5632_v17 = vmax.f32 %v5623_v50, 0.0 }
 0x9a7   :  { %v5624_v43 = vpop.f32.mrf.mxu2 }
 0x9a8   :  { %v5625_v28 = vadd.f32 %v6828_v62, %v5624_v43 }
 0x9aa   :  { %v5633_v41 = vmax.f32 %v5625_v28, 0.0  ;;  %v6678_v28 = vor.u32 %v6779_v16, %v6677_v49 }
 0x9ac   :  { %v5636_v25 = vpack.c.bf16 %v5633_v41, %v5632_v17  ;;  %v6679_v17 = vld [vmem:[%s10401_s15 + $0x3c] sm:$0xf0]  ;;  %v6778_v41 = vld [vmem:[%s10401_s15 + $0x34] sm:$0xf]  ;;  %5898 = vmatpush.bf16.msrb.mxu0 %v6678_v28 }
 0x9ae   :  { %6653 = vmatmul.msk.bf16.vlgmr.msra.gmra.mxu3 %vm5674_vm9, %v5636_v25 }
 0x9b2   :  { %v5627_v35 = vpop.f32.mrf.mxu2 }
 0x9b3   :  { %v5628_v13 = vadd.f32 %v6828_v62, %v5627_v35 }
 0x9b5   :  { %v5634_v60 = vmax.f32 %v5628_v13, 0.0 }
 0x9ba   :  { %v5629_v20 = vpop.f32.mrf.mxu2 }
 0x9bb   :  { %v5630_v56 = vadd.f32 %v6828_v62, %v5629_v20  ;;  %v6777_v62 = vld [vmem:[%s10401_s15 + $0x2c] sm:$0xf]  ;;  %v6687_v20 = vld [vmem:[%s10401_s15 + $0x44] sm:$0xf0] }
 0x9bc   :  { %v6682_v13 = vor.u32 %v6777_v62, %v6679_v17 }
 0x9bd   :  { %v5635_v61 = vmax.f32 %v5630_v56, 0.0  ;;  %v6693_v56 = vld [vmem:[%s10401_s15 + $0x38] sm:$0xf] }
 0x9be   :  { %5917 = vmatpush.bf16.msra.mxu2 %v6682_v13 }
 0x9bf   :  { %v5637_v31 = vpack.c.bf16 %v5635_v61, %v5634_v60  ;;  %v6781_v60 = vld [vmem:[%s10401_s15 + $0x48] sm:$0xf0] }
 0x9c1   :  { %6654 = vmatmul.msk.bf16.gmra.mxu3 %vm5674_vm9, %v5637_v31 }
 0xa31   :  { %v5690_v27 = vpop.f32.mrf.mxu3 }
 0xa32   :  { %v5691_v44 = vadd.f32 %v6829_v57, %v5690_v27 }
 0xa34   :  { %v5700_v9 = vadd.f32 %v5691_v44, %v5581_v26 }
 0xa36   :  { %v5706_v45 = vsel %vm332_vm1, %v5700_v9, 0.0 }
 0xa37   :  { %5707 = vadd.xlane.f32.xlu1 %v5706_v45  ;;  %v6657_v45 = vld [vmem:[%s10401_s15] sm:$0xf] }
 0xa39   :  { %v5692_v48 = vpop.f32.mrf.mxu3 }
 0xa3a   :  { %v5693_v59 = vadd.f32 %v6829_v57, %v5692_v48  ;;  %v6774_v48 = vld [vmem:[%s10401_s15 + $0x10] sm:$0xf0] }
 0xa3c   :  { %v5701_v6 = vadd.f32 %v5693_v59, %v5582_v55 }
 0xa3e   :  { %v5709_v10 = vsel %vm332_vm1, %v5701_v6, 0.0 }
 0xa3f   :  { %5710 = vadd.xlane.f32.xlu2 %v5709_v10  ;;  %v6772_v10 = vld [vmem:[%s10401_s15 + $0x4] sm:$0xf] }
 0xa44   :  { %v5695_v53 = vpop.f32.mrf.mxu3 }
 0xa45   :  { %v5696_v7 = vadd.f32 %v6829_v57, %v5695_v53  ;;  %v6659_v53 = vld [vmem:[%s10401_s15 + $0x14] sm:$0xf0] }
 0xa47   :  { %v5702_v58 = vadd.f32 %v5696_v7, %v5583_v14  ;;  %v6773_v7 = vld [vmem:[%s10401_s15 + $0xc] sm:$0xf] }
 0xa49   :  { %v5712_v18 = vsel %vm332_vm1, %v5702_v58, 0.0 }
 0xa4a   :  { %5713 = vadd.xlane.f32.xlu0 %v5712_v18  ;;  %v6667_v18 = vld [vmem:[%s10401_s15 + $0x1c] sm:$0xf0] }
 0xa4c   :  { %v5697_v36 = vpop.f32.mrf.mxu3 }
 0xa4d   :  { %v5698_v63 = vadd.f32 %v6829_v57, %v5697_v36  ;;  %v6690_v57 = vor.u32 %v6778_v41, %v6687_v20  ;;  %v6673_v36 = vld [vmem:[%s10401_s15 + $0x10] sm:$0xf] }
 0xa4f   :  { %v5703_v38 = vadd.f32 %v5698_v63, %v5584_v42  ;;  %5955 = vmatpush.bf16.msrb.mxu3 %v6690_v57  ;;  %v6776_v63 = vld [vmem:[%s10401_s15 + $0x20] sm:$0xf0] }
 0xa51   :  { %v5715_v11 = vsel %vm332_vm1, %v5703_v38, 0.0 }
 0xa52   :  { %5716 = vadd.xlane.f32.xlu1 %v5715_v11 }
 0xaaa   :  { %v5708_v51 = vpop.xlane.xlu1 %5707 }
 0xaab   :  { %v5718_v3 = vmul.f32 %v5708_v51, %v10123_v29  ;;  %v6670_v51 = vor.u32 %v6773_v7, %v6667_v18 }
 0xaad   :  { %v10178_v54 = vsub.f32 %v5700_v9, %v5718_v3  ;;  %v6694_v9 = vor.u32 %v6781_v60, %v6693_v56  ;;  %v6674_v3 = vor.u32 %v6776_v63, %v6673_v36  ;;  %5956 = vmatpush.bf16.msrb.mxu3 %v6670_v51 }
 0xaaf   :  { %v5726_v34 = vmul.f32 %v10178_v54, %v10178_v54  ;;  %5974 = vmatpush.bf16.msrb.mxu1 %v6694_v9 }
 0xab1   :  { %v5730_v0 = vsel %vm332_vm1, %v5726_v34, 0.0 }
 0xab2   :  { %v5711_v30 = vpop.xlane.xlu2 %5710  ;;  %5731 = vadd.xlane.f32.xlu2 %v5730_v0 }
 0xab3   :  { %v5719_v33 = vmul.f32 %v5711_v30, %v10123_v29  ;;  %v6685_v30 = vld [vmem:[%s10401_s15 + $0x30] sm:$0xf]  ;;  %5975 = vmatpush.bf16.msrb.mxu1 %v6674_v3 }
 0xab5   :  { %v10184_v26 = vsub.f32 %v5701_v6, %v5719_v33  ;;  %v6658_v6 = vor.u32 %v6774_v48, %v6657_v45  ;;  %v6780_v33 = vld [vmem:[%s10401_s15 + $0x40] sm:$0xf0] }
 0xab7   :  { %v5727_v55 = vmul.f32 %v10184_v26, %v10184_v26  ;;  %5899 = vmatpush.bf16.msrb.mxu0 %v6658_v6 }
 0xab9   :  { %v5733_v23 = vsel %vm332_vm1, %v5727_v55, 0.0  ;;  %v6830_v55 = vld [vmem:[%s10399_s13] ss:$0 sm:$0xff] }
 0xaba   :  { %5734 = vadd.xlane.f32.xlu0 %v5733_v23 }
 0xabd   :  { %v5714_v2 = vpop.xlane.xlu0 %5713 }
 0xabe   :  { %v5720_v8 = vmul.f32 %v5714_v2, %v10123_v29 }
 0xac0   :  { %v10190_v19 = vsub.f32 %v5702_v58, %v5720_v8  ;;  %v6662_v58 = vor.u32 %v6772_v10, %v6659_v53  ;;  %v6686_v8 = vor.u32 %v6780_v33, %v6685_v30 }
 0xac2   :  { %v5728_v12 = vmul.f32 %v10190_v19, %v10190_v19  ;;  %5918 = vmatpush.bf16.msra.mxu2 %v6662_v58  ;;  %5936 = vmatpush.bf16.msra.mxu0 %v6686_v8  ;;  %v7288_v8 = vmov 1  }
 0xac3   :  { %6807 = vset.pattern.permute.xlu0 %v7288_v8 }
 0xac4   :  { %v5736_v32 = vsel %vm332_vm1, %v5728_v12, 0.0  ;;  %v6665_v12 = vld [vmem:[%s10401_s15 + $0x8] sm:$0xf] }
 0xac5   :  { %5737 = vadd.xlane.f32.xlu1 %v5736_v32  ;;  %v5717_v21 = vpop.xlane.xlu1 %5716  ;;  %v6775_v32 = vld [vmem:[%s10401_s15 + $0x18] sm:$0xf0] }
 0xac6   :  { %v5721_v4 = vmul.f32 %v5717_v21, %v10123_v29 }
 0xac8   :  { %v10196_v37 = vsub.f32 %v5703_v38, %v5721_v4 }
 0xaca   :  { %v5729_v1 = vmul.f32 %v10196_v37, %v10196_v37 }
 0xacc   :  { %v5739_v5 = vsel %vm332_vm1, %v5729_v1, 0.0 }
 0xacd   :  { %5740 = vadd.xlane.f32.xlu2 %v5739_v5 }
 0xb25   :  { %v5732_v24 = vpop.xlane.xlu2 %5731 }
 0xb26   :  { %v5742_v22 = vmul.f32 %v5732_v24, %v10123_v29 }
 0xb28   :  { %v5746_v46 = vadd.f32 1e-05, %v5742_v22  ;;  %v6831_v22 = vld [vmem:[%s10400_s14] ss:$0 sm:$0xff] }
 0xb2a   :  { %7099 = vrsqrt.f32 %v5746_v46  ;;  %vm5756_vm7 = vweird.f32 %v5746_v46 }
 0xb2d   :  { %v5735_v39 = vpop.xlane.xlu0 %5734 }
 0xb2e   :  { %v5743_v14 = vmul.f32 %v5735_v39, %v10123_v29 }
 0xb30   :  { %v7100_v42 = vpop.eup %7099  ;;  %v10203_v52 = vadd.f32 1e-05, %v5743_v14 }
 0xb31   :  { %v5751_v40 = vmul.f32 %v7100_v42, %v5746_v46  ;;  %vm5757_vm13 = vweird.f32 %v7100_v42 }
 0xb32   :  { %7101 = vrsqrt.f32 %v10203_v52  ;;  %vm10233_vm11 = vmor %vm5756_vm7, %vm5757_vm13  ;;  %vm5766_vm3 = vweird.f32 %v10203_v52 }
 0xb33   :  { %v5752_v47 = vmul.f32 %v7100_v42, %v5751_v40 }
 0xb35   :  { %v5753_v15 = vmul.f32 0.5, %v5752_v47 }
 0xb37   :  { %v5754_v50 = vsub.f32 1.5, %v5753_v15 }
 0xb38   :  { %v5738_v43 = vpop.xlane.xlu1 %5737  ;;  %v7102_v25 = vpop.eup %7101 }
 0xb39   :  { %v5744_v35 = vmul.f32 %v5738_v43, %v10123_v29  ;;  %v5755_v61 = vmul.f32 %v7100_v42, %v5754_v50  ;;  %v5761_v31 = vmul.f32 %v7102_v25, %v10203_v52  ;;  %vm5767_vm8 = vweird.f32 %v7102_v25 }
 0xb3a   :  { %vm5768_vm12 = vmor %vm5766_vm3, %vm5767_vm8 }
 0xb3b   :  { %v10237_v44 = vadd.f32 1e-05, %v5744_v35  ;;  %v5762_v59 = vmul.f32 %v7102_v25, %v5761_v31  ;;  %v5759_v38 = vsel %vm10233_vm11, %v7100_v42, %v5755_v61 }
 0xb3c   :  { %v5790_v23 = vmul.f32 %v5759_v38, %v10178_v54  ;;  %v6666_v54 = vor.u32 %v6775_v32, %v6665_v12  ;;  %v7289_v12 = vmov 0  }
 0xb3d   :  { %7103 = vrsqrt.f32 %v10237_v44  ;;  %v5763_v11 = vmul.f32 0.5, %v5762_v59  ;;  %vm5776_vm4 = vweird.f32 %v10237_v44  ;;  %6806 = vset.pattern.permute.xlu2 %v7289_v12 }
 0xb3e   :  { %v5797_v46 = vmul.f32 %v6830_v55, %v5790_v23  ;;  %5937 = vmatpush.bf16.msra.mxu0 %v6666_v54 }
 0xb3f   :  { %v5764_v34 = vsub.f32 1.5, %v5763_v11 }
 0xb40   :  { %v5741_v0 = vpop.xlane.xlu2 %5740  ;;  %v5804_v40 = vadd.f32 %v6831_v22, %v5797_v46 }
 0xb41   :  { %v5745_v2 = vmul.f32 %v5741_v0, %v10123_v29  ;;  %v5765_v21 = vmul.f32 %v7102_v25, %v5764_v34 }
 0xb43   :  { %v7104_v4 = vpop.eup %7103  ;;  %v5749_v1 = vadd.f32 1e-05, %v5745_v2  ;;  %v5769_v5 = vsel %vm5768_vm12, %v7102_v25, %v5765_v21  ;;  %v7287_v2 = vmov 2  }
 0xb44   :  { %v5771_v24 = vmul.f32 %v7104_v4, %v10237_v44  ;;  %v5791_v39 = vmul.f32 %v5769_v5, %v10184_v26  ;;  %vm5777_vm10 = vweird.f32 %v7104_v4  ;;  %6808 = vset.pattern.permute.xlu1 %v7287_v2 }
 0xb45   :  { %7105 = vrsqrt.f32 %v5749_v1  ;;  %vm5778_vm15 = vmor %vm5776_vm4, %vm5777_vm10  ;;  %vm5786_vm6 = vweird.f32 %v5749_v1 }
 0xb46   :  { %v5772_v14 = vmul.f32 %v7104_v4, %v5771_v24  ;;  %v5798_v42 = vmul.f32 %v6830_v55, %v5791_v39 }
 0xb48   :  { %v5773_v52 = vmul.f32 0.5, %v5772_v14  ;;  %v5805_v47 = vadd.f32 %v6831_v22, %v5798_v42 }
 0xb4a   :  { %v5774_v15 = vsub.f32 1.5, %v5773_v52  ;;  %v5808_v16 = vpack.c.bf16 %v5805_v47, %v5804_v40 }
 0xb4b   :  { %v7106_v49 = vpop.eup %7105 }
 0xb4c   :  { %v5775_v62 = vmul.f32 %v7104_v4, %v5774_v15  ;;  %v5781_v50 = vmul.f32 %v7106_v49, %v5749_v1  ;;  %6695 = vmatmul.msk.bf16.vlgmr.msrb.gmra.mxu0 %vm332_vm1, %v5808_v16  ;;  %6697 = vmatmul.msk.bf16.vlgmr.msra.gmra.mxu2 %vm332_vm1, %v5808_v16  ;;  %vm5787_vm5 = vweird.f32 %v7106_v49 }
 0xb4d   :  { %6701 = vmatmul.msk.bf16.vlgmr.msrb.gmra.mxu3 %vm332_vm1, %v5808_v16  ;;  %6703 = vmatmul.msk.bf16.vlgmr.msrb.gmra.mxu1 %vm332_vm1, %v5808_v16  ;;  %vm5788_vm14 = vmor %vm5786_vm6, %vm5787_vm5 }
 0xb4e   :  { %v5782_v26 = vmul.f32 %v7106_v49, %v5781_v50  ;;  %v5779_v43 = vsel %vm5778_vm15, %v7104_v4, %v5775_v62 }
 0xb4f   :  { %v5792_v41 = vmul.f32 %v5779_v43, %v10190_v19  ;;  %v10306_v19 = vld [vmem:[%s10402_s16] sm:$0x1f] }
 0xb50   :  { %v5783_v28 = vmul.f32 0.5, %v5782_v26 }
 0xb51   :  { %v5799_v13 = vmul.f32 %v6830_v55, %v5792_v41 }
 0xb52   :  { %v5784_v17 = vsub.f32 1.5, %v5783_v28 }
 0xb53   :  { %v5806_v60 = vadd.f32 %v6831_v22, %v5799_v13 }
 0xb54   :  { %v5785_v25 = vmul.f32 %v7106_v49, %v5784_v17 }
 0xb56   :  { %v5789_v35 = vsel %vm5788_vm14, %v7106_v49, %v5785_v25 }
 0xb57   :  { %v5793_v20 = vmul.f32 %v5789_v35, %v10196_v37  ;;  %v5828_v37 = vperm.slane %v10306_v19, 4 }
 0xb59   :  { %v5800_v56 = vmul.f32 %v6830_v55, %v5793_v20 }
 0xb5b   :  { %v5807_v61 = vadd.f32 %v6831_v22, %v5800_v56 }
 0xb5d   :  { %v5809_v31 = vpack.c.bf16 %v5807_v61, %v5806_v60  ;;  %v7290_v60 = vmov 3  }
 0xb5f   :  { %6696 = vmatmul.msk.bf16.gmra.mxu0 %vm332_vm1, %v5809_v31  ;;  %6698 = vmatmul.msk.bf16.gmra.mxu2 %vm332_vm1, %v5809_v31 }
 0xb60   :  { %6702 = vmatmul.msk.bf16.gmra.mxu3 %vm332_vm1, %v5809_v31  ;;  %6704 = vmatmul.msk.bf16.gmra.mxu1 %vm332_vm1, %v5809_v31 }
 0xb6f   :  { %6699 = vmatmul.msk.bf16.vlgmr.msra.gmra.mxu0 %vm332_vm1, %v5808_v16 }
 0xb7f   :  { %6700 = vmatmul.msk.bf16.gmra.mxu0 %vm332_vm1, %v5809_v31 }
 0xbca   :  { %v5977_v57 = vpop.f32.mrf.mxu1 }
 0xbcb   :  { %v5978_v27 = vadd.f32 %v5977_v57, %v5828_v37 }
 0xbcd   :  { %5987 = vmax.xlane.f32.xlu0 %v5978_v27 }
 0xbd2   :  { %v5979_v44 = vpop.f32.mrf.mxu1 }
 0xbd3   :  { %v5980_v9 = vadd.f32 %v5979_v44, %v5828_v37 }
 0xbd5   :  { %5989 = vmax.xlane.f32.xlu1 %v5980_v9 }
 0xbdd   :  { %v5982_v45 = vpop.f32.mrf.mxu1 }
 0xbde   :  { %v5983_v48 = vadd.f32 %v5982_v45, %v5828_v37 }
 0xbe0   :  { %5991 = vmax.xlane.f32.xlu2 %v5983_v48 }
 0xbe5   :  { %v5984_v59 = vpop.f32.mrf.mxu1 }
 0xbe6   :  { %v5985_v6 = vadd.f32 %v5984_v59, %v5828_v37 }
 0xbe8   :  { %5993 = vmax.xlane.f32.xlu0 %v5985_v6 }
 0xc40   :  { %v5988_v10 = vpop.xlane.xlu0 %5987 }
 0xc41   :  { %v5995_v53 = vsub.f32 %v5978_v27, %v5988_v10 }
 0xc43   :  { %v5999_v7 = vmul.f32 1.442695, %v5995_v53 }
 0xc45   :  { %7107 = vpow2.f32 %v5999_v7 }
 0xc48   :  { %v5990_v58 = vpop.xlane.xlu1 %5989 }
 0xc49   :  { %v5996_v18 = vsub.f32 %v5980_v9, %v5990_v58 }
 0xc4b   :  { %v7108_v36 = vpop.eup %7107  ;;  %v6001_v63 = vmul.f32 1.442695, %v5996_v18 }
 0xc4c   :  { %6007 = vadd.xlane.f32.xlu1 %v7108_v36 }
 0xc4d   :  { %7109 = vpow2.f32 %v6001_v63 }
 0xc53   :  { %v5992_v38 = vpop.xlane.xlu2 %5991  ;;  %v7110_v11 = vpop.eup %7109 }
 0xc54   :  { %v5997_v51 = vsub.f32 %v5983_v48, %v5992_v38  ;;  %6009 = vadd.xlane.f32.xlu2 %v7110_v11 }
 0xc56   :  { %v6003_v3 = vmul.f32 1.442695, %v5997_v51 }
 0xc58   :  { %7111 = vpow2.f32 %v6003_v3 }
 0xc5b   :  { %v5994_v34 = vpop.xlane.xlu0 %5993 }
 0xc5c   :  { %v5998_v0 = vsub.f32 %v5985_v6, %v5994_v34  ;;  %v5901_v34 = vpop.f32.mrf.mxu0 }
 0xc5e   :  { %v10309_v30 = vpop.eup %7111  ;;  %v6005_v33 = vmul.f32 1.442695, %v5998_v0 }
 0xc5f   :  { %6011 = vadd.xlane.f32.xlu0 %v10309_v30 }
 0xc60   :  { %7113 = vpow2.f32 %v6005_v33 }
 0xc64   :  { %v5903_v33 = vpop.f32.mrf.mxu0 }
 0xc66   :  { %v10312_v55 = vpop.eup %7113 }
 0xc67   :  { %6013 = vadd.xlane.f32.xlu1 %v10312_v55 }
 0xcbf   :  { %v6008_v23 = vpop.xlane.xlu1 %6007 }
 0xcc0   :  { %7115 = vrcp.f32 %v6008_v23  ;;  %v6026_v54 = vand.u32 2147483648, %v6008_v23  ;;  %v6024_v24 = vand.u32 2147483647, %v6008_v23  ;;  %vm6020_vm0 = vweird.f32 %v6008_v23 }
 0xcc2   :  { %v6027_v39 = vor.u32 1.1754944e-38, %v6026_v54  ;;  %vm6025_vm13 = vcmp.eq.f32.partialorder %v6024_v24, 8.507059e+37  ;;  %v10338_v54 = vperm.slane %v10306_v19, 1  ;;  %v10341_v24 = vperm.slane %v10306_v19, 2 }
 0xcc6   :  { %v7116_v32 = vpop.eup %7115 }
 0xcc7   :  { %v6016_v21 = vmul.f32 %v7116_v32, %v6008_v23  ;;  %v6010_v4 = vpop.xlane.xlu2 %6009  ;;  %vm6021_vm1 = vweird.f32 %v7116_v32 }
 0xcc8   :  { %7117 = vrcp.f32 %v6010_v4  ;;  %vm6022_vm9 = vmor %vm6020_vm0, %vm6021_vm1  ;;  %v6041_v49 = vand.u32 2147483648, %v6010_v4  ;;  %v6039_v62 = vand.u32 2147483647, %v6010_v4  ;;  %vm6035_vm11 = vweird.f32 %v6010_v4 }
 0xcc9   :  { %v6017_v1 = vsub.f32 1.0, %v6016_v21 }
 0xcca   :  { %v6042_v26 = vor.u32 1.1754944e-38, %v6041_v49  ;;  %vm6040_vm3 = vcmp.eq.f32.partialorder %v6039_v62, 8.507059e+37 }
 0xccb   :  { %v6018_v5 = vmul.f32 %v7116_v32, %v6017_v1  ;;  %v10335_v1 = vperm.slane %v10306_v19, 0 }
 0xccd   :  { %v6019_v22 = vadd.f32 %v7116_v32, %v6018_v5  ;;  %v5920_v5 = vpop.f32.mrf.mxu2 }
 0xcce   :  { %v7118_v46 = vpop.eup %7117 }
 0xccf   :  { %v6023_v14 = vsel %vm6022_vm9, %v7116_v32, %v6019_v22  ;;  %v6031_v42 = vmul.f32 %v7118_v46, %v6010_v4  ;;  %vm6036_vm7 = vweird.f32 %v7118_v46 }
 0xcd0   :  { %v6028_v52 = vsel %vm6025_vm13, %v6027_v39, %v6023_v14  ;;  %vm6037_vm8 = vmor %vm6035_vm11, %vm6036_vm7  ;;  %v5921_v39 = vadd.f32 %v5920_v5, %v10338_v54  ;;  %v10346_v14 = vperm.slane %v10306_v19, 3  ;;  %v6788_v19 = vld [vmem:[#allocation10 + $0x30] sm:$0xff] }
 0xcd1   :  { %v6032_v40 = vsub.f32 1.0, %v6031_v42  ;;  %v6029_v15 = vmul.f32 %v7108_v36, %v6028_v52  ;;  %v5958_v42 = vpop.f32.mrf.mxu3 }
 0xcd2   :  { %v6012_v47 = vpop.xlane.xlu0 %6011 }
 0xcd3   :  { %7119 = vrcp.f32 %v6012_v47  ;;  %v6033_v16 = vmul.f32 %v7118_v46, %v6032_v40  ;;  %6128 = vperm.xlu1 %6808, %v6029_v15   ;;  %6104 = vperm.xlu0 %6807, %v6029_v15   ;;  %v6056_v56 = vand.u32 2147483648, %v6012_v47  ;;  %v6054_v31 = vand.u32 2147483647, %v6012_v47 }
 0xcd4   :  { %6077 = vperm.xlu2 %6806, %v6029_v15   ;;  %vm6050_vm10 = vweird.f32 %v6012_v47 }
 0xcd5   :  { %v6034_v50 = vadd.f32 %v7118_v46, %v6033_v16  ;;  %v6057_v27 = vor.u32 1.1754944e-38, %v6056_v56  ;;  %vm6055_vm15 = vcmp.eq.f32.partialorder %v6054_v31, 8.507059e+37  ;;  %v5959_v16 = vadd.f32 %v5958_v42, %v10346_v14  ;;  %v6787_v31 = vld [vmem:[#allocation10 + $0x28] sm:$0xff] }
 0xcd6   :  { %v5904_v56 = vadd.f32 %v5903_v33, %v10335_v1 }
 0xcd7   :  { %v6038_v43 = vsel %vm6037_vm8, %v7118_v46, %v6034_v50  ;;  %v5902_v46 = vadd.f32 %v5901_v34, %v10335_v1 }
 0xcd8   :  { %v6043_v17 = vsel %vm6040_vm3, %v6042_v26, %v6038_v43 }
 0xcd9   :  { %v7120_v28 = vpop.eup %7119  ;;  %v6044_v35 = vmul.f32 %v7110_v11, %v6043_v17  ;;  %v5922_v17 = vpop.f32.mrf.mxu2 }
 0xcda   :  { %v6046_v41 = vmul.f32 %v7120_v28, %v6012_v47  ;;  %v6014_v25 = vpop.xlane.xlu1 %6013  ;;  %vm6051_vm12 = vweird.f32 %v7120_v28 }
 0xcdb   :  { %7121 = vrcp.f32 %v6014_v25  ;;  %6811 = vset.pattern.permute.xlu1 %v7288_v8  ;;  %6814 = vset.pattern.permute.xlu0 %v7289_v12  ;;  %v6324_v20 = vadd.f32 %v6044_v35, %v6029_v15  ;;  %vm6052_vm4 = vmor %vm6050_vm10, %vm6051_vm12  ;;  %v6071_v6 = vand.u32 2147483648, %v6014_v25  ;;  %v6069_v53 = vand.u32 2147483647, %v6014_v25 }
 0xcdc   :  { %v6047_v13 = vsub.f32 1.0, %v6046_v41  ;;  %6809 = vset.pattern.permute.xlu2 %v7290_v60  ;;  %6108 = vperm.xlu1 %6811, %v6044_v35   ;;  %vm6065_vm6 = vweird.f32 %v6014_v25 }
 0xcdd   :  { %6152 = vperm.xlu2 %6809, %v6029_v15   ;;  %v6072_v58 = vor.u32 1.1754944e-38, %v6071_v6  ;;  %vm6070_vm1 = vcmp.eq.f32.partialorder %v6069_v53, 8.507059e+37  ;;  %v6786_v6 = vld [vmem:[#allocation10 + $0x20] sm:$0xff] }
 0xcde   :  { %v6048_v61 = vmul.f32 %v7120_v28, %v6047_v13 }
 0xce0   :  { %v6049_v37 = vadd.f32 %v7120_v28, %v6048_v61 }
 0xce1   :  { %v7122_v57 = vpop.eup %7121 }
 0xce2   :  { %v6053_v44 = vsel %vm6052_vm4, %v7120_v28, %v6049_v37  ;;  %v6061_v9 = vmul.f32 %v7122_v57, %v6014_v25  ;;  %vm6066_vm5 = vweird.f32 %v7122_v57  ;;  %v6789_v28 = vld [vmem:[#allocation10 + $0x38] sm:$0xff] }
 0xce3   :  { %v6058_v45 = vsel %vm6055_vm15, %v6057_v27, %v6053_v44  ;;  %vm6067_vm14 = vmor %vm6065_vm6, %vm6066_vm5  ;;  %6311 = vmatpush.bf16.msrb.mxu2 %v6789_v28 }
 0xce4   :  { %v6062_v48 = vsub.f32 1.0, %v6061_v9  ;;  %v6059_v59 = vmul.f32 %v10309_v30, %v6058_v45  ;;  %6813 = vset.pattern.permute.xlu1 %v7290_v60  ;;  %v5960_v9 = vpop.f32.mrf.mxu3 }
 0xce5   :  { %6810 = vset.pattern.permute.xlu2 %v7289_v12  ;;  %6156 = vperm.xlu1 %6813, %v6044_v35  }
 0xce6   :  { %v6063_v10 = vmul.f32 %v7122_v57, %v6062_v48  ;;  %6087 = vperm.xlu0 %6814, %v6059_v59   ;;  %6082 = vperm.xlu2 %6810, %v6044_v35   ;;  %v6325_v38 = vadd.f32 %v6324_v20, %v6059_v59  ;;  %v5923_v20 = vadd.f32 %v5922_v17, %v10338_v54  ;;  %v6783_v17 = vld [vmem:[#allocation10 + $0x8] sm:$0xff] }
 0xce7   :  { %6312 = vmatpush.bf16.msrb.mxu2 %v6788_v19 }
 0xce8   :  { %v6064_v7 = vadd.f32 %v7122_v57, %v6063_v10  ;;  %v5961_v10 = vadd.f32 %v5960_v9, %v10346_v14 }
 0xcea   :  { %v6068_v18 = vsel %vm6067_vm14, %v7122_v57, %v6064_v7 }
 0xceb   :  { %v6073_v36 = vsel %vm6070_vm1, %v6072_v58, %v6068_v18  ;;  %6313 = vmatpush.bf16.msrb.mxu2 %v6787_v31 }
 0xcec   :  { %v6074_v63 = vmul.f32 %v10312_v55, %v6073_v36  ;;  %v5963_v5 = vpop.f32.mrf.mxu3 }
 0xced   :  { %6816 = vset.pattern.permute.xlu1 %v7287_v2 }
 0xcee   :  { %6819 = vset.pattern.permute.xlu0 %v7288_v8  ;;  %6812 = vset.pattern.permute.xlu2 %v7287_v2  ;;  %v6326_v11 = vadd.f32 %v6325_v38, %v6074_v63 }
 0xcef   :  { %6116 = vperm.xlu0 %6819, %v6074_v63   ;;  %6136 = vperm.xlu1 %6816, %v6059_v59  }
 0xcf0   :  { %6132 = vperm.xlu2 %6812, %v6044_v35   ;;  %v6327_v51 = vrot.slane %v6326_v11, 4  ;;  %6314 = vmatpush.bf16.msrb.mxu2 %v6786_v6 }
 0xcf2   :  { %v6328_v3 = vadd.f32 %v6327_v51, %v6326_v11  ;;  %v5925_v51 = vpop.f32.mrf.mxu2 }
 0xcf4   :  { %v6329_v0 = vrot.slane %v6328_v3, 2 }
 0xcf6   :  { %v6330_v30 = vadd.f32 %v6329_v0, %v6328_v3 }
 0xcf7   :  { %6822 = vset.pattern.permute.xlu0 %v7290_v60  ;;  %6818 = vset.pattern.permute.xlu1 %v7289_v12  ;;  %v10330_v12 = vpop.f32.mrf.mxu0 }
 0xcf8   :  { %6815 = vset.pattern.permute.xlu2 %v7288_v8  ;;  %6092 = vperm.xlu1 %6818, %v6074_v63   ;;  %v6331_v55 = vrot.slane %v6330_v30, 1 }
 0xcf9   :  { %6112 = vperm.xlu2 %6815, %v6059_v59  }
 0xcfa   :  { %v6332_v23 = vadd.f32 %v6331_v55, %v6330_v30  ;;  %v5907_v30 = vadd.f32 %v10330_v12, %v10335_v1 }
 0xcfc   :  { %v6333_v8 = vmul.f32 %v6332_v23, %v10123_v29 }
 0xcfe   :  { %v6334_v21 = vmul.f32 %v6333_v8, %v6333_v8 }
 0xcff   :  { %v10332_v4 = vpop.f32.mrf.mxu0 }
 0xd00   :  { %6821 = vset.pattern.permute.xlu1 %v7290_v60 }
 0xd01   :  { %6817 = vset.pattern.permute.xlu2 %v7290_v60  ;;  %6164 = vperm.xlu1 %6821, %v6074_v63  }
 0xd02   :  { %6160 = vperm.xlu2 %6817, %v6059_v59  }
 0xd07   :  { %v5939_v22 = vpop.f32.mrf.mxu0 }
 0xd08   :  { %v5940_v47 = vadd.f32 %v5939_v22, %v10341_v24 }
 0xd0a   :  { %6820 = vset.pattern.permute.xlu2 %v7287_v2 }
 0xd0b   :  { %6140 = vperm.xlu2 %6820, %v6074_v63  }
 0xd0f   :  { %v5941_v37 = vpop.f32.mrf.mxu0 }
 0xd10   :  { %v5942_v48 = vadd.f32 %v5941_v37, %v10341_v24 }
 0xd17   :  { %v5944_v55 = vpop.f32.mrf.mxu0 }
 0xd2e   :  { %v6078_v32 = vpop.permute.xlu2 %6077 }
 0xd2f   :  { %v6095_v15 = vmul.f32 %v6078_v32, %v5902_v46  ;;  %v5926_v32 = vadd.f32 %v5925_v51, %v10338_v54  ;;  %v5945_v46 = vadd.f32 %v5944_v55, %v10341_v24 }
 0xd34   :  { %6335 = vadd.xlane.f32.xlu2 %v6334_v21 }
 0xd37   :  { %v6153_v2 = vpop.permute.xlu2 %6152 }
 0xd38   :  { %v6167_v26 = vmul.f32 %v6153_v2, %v5959_v16 }
 0xd40   :  { %v6083_v29 = vpop.permute.xlu2 %6082 }
 0xd41   :  { %v6096_v57 = vmul.f32 %v6083_v29, %v5904_v56  ;;  %v6785_v29 = vld [vmem:[#allocation10 + $0x18] sm:$0xff] }
 0xd42   :  { %6315 = vmatpush.bf16.msrb.mxu2 %v6785_v29 }
 0xd45   :  { %v6105_v52 = vpop.permute.xlu0 %6104  ;;  %v6129_v40 = vpop.permute.xlu1 %6128 }
 0xd46   :  { %v6119_v49 = vmul.f32 %v6105_v52, %v5921_v39  ;;  %v6143_v50 = vmul.f32 %v6129_v40, %v5940_v47  ;;  %v6784_v47 = vld [vmem:[#allocation10 + $0x10] sm:$0xff] }
 0xd47   :  { %6316 = vmatpush.bf16.msrb.mxu2 %v6784_v47 }
 0xd48   :  { %v6123_v62 = vadd.f32 %v6119_v49, %v6095_v15  ;;  %v5964_v15 = vadd.f32 %v5963_v5, %v10346_v14 }
 0xd4a   :  { %v6147_v43 = vadd.f32 %v6143_v50, %v6123_v62  ;;  %v6133_v25 = vpop.permute.xlu2 %6132 }
 0xd4b   :  { %v6144_v58 = vmul.f32 %v6133_v25, %v5942_v48  ;;  %6317 = vmatpush.bf16.msrb.mxu2 %v6783_v17  ;;  %v5946_v48 = vpop.f32.mrf.mxu0 }
 0xd4c   :  { %v6171_v41 = vadd.f32 %v6167_v26, %v6147_v43 }
 0xd4e   :  { %v6179_v35 = vrot.slane %v6171_v41, 2  ;;  %v6109_v13 = vpop.permute.xlu1 %6108  ;;  %v6180_v27 = vrot.slane %v6171_v41, 4  ;;  %v6203_v44 = vsel %vm570_vm2, %v6171_v41, 0.0  ;;  %v6181_v53 = vrot.slane %v6171_v41, 6 }
 0xd4f   :  { %v6120_v61 = vmul.f32 %v6109_v13, %v5923_v20  ;;  %v7291_v41 = vmov 16.0   ;;  %v5927_v20 = vpop.f32.mrf.mxu2 }
 0xd50   :  { %v6204_v60 = vsel %vm570_vm2, %v6179_v35, 0.0  ;;  %v6206_v7 = vsel %vm570_vm2, %v6180_v27, 0.0  ;;  %v6208_v34 = vsel %vm570_vm2, %v6181_v53, 0.0  ;;  %7123 = vrcp.f32 %v7291_v41 }
 0xd51   :  { %v6205_v45 = vadd.f32 %v6204_v60, %v6203_v44  ;;  %v6124_v59 = vadd.f32 %v6120_v61, %v6096_v57  ;;  %v6782_v60 = vld [vmem:[#allocation10] sm:$0xff]  ;;  %v5909_v61 = vadd.f32 %v10332_v4, %v10335_v1  ;;  %v5928_v44 = vadd.f32 %v5927_v20, %v10338_v54 }
 0xd52   :  { %6318 = vmatpush.bf16.msrb.mxu2 %v6782_v60 }
 0xd53   :  { %v6113_v18 = vpop.permute.xlu2 %6112  ;;  %v6207_v36 = vadd.f32 %v6206_v7, %v6205_v45  ;;  %v6148_v38 = vadd.f32 %v6144_v58, %v6124_v59  ;;  %v5965_v59 = vpop.f32.mrf.mxu3 }
 0xd54   :  { %v6121_v39 = vmul.f32 %v6113_v18, %v5926_v32  ;;  %v5947_v18 = vadd.f32 %v5946_v48, %v10341_v24  ;;  %v5966_v1 = vadd.f32 %v5965_v59, %v10346_v14 }
 0xd55   :  { %v6209_v33 = vadd.f32 %v6208_v34, %v6207_v36 }
 0xd56   :  { %v7124_v37 = vpop.eup %7123 }
 0xd57   :  { %v6157_v63 = vpop.permute.xlu1 %6156  ;;  %v6235_v53 = vmul.f32 16.0, %v7124_v37  ;;  %vm6239_vm0 = vweird.f32 %v7124_v37 }
 0xd58   :  { %v6168_v11 = vmul.f32 %v6157_v63, %v5961_v10  ;;  %v6088_v3 = vpop.permute.xlu0 %6087 }
 0xd59   :  { %v6097_v21 = vmul.f32 %v6088_v3, %v5907_v30 }
 0xd5a   :  { %v6172_v0 = vadd.f32 %v6168_v11, %v6148_v38  ;;  %v6236_v38 = vsub.f32 1.0, %v6235_v53 }
 0xd5b   :  { %v6125_v49 = vadd.f32 %v6121_v39, %v6097_v21 }
 0xd5c   :  { %v6182_v23 = vrot.slane %v6172_v0, 2  ;;  %v6210_v8 = vsel %vm570_vm2, %v6172_v0, 0.0  ;;  %v6183_v42 = vrot.slane %v6172_v0, 4  ;;  %v6161_v40 = vpop.permute.xlu2 %6160  ;;  %v6184_v62 = vrot.slane %v6172_v0, 6 }
 0xd5d   :  { %v6211_v2 = vadd.f32 %v6210_v8, %v6209_v33  ;;  %v6169_v26 = vmul.f32 %v6161_v40, %v5964_v15  ;;  %v6237_v33 = vmul.f32 %v7124_v37, %v6236_v38 }
 0xd5e   :  { %v6212_v22 = vsel %vm570_vm2, %v6182_v23, 0.0  ;;  %v6214_v50 = vsel %vm570_vm2, %v6183_v42, 0.0  ;;  %v6216_v19 = vsel %vm570_vm2, %v6184_v62, 0.0 }
 0xd5f   :  { %v6213_v52 = vadd.f32 %v6212_v22, %v6211_v2  ;;  %v6238_v2 = vadd.f32 %v7124_v37, %v6237_v33 }
 0xd61   :  { %v6137_v12 = vpop.permute.xlu1 %6136  ;;  %v6215_v28 = vadd.f32 %v6214_v50, %v6213_v52  ;;  %v6117_v57 = vpop.permute.xlu0 %6116  ;;  %v6240_v39 = vsel %vm6239_vm0, %v7124_v37, %v6238_v2 }
 0xd62   :  { %v6145_v16 = vmul.f32 %v6137_v12, %v5945_v46  ;;  %v6122_v6 = vmul.f32 %v6117_v57, %v5928_v44  ;;  %v6338_v12 = vlaneseq }
 0xd63   :  { %v6217_v56 = vadd.f32 %v6216_v19, %v6215_v28 }
 0xd64   :  { %v6149_v43 = vadd.f32 %v6145_v16, %v6125_v49  ;;  %v6339_v47 = vand.u32 127, %v6338_v12  ;;  %v6832_v49 = vld [vmem:[%s10802_s4] ss:$0 sm:$0xff] }
 0xd65   :  { %v6141_v58 = vpop.permute.xlu2 %6140 }
 0xd66   :  { %v6173_v25 = vadd.f32 %v6169_v26, %v6149_v43  ;;  %v6146_v54 = vmul.f32 %v6141_v58, %v5947_v18  ;;  %vm6340_vm9 = vcmp.eq.s32.totalorder %v6339_v47, 10 }
 0xd68   :  { %v6185_v35 = vrot.slane %v6173_v25, 2  ;;  %v6218_v13 = vsel %vm570_vm2, %v6173_v25, 0.0  ;;  %v6186_v10 = vrot.slane %v6173_v25, 4  ;;  %v6187_v36 = vrot.slane %v6173_v25, 6 }
 0xd69   :  { %v6219_v27 = vadd.f32 %v6218_v13, %v6217_v56 }
 0xd6a   :  { %v6093_v31 = vpop.permute.xlu1 %6092  ;;  %v6220_v9 = vsel %vm570_vm2, %v6185_v35, 0.0  ;;  %v6222_v63 = vsel %vm570_vm2, %v6186_v10, 0.0  ;;  %v6224_v0 = vsel %vm570_vm2, %v6187_v36, 0.0 }
 0xd6b   :  { %v6098_v45 = vmul.f32 %v6093_v31, %v5909_v61  ;;  %v6221_v7 = vadd.f32 %v6220_v9, %v6219_v27 }
 0xd6d   :  { %v6126_v4 = vadd.f32 %v6122_v6, %v6098_v45  ;;  %v6223_v11 = vadd.f32 %v6222_v63, %v6221_v7 }
 0xd6f   :  { %v6150_v3 = vadd.f32 %v6146_v54, %v6126_v4  ;;  %v6225_v55 = vadd.f32 %v6224_v0, %v6223_v11 }
 0xd73   :  { %v6165_v51 = vpop.permute.xlu1 %6164 }
 0xd74   :  { %v6170_v34 = vmul.f32 %v6165_v51, %v5966_v1 }
 0xd76   :  { %v6174_v30 = vadd.f32 %v6170_v34, %v6150_v3 }
 0xd78   :  { %v6188_v23 = vrot.slane %v6174_v30, 2  ;;  %v6189_v8 = vrot.slane %v6174_v30, 4  ;;  %v6226_v24 = vsel %vm570_vm2, %v6174_v30, 0.0  ;;  %v6190_v14 = vrot.slane %v6174_v30, 6 }
 0xd79   :  { %v6227_v32 = vadd.f32 %v6226_v24, %v6225_v55 }
 0xd7a   :  { %v6228_v21 = vsel %vm570_vm2, %v6188_v23, 0.0  ;;  %v6230_v22 = vsel %vm570_vm2, %v6189_v8, 0.0  ;;  %v6232_v46 = vsel %vm570_vm2, %v6190_v14, 0.0 }
 0xd7b   :  { %v6229_v5 = vadd.f32 %v6228_v21, %v6227_v32 }
 0xd7d   :  { %v6231_v29 = vadd.f32 %v6230_v22, %v6229_v5 }
 0xd7f   :  { %v6233_v42 = vadd.f32 %v6232_v46, %v6231_v29 }
 0xd81   :  { %v6241_v52 = vmul.f32 %v6240_v39, %v6233_v42 }
 0xd83   :  { %v6242_v40 = vpack.c.bf16 %v6241_v52, %v6241_v52 }
 0xd85   :  { %6319 = vmatmul.bf16.vlgmr.msrb.gmra.mxu2 %v6242_v40 }
 0xda7   :  { %v6336_v15 = vpop.xlane.xlu2 %6335 }
 0xda8   :  { %v6337_v16 = vmul.f32 4.0, %v6336_v15 }
 0xdaa   :  { %v6341_v26 = vsel %vm6340_vm9, %v6337_v16, 0.0 }
 0xe08   :  { %v6320_v62 = vpop.f32.mrf.mxu2 }
 0xe09   :  { %v6321_v50 = vadd.f32 %v6832_v49, %v6320_v62 }
 0xe0b   :  { %v6342_v43 = vadd.f32 %v6341_v26, %v6321_v50 }
 0xe0d   :  { %6343 = vst [vmem:[#allocation11] sm:$0x3] %v6342_v43 }
 0xe0e   :  { %6354 = dma.vmem_to_hbm [thread:$0]  %s6350_s18, 32, %s6352_s29, [#allocation4]  }
 0xe10   :  { %v6322_v28 = vpop.f32.mrf.mxu2 }
 0xe11   :  { %7275 = dma.done.wait [#allocation4], 32  }
 0xe12   :  { %7276 = vsyncadd [#allocation4], 4294967264 }
 0xe13   :  { %6359 = vsyncpa [#allocation3], 1 }
 0xe14   :  { %6360 = vsyncpa [#allocation6], 1 }
 0xe15   :  { %6361 = vsyncpa [#allocation9], 1 }
 0xe16   :  { %6362 = vsyncpa [#allocation4], 1 }

</bundles_post_ra>
